<compile_context>
chip_gen: v7x
topology: tpu7x:2x2x1
jax: 0.10.0
libtpu: 0.0.40
codegen_flags: <defaults>
</compile_context>

<pallas_src>
import functools
import numpy as np
import jax
import jax.numpy as jnp
from jax.experimental import pallas as pl
from jax.experimental.pallas import tpu as pltpu

F32 = jnp.float32
BF16 = jnp.bfloat16


# ----------------------------- small dot helpers ------------------------------------
def _nt(a, b):  # a @ b.T
    return jax.lax.dot_general(a, b, (((1,), (1,)), ((), ())),
                               preferred_element_type=F32)


def _nn(a, b):  # a @ b
    return jax.lax.dot_general(a, b, (((1,), (0,)), ((), ())),
                               preferred_element_type=F32)


def _tn(a, b):  # a.T @ b
    return jax.lax.dot_general(a, b, (((0,), (0,)), ((), ())),
                               preferred_element_type=F32)


def _l2norm(x):  # F.normalize(x, dim=1) via rsqrt (EUP)
    n2 = jnp.sum(x * x, axis=1, keepdims=True)
    return x * jax.lax.rsqrt(jnp.maximum(n2, 1e-24))


def _fsum(x):  # sum over both axes -> (1, 1)
    return jnp.sum(jnp.sum(x, axis=1, keepdims=True), axis=0, keepdims=True)


def _csum(v):  # (R, 1) -> (1, 1)
    return jnp.sum(v, axis=0, keepdims=True)


# ----------------------------------- kernel -----------------------------------------
def _kdclip_kernel(scal_ref, img_ref, txt_ref, timg_ref, ttxt_ref,
                   wvt_ref, bv_ref, wtt_ref, bt_ref,
                   task_ref, icl_ref, ckd_ref, xkd_ref, fd_ref, gd_ref,
                   nimg0s_sc, ntxt0_sc, nimg_sc, ntxt_sc, timg_sc, ttxt_sc,
                   dk_txt_sc, dk_img_sc, *, block_rows):
    step = pl.program_id(0)
    nsteps = pl.num_programs(0)
    B = img_ref.shape[0]
    T = timg_ref.shape[1]
    Tq = block_rows

    logit_scale = scal_ref[0]
    t_logit_scale = scal_ref[1]
    cross_logit_scale = scal_ref[2]

    # --------------- step-0 prologue: projection, normalization, fd, init ------------
    @pl.when(step == 0)
    def _prologue():
        img = img_ref[...].astype(F32)
        txt = txt_ref[...].astype(F32)
        ti = timg_ref[...].astype(F32)
        tt = ttxt_ref[...].astype(F32)

        # logit_scale folded into the image side -> lpi / lpt leave the MXU scaled
        nimg0s_sc[...] = (_l2norm(img) * logit_scale).astype(BF16)
        ntxt0_sc[...] = _l2norm(txt).astype(BF16)

        # visual_proj / text_proj (weights arrive pre-transposed as (in, out))
        pimg = _nn(img.astype(BF16), wvt_ref[...].astype(BF16)) + bv_ref[...].astype(F32)
        ptxt = _nn(txt.astype(BF16), wtt_ref[...].astype(BF16)) + bt_ref[...].astype(F32)
        nimg = _l2norm(pimg)
        ntxt = _l2norm(ptxt)
        nimg_sc[...] = nimg.astype(BF16)
        ntxt_sc[...] = ntxt.astype(BF16)
        timg_sc[...] = ti.astype(BF16)
        ttxt_sc[...] = tt.astype(BF16)

        # fd (feature distillation), once, in f32 while nimg/ntxt are still f32
        fd_ref[...] = (_fsum((nimg - ti) ** 2) + _fsum((ntxt - tt) ** 2)) * (1.0 / (B * T))

        dk_txt_sc[...] = jnp.zeros_like(dk_txt_sc)
        dk_img_sc[...] = jnp.zeros_like(dk_img_sc)
        task_ref[...] = jnp.zeros_like(task_ref)
        icl_ref[...] = jnp.zeros_like(icl_ref)
        ckd_ref[...] = jnp.zeros_like(ckd_ref)
        xkd_ref[...] = jnp.zeros_like(xkd_ref)
        gd_ref[...] = jnp.zeros_like(gd_ref)

    # ------------------------------ per-row-tile body ---------------------------------
    r0 = pl.multiple_of(step * Tq, Tq)
    rows = pl.ds(r0, Tq)

    q_i0 = nimg0s_sc[rows, :]          # (Tq, S) bf16 (carries logit_scale)
    q_t0 = ntxt0_sc[rows, :]
    q_i = nimg_sc[rows, :]             # (Tq, T) bf16
    q_t = ntxt_sc[rows, :]
    q_ti = timg_sc[rows, :]
    q_tt = ttxt_sc[rows, :]

    row_ids = jax.lax.broadcasted_iota(jnp.int32, (Tq, B), 0) + r0
    col_ids = jax.lax.broadcasted_iota(jnp.int32, (Tq, B), 1)
    diag = row_ids == col_ids          # labels = arange(B)

    def diag_col(z):                   # (Tq, 1): z[i, label_i]
        return jnp.sum(jnp.where(diag, z, 0.0), axis=1, keepdims=True)

    def row_stats(z):                  # one exp pass per logits matrix
        m = jnp.max(z, axis=1, keepdims=True)
        e = jnp.exp(z - m)
        s = jnp.sum(e, axis=1, keepdims=True)
        return e, s, m + jnp.log(s)

    # -------- per-tile logits rows (bf16 MXU operands, f32 accumulation) --------------
    lpi = _nt(q_i0, ntxt0_sc[...])     # logits_per_image rows (scale already folded)
    lpt = _nt(q_t0, nimg0s_sc[...])    # logits_per_text rows
    gt = _nt(q_ti, ttxt_sc[...])       # raw teacher Gram rows (image side)
    gtt = _nt(q_tt, timg_sc[...])      # raw teacher Gram rows (text side)

    # cross logits: fold cross_logit_scale into the smaller (Tq, T) query tile
    c_i2t = _nt((q_i.astype(F32) * cross_logit_scale).astype(BF16), ttxt_sc[...])
    c_t2i = _nt((q_t.astype(F32) * cross_logit_scale).astype(BF16), timg_sc[...])

    # student grad logits: fold 1/tau_s into the query tile
    inv_tau_s = 1.0 / logit_scale
    zs_gi = _nt((q_i.astype(F32) * inv_tau_s).astype(BF16), ntxt_sc[...])
    zs_gt = _nt((q_t.astype(F32) * inv_tau_s).astype(BF16), nimg_sc[...])

    # teacher Gram used with two scales -> scale the (Tq, B) tile twice
    inv_tau_t = 1.0 / t_logit_scale
    t_lpi = gt * t_logit_scale
    t_lpt = gtt * t_logit_scale
    zt_gi = gt * inv_tau_t
    zt_gt = gtt * inv_tau_t

    # ---------------- cross-entropy terms (task / icl) --------------------------------
    _, _, lse_lpi = row_stats(lpi)
    _, _, lse_lpt = row_stats(lpt)
    _, _, lse_ci = row_stats(c_i2t)
    _, _, lse_ct = row_stats(c_t2i)

    task_ref[...] += (_csum(lse_lpi - diag_col(lpi))
                      + _csum(lse_lpt - diag_col(lpt))) * (0.5 / B)
    icl_ref[...] += (_csum(lse_ci - diag_col(c_i2t))
                     + _csum(lse_ct - diag_col(c_t2i))) * (0.5 / B)

    # ------------- DistillKL terms (ckd / xkd) share teacher softmax stats ------------
    e_ti, s_ti, lse_ti = row_stats(t_lpi)
    e_tt, s_tt, lse_tt = row_stats(t_lpt)
    p_ti = e_ti * (1.0 / s_ti)         # exact reciprocal: only a (Tq,1) divide
    p_tt = e_tt * (1.0 / s_tt)

    ckd_ref[...] += (_csum(jnp.sum(p_ti * (t_lpi - lpi), axis=1, keepdims=True)
                           - lse_ti + lse_lpi)
                     + _csum(jnp.sum(p_tt * (t_lpt - lpt), axis=1, keepdims=True)
                             - lse_tt + lse_lpt)) * (0.5 / B)
    xkd_ref[...] += (_csum(jnp.sum(p_ti * (t_lpi - c_i2t), axis=1, keepdims=True)
                           - lse_ti + lse_ci)
                     + _csum(jnp.sum(p_tt * (t_lpt - c_t2i), axis=1, keepdims=True)
                             - lse_tt + lse_ct)) * (0.5 / B)

    # ------------------------- gradient distillation ----------------------------------
    inv_sB = 1.0 / (logit_scale * B)
    inv_tB = 1.0 / (t_logit_scale * B)

    def d_scaled(z, inv):              # ((softmax(z) - onehot) * inv) in bf16
        m = jnp.max(z, axis=1, keepdims=True)
        e = jnp.exp(z - m)
        s = jnp.sum(e, axis=1, keepdims=True)
        p = e * (pl.reciprocal(s, approx=True) * inv)   # 1/(tau*B) folded in
        return jnp.where(diag, p - inv, p).astype(BF16)

    d_si = d_scaled(zs_gi, inv_sB)     # student, image rows  (p=nimg, k=ntxt)
    d_st = d_scaled(zs_gt, inv_sB)     # student, text rows   (p=ntxt, k=nimg)
    d_ti = d_scaled(zt_gi, inv_tB)     # teacher, image rows
    d_tt = d_scaled(zt_gt, inv_tB)     # teacher, text rows

    # grad_p MSE contributions are row-local
    gp_i = _nn(d_si, ntxt_sc[...]) - _nn(d_ti, ttxt_sc[...])
    gp_t = _nn(d_st, nimg_sc[...]) - _nn(d_tt, timg_sc[...])
    gd_ref[...] += (_fsum(gp_i ** 2) + _fsum(gp_t ** 2)) * (1.0 / (B * T))

    # grad_k is a column accumulation over row tiles -> (B,T) f32 accumulators
    dk_txt_sc[...] += _tn(d_si, q_i) - _tn(d_ti, q_ti)
    dk_img_sc[...] += _tn(d_st, q_t) - _tn(d_tt, q_tt)

    @pl.when(step == nsteps - 1)
    def _epilogue():
        gd_ref[...] += (_fsum(dk_txt_sc[...] ** 2)
                        + _fsum(dk_img_sc[...] ** 2)) * (1.0 / (B * T))


# ----------------------------------- wrapper ----------------------------------------
def kdclip_loss_pallas(image_features, text_features, logit_scale,
                       t_image_features, t_text_features, t_logit_scale,
                       wv, bv, wt, bt, cross_logit_scale, alphas,
                       *, block_rows=256, vmem_limit_bytes=None):
    B, S = image_features.shape
    T = t_image_features.shape[1]

    # row tile: multiple of 16 (bf16 sublane packing) that divides B, else whole batch
    tq = block_rows if (B % block_rows == 0 and block_rows % 16 == 0) else B
    num_tiles = B // tq

    scalars = jnp.asarray([logit_scale, t_logit_scale, cross_logit_scale],
                          dtype=jnp.float32)
    wv_t = jnp.transpose(wv)           # (S, T): pre-transposed -> kernel does x @ W
    wt_t = jnp.transpose(wt)
    bv2 = jnp.reshape(bv, (1, T))
    bt2 = jnp.reshape(bt, (1, T))

    def resident(shape):
        n = len(shape)
        return pl.BlockSpec(shape, lambda i, _n=n: (0,) * _n)

    out_block = pl.BlockSpec((1, 1), lambda i: (0, 0))
    one = jax.ShapeDtypeStruct((1, 1), jnp.float32)

    # explicit VMEM budget (review: don't rely on the scoped default)
    itm = image_features.dtype.itemsize
    resid_bytes = (2 * B * S + 2 * B * T) * itm + 2 * S * T * wv.dtype.itemsize + 2 * T * 4
    scratch_bytes = (2 * B * S + 4 * B * T) * 2 + 2 * B * T * 4
    tile_bytes = 14 * tq * B * 4
    if vmem_limit_bytes is None:
        vmem_limit_bytes = int(min(96 << 20,
                                   max(32 << 20,
                                       resid_bytes + scratch_bytes + 3 * tile_bytes)))

    flops = int(2 * B * B * (2 * S + 14 * T) + 2 * 2 * B * S * T)
    transcendentals = int(10 * B * B)
    bytes_accessed = int(4 * (2 * B * S + 2 * B * T + 2 * S * T + 2 * T) + 6 * 4)

    kernel = functools.partial(_kdclip_kernel, block_rows=tq)

    outs = pl.pallas_call(
        kernel,
        grid=(num_tiles,),
        in_specs=[
            pl.BlockSpec(memory_space=pltpu.MemorySpace.SMEM),   # scalars
            resident((B, S)), resident((B, S)),                  # student features
            resident((B, T)), resident((B, T)),                  # teacher features
            resident((S, T)), resident((1, T)),                  # visual_proj W^T, b
            resident((S, T)), resident((1, T)),                  # text_proj   W^T, b
        ],
        out_specs=(out_block,) * 6,
        out_shape=(one,) * 6,
        scratch_shapes=[
            pltpu.VMEM((B, S), jnp.bfloat16),   # logit_scale * normalize(img)
            pltpu.VMEM((B, S), jnp.bfloat16),   # normalize(txt)
            pltpu.VMEM((B, T), jnp.bfloat16),   # normalize(visual_proj(img))
            pltpu.VMEM((B, T), jnp.bfloat16),   # normalize(text_proj(txt))
            pltpu.VMEM((B, T), jnp.bfloat16),   # teacher image features (bf16)
            pltpu.VMEM((B, T), jnp.bfloat16),   # teacher text features (bf16)
            pltpu.VMEM((B, T), jnp.float32),    # grad_k diff accumulator (txt side)
            pltpu.VMEM((B, T), jnp.float32),    # grad_k diff accumulator (img side)
        ],
        compiler_params=pltpu.CompilerParams(
            dimension_semantics=("arbitrary",),
            vmem_limit_bytes=vmem_limit_bytes),
        cost_estimate=pl.CostEstimate(flops=flops, transcendentals=transcendentals,
                                      bytes_accessed=bytes_accessed),
    )(scalars, image_features, text_features, t_image_features, t_text_features,
      wv_t, bv2, wt_t, bt2)

    task, icl, ckd, xkd, fd, gd = [o[0, 0] for o in outs]
    # TODO(synk): afd branch needs s_embed_dim == t_embed_dim fusion proj; with
    #             alpha_afd_loss == 0.0 the module returns 0.0 for it.
    return {"task": task,
            "ckd": alphas["ckd"] * ckd,
            "icl": alphas["icl"] * icl,
            "cross_kd": alphas["cross_kd"] * xkd,
            "fd": alphas["fd"] * fd,
            "gd": alphas["gd"] * gd,
            "afd": jnp.float32(0.0)}


# ------------------------- pure-JAX reference (PyTorch semantics) --------------------
def kdclip_loss_reference(image_features, text_features, logit_scale,
                          t_image_features, t_text_features, t_logit_scale,
                          wv, bv, wt, bt, cross_logit_scale, alphas):
    def normalize(x):
        return x / jnp.maximum(jnp.linalg.norm(x, axis=1, keepdims=True), 1e-12)

    B = image_features.shape[0]
    labels = jnp.arange(B)

    t_lpi = t_logit_scale * t_image_features @ t_text_features.T
    t_lpt = t_lpi.T

    nimg0, ntxt0 = normalize(image_features), normalize(text_features)
    lpi = logit_scale * nimg0 @ ntxt0.T
    lpt = lpi.T

    pimg = image_features @ wv.T + bv
    ptxt = text_features @ wt.T + bt
    nimg, ntxt = normalize(pimg), normalize(ptxt)

    fd = jnp.mean((nimg - t_image_features) ** 2) + jnp.mean((ntxt - t_text_features) ** 2)

    c_i2t = cross_logit_scale * nimg @ t_text_features.T
    c_t2i = cross_logit_scale * ntxt @ t_image_features.T

    def ce(z):
        return jnp.mean(jax.nn.logsumexp(z, axis=1) - z[jnp.arange(B), labels])

    def kl(ys, yt):
        ps = jax.nn.log_softmax(ys, axis=1)
        pt = jax.nn.softmax(yt, axis=1)
        return jnp.sum(pt * (jnp.log(pt) - ps)) / B

    def get_grad(p, k, tau):
        logits = p @ k.T / tau
        tgt = jax.nn.one_hot(labels, logits.shape[1], dtype=jnp.float32)
        prob = jax.nn.softmax(logits, axis=1)
        grad_p = (prob - tgt) @ k / tau / B
        grad_k = (prob - tgt).T @ p / tau / B
        return grad_p, grad_k

    task = (ce(lpi) + ce(lpt)) / 2
    icl = (ce(c_i2t) + ce(c_t2i)) / 2
    ckd = (kl(lpi, t_lpi) + kl(lpt, t_lpt)) / 2
    xkd = (kl(c_i2t, t_lpi) + kl(c_t2i, t_lpt)) / 2

    tgpi, tgkt = get_grad(t_image_features, t_text_features, t_logit_scale)
    tgpt, tgki = get_grad(t_text_features, t_image_features, t_logit_scale)
    sgpi, sgkt = get_grad(nimg, ntxt, logit_scale)
    sgpt, sgki = get_grad(ntxt, nimg, logit_scale)
    gd = (jnp.mean((sgpi - tgpi) ** 2) + jnp.mean((sgkt - tgkt) ** 2)
          + jnp.mean((sgpt - tgpt) ** 2) + jnp.mean((sgki - tgki) ** 2))

    return {"task": task,
            "ckd": alphas["ckd"] * ckd,
            "icl": alphas["icl"] * icl,
            "cross_kd": alphas["cross_kd"] * xkd,
            "fd": alphas["fd"] * fd,
            "gd": alphas["gd"] * gd,
            "afd": jnp.float32(0.0)}


# ------------------------------------- main ------------------------------------------
if __name__ == "__main__":
    B, S, T = 32, 32, 64  # batch, s_embed_dim, t_embed_dim
    ROW_TILE = 16         # -> 2 grid steps: exercises the tiled accumulation path

    key = jax.random.PRNGKey(0)
    ks = jax.random.split(key, 8)
    img = jax.random.normal(ks[0], (B, S), jnp.float32)
    txt = jax.random.normal(ks[1], (B, S), jnp.float32)
    timg = jax.random.normal(ks[2], (B, T), jnp.float32)
    timg = timg / jnp.linalg.norm(timg, axis=1, keepdims=True)  # teacher embeds unit-norm
    ttxt = jax.random.normal(ks[3], (B, T), jnp.float32)
    ttxt = ttxt / jnp.linalg.norm(ttxt, axis=1, keepdims=True)

    # PyTorch Linear convention: weight (out, in), bias (out,)
    wv = 0.05 * jax.random.normal(ks[4], (T, S), jnp.float32)
    bv = 0.05 * jax.random.normal(ks[5], (T,), jnp.float32)
    wt = 0.05 * jax.random.normal(ks[6], (T, S), jnp.float32)
    bt = 0.05 * jax.random.normal(ks[7], (T,), jnp.float32)

    logit_scale = float(1.0 / 0.07)                # exp(log(1/0.07)) as passed by trainer
    t_logit_scale = float(1.0 / 0.07)
    cross_logit_scale = float(np.log(1.0 / 0.07))  # nn.Parameter used directly (not exp'd)
    alphas = dict(ckd=1.0, icl=1.0, cross_kd=1.0, fd=1.0, gd=1.0)

    out = kdclip_loss_pallas(img, txt, logit_scale, timg, ttxt, t_logit_scale,
                             wv, bv, wt, bt, cross_logit_scale, alphas,
                             block_rows=ROW_TILE)
    out = jax.tree_util.tree_map(jax.block_until_ready, out)

    ref = kdclip_loss_reference(img, txt, logit_scale, timg, ttxt, t_logit_scale,
                                wv, bv, wt, bt, cross_logit_scale, alphas)

    for name in out:
        np.testing.assert_allclose(np.asarray(out[name]), np.asarray(ref[name]),
                                   rtol=5e-2, atol=2e-4)
    print("KERNEL_OK")
</pallas_src>

<mosaic_0001>
module attributes {stable_mosaic.version = 11 : i64} {
  func.func @_kdclip_kernel(%arg0: i32, %arg1: memref<3xf32, #tpu.memory_space<smem>>, %arg2: memref<32x32xf32, #tpu.memory_space<vmem>>, %arg3: memref<32x32xf32, #tpu.memory_space<vmem>>, %arg4: memref<32x64xf32, #tpu.memory_space<vmem>>, %arg5: memref<32x64xf32, #tpu.memory_space<vmem>>, %arg6: memref<32x64xf32, #tpu.memory_space<vmem>>, %arg7: memref<1x64xf32, #tpu.memory_space<vmem>>, %arg8: memref<32x64xf32, #tpu.memory_space<vmem>>, %arg9: memref<1x64xf32, #tpu.memory_space<vmem>>, %arg10: memref<1x1xf32, #tpu.memory_space<vmem>>, %arg11: memref<1x1xf32, #tpu.memory_space<vmem>>, %arg12: memref<1x1xf32, #tpu.memory_space<vmem>>, %arg13: memref<1x1xf32, #tpu.memory_space<vmem>>, %arg14: memref<1x1xf32, #tpu.memory_space<vmem>>, %arg15: memref<1x1xf32, #tpu.memory_space<vmem>>, %arg16: memref<32x32xbf16, #tpu.memory_space<vmem>>, %arg17: memref<32x32xbf16, #tpu.memory_space<vmem>>, %arg18: memref<32x64xbf16, #tpu.memory_space<vmem>>, %arg19: memref<32x64xbf16, #tpu.memory_space<vmem>>, %arg20: memref<32x64xbf16, #tpu.memory_space<vmem>>, %arg21: memref<32x64xbf16, #tpu.memory_space<vmem>>, %arg22: memref<32x64xf32, #tpu.memory_space<vmem>>, %arg23: memref<32x64xf32, #tpu.memory_space<vmem>>) attributes {dimension_semantics = [#tpu.dimension_semantics<arbitrary>], iteration_bounds = array<i64: 2>, scalar_prefetch = 0 : i64, scratch_operands = 8 : i64, tpu.core_type = #tpu.core_type<tc>, window_params = [{transform_indices = @transform_0, window_bounds = array<i64: 3>}, {pipeline_mode = #tpu.pipeline_mode<synchronous>, transform_indices = @transform_1, window_bounds = array<i64: 32, 32>}, {pipeline_mode = #tpu.pipeline_mode<synchronous>, transform_indices = @transform_2, window_bounds = array<i64: 32, 32>}, {pipeline_mode = #tpu.pipeline_mode<synchronous>, transform_indices = @transform_3, window_bounds = array<i64: 32, 64>}, {pipeline_mode = #tpu.pipeline_mode<synchronous>, transform_indices = @transform_4, window_bounds = array<i64: 32, 64>}, {pipeline_mode = #tpu.pipeline_mode<synchronous>, transform_indices = @transform_5, window_bounds = array<i64: 32, 64>}, {pipeline_mode = #tpu.pipeline_mode<synchronous>, transform_indices = @transform_6, window_bounds = array<i64: 1, 64>}, {pipeline_mode = #tpu.pipeline_mode<synchronous>, transform_indices = @transform_7, window_bounds = array<i64: 32, 64>}, {pipeline_mode = #tpu.pipeline_mode<synchronous>, transform_indices = @transform_8, window_bounds = array<i64: 1, 64>}, {pipeline_mode = #tpu.pipeline_mode<synchronous>, transform_indices = @transform_9, window_bounds = array<i64: 1, 1>}, {pipeline_mode = #tpu.pipeline_mode<synchronous>, transform_indices = @transform_10, window_bounds = array<i64: 1, 1>}, {pipeline_mode = #tpu.pipeline_mode<synchronous>, transform_indices = @transform_11, window_bounds = array<i64: 1, 1>}, {pipeline_mode = #tpu.pipeline_mode<synchronous>, transform_indices = @transform_12, window_bounds = array<i64: 1, 1>}, {pipeline_mode = #tpu.pipeline_mode<synchronous>, transform_indices = @transform_13, window_bounds = array<i64: 1, 1>}, {pipeline_mode = #tpu.pipeline_mode<synchronous>, transform_indices = @transform_14, window_bounds = array<i64: 1, 1>}]} {
    %c0 = arith.constant 0 : index
    %0 = memref.load %arg1[%c0] : memref<3xf32, #tpu.memory_space<smem>>
    %c1 = arith.constant 1 : index
    %1 = memref.load %arg1[%c1] : memref<3xf32, #tpu.memory_space<smem>>
    %c2 = arith.constant 2 : index
    %2 = memref.load %arg1[%c2] : memref<3xf32, #tpu.memory_space<smem>>
    %c0_i32 = arith.constant 0 : i32
    %3 = arith.cmpi eq, %arg0, %c0_i32 : i32
    %4 = arith.extui %3 : i1 to i32
    %c0_i32_0 = arith.constant 0 : i32
    %5 = arith.cmpi ne, %4, %c0_i32_0 : i32
    scf.if %5 {
      %c0_132 = arith.constant 0 : index
      %c0_133 = arith.constant 0 : index
      %322 = vector.load %arg2[%c0_132, %c0_133] : memref<32x32xf32, #tpu.memory_space<vmem>>, vector<32x32xf32>
      %c0_134 = arith.constant 0 : index
      %c0_135 = arith.constant 0 : index
      %323 = vector.load %arg3[%c0_134, %c0_135] : memref<32x32xf32, #tpu.memory_space<vmem>>, vector<32x32xf32>
      %c0_136 = arith.constant 0 : index
      %c0_137 = arith.constant 0 : index
      %324 = vector.load %arg4[%c0_136, %c0_137] : memref<32x64xf32, #tpu.memory_space<vmem>>, vector<32x64xf32>
      %c0_138 = arith.constant 0 : index
      %c0_139 = arith.constant 0 : index
      %325 = vector.load %arg5[%c0_138, %c0_139] : memref<32x64xf32, #tpu.memory_space<vmem>>, vector<32x64xf32>
      %326 = arith.mulf %322, %322 : vector<32x32xf32>
      %cst_140 = arith.constant dense<0.000000e+00> : vector<32xf32>
      %327 = vector.multi_reduction <add>, %326, %cst_140 [1] : vector<32x32xf32> to vector<32xf32>
      %328 = vector.shape_cast %327 : vector<32xf32> to vector<32x1xf32>
      %cst_141 = arith.constant 1.000000e-24 : f32
      %329 = vector.broadcast %cst_141 : f32 to vector<32x1xf32>
      %330 = arith.maximumf %328, %329 : vector<32x1xf32>
      %331 = math.rsqrt %330 : vector<32x1xf32>
      %332 = vector.broadcast %331 : vector<32x1xf32> to vector<32x32xf32>
      %333 = arith.mulf %322, %332 : vector<32x32xf32>
      %334 = vector.broadcast %0 : f32 to vector<32x32xf32>
      %335 = arith.mulf %333, %334 : vector<32x32xf32>
      %336 = arith.truncf %335 : vector<32x32xf32> to vector<32x32xbf16>
      %c0_142 = arith.constant 0 : index
      %c0_143 = arith.constant 0 : index
      %337 = vector.load %arg16[%c0_142, %c0_143] : memref<32x32xbf16, #tpu.memory_space<vmem>>, vector<32x32xbf16>
      tpu.vector_store %arg16[%c0_142, %c0_143], %336 {strides = array<i32>} : memref<32x32xbf16, #tpu.memory_space<vmem>>, vector<32x32xbf16>,
      %338 = arith.mulf %323, %323 : vector<32x32xf32>
      %cst_144 = arith.constant dense<0.000000e+00> : vector<32xf32>
      %339 = vector.multi_reduction <add>, %338, %cst_144 [1] : vector<32x32xf32> to vector<32xf32>
      %340 = vector.shape_cast %339 : vector<32xf32> to vector<32x1xf32>
      %cst_145 = arith.constant 1.000000e-24 : f32
      %341 = vector.broadcast %cst_145 : f32 to vector<32x1xf32>
      %342 = arith.maximumf %340, %341 : vector<32x1xf32>
      %343 = math.rsqrt %342 : vector<32x1xf32>
      %344 = vector.broadcast %343 : vector<32x1xf32> to vector<32x32xf32>
      %345 = arith.mulf %323, %344 : vector<32x32xf32>
      %346 = arith.truncf %345 : vector<32x32xf32> to vector<32x32xbf16>
      %c0_146 = arith.constant 0 : index
      %c0_147 = arith.constant 0 : index
      %347 = vector.load %arg17[%c0_146, %c0_147] : memref<32x32xbf16, #tpu.memory_space<vmem>>, vector<32x32xbf16>
      tpu.vector_store %arg17[%c0_146, %c0_147], %346 {strides = array<i32>} : memref<32x32xbf16, #tpu.memory_space<vmem>>, vector<32x32xbf16>,
      %348 = arith.truncf %322 : vector<32x32xf32> to vector<32x32xbf16>
      %c0_148 = arith.constant 0 : index
      %c0_149 = arith.constant 0 : index
      %349 = vector.load %arg6[%c0_148, %c0_149] : memref<32x64xf32, #tpu.memory_space<vmem>>, vector<32x64xf32>
      %350 = arith.truncf %349 : vector<32x64xf32> to vector<32x64xbf16>
      %cst_150 = arith.constant dense<0.000000e+00> : vector<32x64xf32>
      %351 = tpu.matmul %348, %350, %cst_150 {dimension_numbers = #tpu.dot_dimension_numbers<[1], [0], [0], [1], [0, 0, 1, 1], [], []>} : vector<32x32xbf16>, vector<32x64xbf16>, vector<32x64xf32> -> vector<32x64xf32>
      %c0_151 = arith.constant 0 : index
      %c0_152 = arith.constant 0 : index
      %352 = vector.load %arg7[%c0_151, %c0_152] : memref<1x64xf32, #tpu.memory_space<vmem>>, vector<1x64xf32>
      %353 = vector.broadcast %352 : vector<1x64xf32> to vector<32x64xf32>
      %354 = arith.addf %351, %353 : vector<32x64xf32>
      %355 = arith.truncf %323 : vector<32x32xf32> to vector<32x32xbf16>
      %c0_153 = arith.constant 0 : index
      %c0_154 = arith.constant 0 : index
      %356 = vector.load %arg8[%c0_153, %c0_154] : memref<32x64xf32, #tpu.memory_space<vmem>>, vector<32x64xf32>
      %357 = arith.truncf %356 : vector<32x64xf32> to vector<32x64xbf16>
      %cst_155 = arith.constant dense<0.000000e+00> : vector<32x64xf32>
      %358 = tpu.matmul %355, %357, %cst_155 {dimension_numbers = #tpu.dot_dimension_numbers<[1], [0], [0], [1], [0, 0, 1, 1], [], []>} : vector<32x32xbf16>, vector<32x64xbf16>, vector<32x64xf32> -> vector<32x64xf32>
      %c0_156 = arith.constant 0 : index
      %c0_157 = arith.constant 0 : index
      %359 = vector.load %arg9[%c0_156, %c0_157] : memref<1x64xf32, #tpu.memory_space<vmem>>, vector<1x64xf32>
      %360 = vector.broadcast %359 : vector<1x64xf32> to vector<32x64xf32>
      %361 = arith.addf %358, %360 : vector<32x64xf32>
      %362 = arith.mulf %354, %354 : vector<32x64xf32>
      %cst_158 = arith.constant dense<0.000000e+00> : vector<32xf32>
      %363 = vector.multi_reduction <add>, %362, %cst_158 [1] : vector<32x64xf32> to vector<32xf32>
      %364 = vector.shape_cast %363 : vector<32xf32> to vector<32x1xf32>
      %cst_159 = arith.constant 1.000000e-24 : f32
      %365 = vector.broadcast %cst_159 : f32 to vector<32x1xf32>
      %366 = arith.maximumf %364, %365 : vector<32x1xf32>
      %367 = math.rsqrt %366 : vector<32x1xf32>
      %368 = vector.broadcast %367 : vector<32x1xf32> to vector<32x64xf32>
      %369 = arith.mulf %354, %368 : vector<32x64xf32>
      %370 = arith.mulf %361, %361 : vector<32x64xf32>
      %cst_160 = arith.constant dense<0.000000e+00> : vector<32xf32>
      %371 = vector.multi_reduction <add>, %370, %cst_160 [1] : vector<32x64xf32> to vector<32xf32>
      %372 = vector.shape_cast %371 : vector<32xf32> to vector<32x1xf32>
      %cst_161 = arith.constant 1.000000e-24 : f32
      %373 = vector.broadcast %cst_161 : f32 to vector<32x1xf32>
      %374 = arith.maximumf %372, %373 : vector<32x1xf32>
      %375 = math.rsqrt %374 : vector<32x1xf32>
      %376 = vector.broadcast %375 : vector<32x1xf32> to vector<32x64xf32>
      %377 = arith.mulf %361, %376 : vector<32x64xf32>
      %378 = arith.truncf %369 : vector<32x64xf32> to vector<32x64xbf16>
      %c0_162 = arith.constant 0 : index
      %c0_163 = arith.constant 0 : index
      %379 = vector.load %arg18[%c0_162, %c0_163] : memref<32x64xbf16, #tpu.memory_space<vmem>>, vector<32x64xbf16>
      tpu.vector_store %arg18[%c0_162, %c0_163], %378 {strides = array<i32>} : memref<32x64xbf16, #tpu.memory_space<vmem>>, vector<32x64xbf16>,
      %380 = arith.truncf %377 : vector<32x64xf32> to vector<32x64xbf16>
      %c0_164 = arith.constant 0 : index
      %c0_165 = arith.constant 0 : index
      %381 = vector.load %arg19[%c0_164, %c0_165] : memref<32x64xbf16, #tpu.memory_space<vmem>>, vector<32x64xbf16>
      tpu.vector_store %arg19[%c0_164, %c0_165], %380 {strides = array<i32>} : memref<32x64xbf16, #tpu.memory_space<vmem>>, vector<32x64xbf16>,
      %382 = arith.truncf %324 : vector<32x64xf32> to vector<32x64xbf16>
      %c0_166 = arith.constant 0 : index
      %c0_167 = arith.constant 0 : index
      %383 = vector.load %arg20[%c0_166, %c0_167] : memref<32x64xbf16, #tpu.memory_space<vmem>>, vector<32x64xbf16>
      tpu.vector_store %arg20[%c0_166, %c0_167], %382 {strides = array<i32>} : memref<32x64xbf16, #tpu.memory_space<vmem>>, vector<32x64xbf16>,
      %384 = arith.truncf %325 : vector<32x64xf32> to vector<32x64xbf16>
      %c0_168 = arith.constant 0 : index
      %c0_169 = arith.constant 0 : index
      %385 = vector.load %arg21[%c0_168, %c0_169] : memref<32x64xbf16, #tpu.memory_space<vmem>>, vector<32x64xbf16>
      tpu.vector_store %arg21[%c0_168, %c0_169], %384 {strides = array<i32>} : memref<32x64xbf16, #tpu.memory_space<vmem>>, vector<32x64xbf16>,
      %386 = arith.subf %369, %324 : vector<32x64xf32>
      %387 = arith.mulf %386, %386 : vector<32x64xf32>
      %cst_170 = arith.constant dense<0.000000e+00> : vector<32xf32>
      %388 = vector.multi_reduction <add>, %387, %cst_170 [1] : vector<32x64xf32> to vector<32xf32>
      %389 = vector.shape_cast %388 : vector<32xf32> to vector<32x1xf32>
      %cst_171 = arith.constant dense<0.000000e+00> : vector<1xf32>
      %390 = vector.multi_reduction <add>, %389, %cst_171 [0] : vector<32x1xf32> to vector<1xf32>
      %391 = vector.shape_cast %390 : vector<1xf32> to vector<1x1xf32>
      %392 = arith.subf %377, %325 : vector<32x64xf32>
      %393 = arith.mulf %392, %392 : vector<32x64xf32>
      %cst_172 = arith.constant dense<0.000000e+00> : vector<32xf32>
      %394 = vector.multi_reduction <add>, %393, %cst_172 [1] : vector<32x64xf32> to vector<32xf32>
      %395 = vector.shape_cast %394 : vector<32xf32> to vector<32x1xf32>
      %cst_173 = arith.constant dense<0.000000e+00> : vector<1xf32>
      %396 = vector.multi_reduction <add>, %395, %cst_173 [0] : vector<32x1xf32> to vector<1xf32>
      %397 = vector.shape_cast %396 : vector<1xf32> to vector<1x1xf32>
      %398 = arith.addf %391, %397 : vector<1x1xf32>
      %cst_174 = arith.constant 4.8828125E-4 : f32
      %399 = vector.broadcast %cst_174 : f32 to vector<1x1xf32>
      %400 = arith.mulf %398, %399 : vector<1x1xf32>
      %c0_175 = arith.constant 0 : index
      %c0_176 = arith.constant 0 : index
      %401 = vector.load %arg14[%c0_175, %c0_176] : memref<1x1xf32, #tpu.memory_space<vmem>>, vector<1x1xf32>
      tpu.vector_store %arg14[%c0_175, %c0_176], %400 {strides = array<i32>} : memref<1x1xf32, #tpu.memory_space<vmem>>, vector<1x1xf32>,
      %cst_177 = arith.constant 0.000000e+00 : f32
      %402 = vector.broadcast %cst_177 : f32 to vector<32x64xf32>
      %c0_178 = arith.constant 0 : index
      %c0_179 = arith.constant 0 : index
      %403 = vector.load %arg22[%c0_178, %c0_179] : memref<32x64xf32, #tpu.memory_space<vmem>>, vector<32x64xf32>
      tpu.vector_store %arg22[%c0_178, %c0_179], %402 {strides = array<i32>} : memref<32x64xf32, #tpu.memory_space<vmem>>, vector<32x64xf32>,
      %cst_180 = arith.constant 0.000000e+00 : f32
      %404 = vector.broadcast %cst_180 : f32 to vector<32x64xf32>
      %c0_181 = arith.constant 0 : index
      %c0_182 = arith.constant 0 : index
      %405 = vector.load %arg23[%c0_181, %c0_182] : memref<32x64xf32, #tpu.memory_space<vmem>>, vector<32x64xf32>
      tpu.vector_store %arg23[%c0_181, %c0_182], %404 {strides = array<i32>} : memref<32x64xf32, #tpu.memory_space<vmem>>, vector<32x64xf32>,
      %cst_183 = arith.constant 0.000000e+00 : f32
      %406 = vector.broadcast %cst_183 : f32 to vector<1x1xf32>
      %c0_184 = arith.constant 0 : index
      %c0_185 = arith.constant 0 : index
      %407 = vector.load %arg10[%c0_184, %c0_185] : memref<1x1xf32, #tpu.memory_space<vmem>>, vector<1x1xf32>
      tpu.vector_store %arg10[%c0_184, %c0_185], %406 {strides = array<i32>} : memref<1x1xf32, #tpu.memory_space<vmem>>, vector<1x1xf32>,
      %cst_186 = arith.constant 0.000000e+00 : f32
      %408 = vector.broadcast %cst_186 : f32 to vector<1x1xf32>
      %c0_187 = arith.constant 0 : index
      %c0_188 = arith.constant 0 : index
      %409 = vector.load %arg11[%c0_187, %c0_188] : memref<1x1xf32, #tpu.memory_space<vmem>>, vector<1x1xf32>
      tpu.vector_store %arg11[%c0_187, %c0_188], %408 {strides = array<i32>} : memref<1x1xf32, #tpu.memory_space<vmem>>, vector<1x1xf32>,
      %cst_189 = arith.constant 0.000000e+00 : f32
      %410 = vector.broadcast %cst_189 : f32 to vector<1x1xf32>
      %c0_190 = arith.constant 0 : index
      %c0_191 = arith.constant 0 : index
      %411 = vector.load %arg12[%c0_190, %c0_191] : memref<1x1xf32, #tpu.memory_space<vmem>>, vector<1x1xf32>
      tpu.vector_store %arg12[%c0_190, %c0_191], %410 {strides = array<i32>} : memref<1x1xf32, #tpu.memory_space<vmem>>, vector<1x1xf32>,
      %cst_192 = arith.constant 0.000000e+00 : f32
      %412 = vector.broadcast %cst_192 : f32 to vector<1x1xf32>
      %c0_193 = arith.constant 0 : index
      %c0_194 = arith.constant 0 : index
      %413 = vector.load %arg13[%c0_193, %c0_194] : memref<1x1xf32, #tpu.memory_space<vmem>>, vector<1x1xf32>
      tpu.vector_store %arg13[%c0_193, %c0_194], %412 {strides = array<i32>} : memref<1x1xf32, #tpu.memory_space<vmem>>, vector<1x1xf32>,
      %cst_195 = arith.constant 0.000000e+00 : f32
      %414 = vector.broadcast %cst_195 : f32 to vector<1x1xf32>
      %c0_196 = arith.constant 0 : index
      %c0_197 = arith.constant 0 : index
      %415 = vector.load %arg15[%c0_196, %c0_197] : memref<1x1xf32, #tpu.memory_space<vmem>>, vector<1x1xf32>
      tpu.vector_store %arg15[%c0_196, %c0_197], %414 {strides = array<i32>} : memref<1x1xf32, #tpu.memory_space<vmem>>, vector<1x1xf32>,
    } else {
    }
    %c16_i32 = arith.constant 16 : i32
    %6 = arith.muli %arg0, %c16_i32 : i32
    %7 = tpu.assume_multiple %6, 16 : i32
    %8 = arith.index_cast %7 : i32 to index
    %c0_1 = arith.constant 0 : index
    %9 = vector.load %arg16[%8, %c0_1] : memref<32x32xbf16, #tpu.memory_space<vmem>>, vector<16x32xbf16>
    %10 = arith.index_cast %7 : i32 to index
    %c0_2 = arith.constant 0 : index
    %11 = vector.load %arg17[%10, %c0_2] : memref<32x32xbf16, #tpu.memory_space<vmem>>, vector<16x32xbf16>
    %12 = arith.index_cast %7 : i32 to index
    %c0_3 = arith.constant 0 : index
    %13 = vector.load %arg18[%12, %c0_3] : memref<32x64xbf16, #tpu.memory_space<vmem>>, vector<16x64xbf16>
    %14 = arith.index_cast %7 : i32 to index
    %c0_4 = arith.constant 0 : index
    %15 = vector.load %arg19[%14, %c0_4] : memref<32x64xbf16, #tpu.memory_space<vmem>>, vector<16x64xbf16>
    %16 = arith.index_cast %7 : i32 to index
    %c0_5 = arith.constant 0 : index
    %17 = vector.load %arg20[%16, %c0_5] : memref<32x64xbf16, #tpu.memory_space<vmem>>, vector<16x64xbf16>
    %18 = arith.index_cast %7 : i32 to index
    %c0_6 = arith.constant 0 : index
    %19 = vector.load %arg21[%18, %c0_6] : memref<32x64xbf16, #tpu.memory_space<vmem>>, vector<16x64xbf16>
    %20 = tpu.iota {dimensions = array<i32: 0>} : vector<16x32xi32>
    %21 = vector.broadcast %7 : i32 to vector<16x32xi32>
    %22 = arith.addi %20, %21 : vector<16x32xi32>
    %23 = tpu.iota {dimensions = array<i32: 1>} : vector<16x32xi32>
    %24 = arith.cmpi eq, %22, %23 : vector<16x32xi32>
    %c0_7 = arith.constant 0 : index
    %c0_8 = arith.constant 0 : index
    %25 = vector.load %arg17[%c0_7, %c0_8] : memref<32x32xbf16, #tpu.memory_space<vmem>>, vector<32x32xbf16>
    %cst = arith.constant dense<0.000000e+00> : vector<16x32xf32>
    %26 = tpu.matmul %9, %25, %cst {dimension_numbers = #tpu.dot_dimension_numbers<[1], [1], [0], [0], [0, 0, 1, 0], [], []>} : vector<16x32xbf16>, vector<32x32xbf16>, vector<16x32xf32> -> vector<16x32xf32>
    %c0_9 = arith.constant 0 : index
    %c0_10 = arith.constant 0 : index
    %27 = vector.load %arg16[%c0_9, %c0_10] : memref<32x32xbf16, #tpu.memory_space<vmem>>, vector<32x32xbf16>
    %cst_11 = arith.constant dense<0.000000e+00> : vector<16x32xf32>
    %28 = tpu.matmul %11, %27, %cst_11 {dimension_numbers = #tpu.dot_dimension_numbers<[1], [1], [0], [0], [0, 0, 1, 0], [], []>} : vector<16x32xbf16>, vector<32x32xbf16>, vector<16x32xf32> -> vector<16x32xf32>
    %c0_12 = arith.constant 0 : index
    %c0_13 = arith.constant 0 : index
    %29 = vector.load %arg21[%c0_12, %c0_13] : memref<32x64xbf16, #tpu.memory_space<vmem>>, vector<32x64xbf16>
    %cst_14 = arith.constant dense<0.000000e+00> : vector<16x32xf32>
    %30 = tpu.matmul %17, %29, %cst_14 {dimension_numbers = #tpu.dot_dimension_numbers<[1], [1], [0], [0], [0, 0, 1, 0], [], []>} : vector<16x64xbf16>, vector<32x64xbf16>, vector<16x32xf32> -> vector<16x32xf32>
    %c0_15 = arith.constant 0 : index
    %c0_16 = arith.constant 0 : index
    %31 = vector.load %arg20[%c0_15, %c0_16] : memref<32x64xbf16, #tpu.memory_space<vmem>>, vector<32x64xbf16>
    %cst_17 = arith.constant dense<0.000000e+00> : vector<16x32xf32>
    %32 = tpu.matmul %19, %31, %cst_17 {dimension_numbers = #tpu.dot_dimension_numbers<[1], [1], [0], [0], [0, 0, 1, 0], [], []>} : vector<16x64xbf16>, vector<32x64xbf16>, vector<16x32xf32> -> vector<16x32xf32>
    %33 = arith.extf %13 : vector<16x64xbf16> to vector<16x64xf32>
    %34 = vector.broadcast %2 : f32 to vector<16x64xf32>
    %35 = arith.mulf %33, %34 : vector<16x64xf32>
    %36 = arith.truncf %35 : vector<16x64xf32> to vector<16x64xbf16>
    %c0_18 = arith.constant 0 : index
    %c0_19 = arith.constant 0 : index
    %37 = vector.load %arg21[%c0_18, %c0_19] : memref<32x64xbf16, #tpu.memory_space<vmem>>, vector<32x64xbf16>
    %cst_20 = arith.constant dense<0.000000e+00> : vector<16x32xf32>
    %38 = tpu.matmul %36, %37, %cst_20 {dimension_numbers = #tpu.dot_dimension_numbers<[1], [1], [0], [0], [0, 0, 1, 0], [], []>} : vector<16x64xbf16>, vector<32x64xbf16>, vector<16x32xf32> -> vector<16x32xf32>
    %39 = arith.extf %15 : vector<16x64xbf16> to vector<16x64xf32>
    %40 = vector.broadcast %2 : f32 to vector<16x64xf32>
    %41 = arith.mulf %39, %40 : vector<16x64xf32>
    %42 = arith.truncf %41 : vector<16x64xf32> to vector<16x64xbf16>
    %c0_21 = arith.constant 0 : index
    %c0_22 = arith.constant 0 : index
    %43 = vector.load %arg20[%c0_21, %c0_22] : memref<32x64xbf16, #tpu.memory_space<vmem>>, vector<32x64xbf16>
    %cst_23 = arith.constant dense<0.000000e+00> : vector<16x32xf32>
    %44 = tpu.matmul %42, %43, %cst_23 {dimension_numbers = #tpu.dot_dimension_numbers<[1], [1], [0], [0], [0, 0, 1, 0], [], []>} : vector<16x64xbf16>, vector<32x64xbf16>, vector<16x32xf32> -> vector<16x32xf32>
    %cst_24 = arith.constant 1.000000e+00 : f32
    %45 = arith.divf %cst_24, %0 : f32
    %46 = arith.extf %13 : vector<16x64xbf16> to vector<16x64xf32>
    %47 = vector.broadcast %45 : f32 to vector<16x64xf32>
    %48 = arith.mulf %46, %47 : vector<16x64xf32>
    %49 = arith.truncf %48 : vector<16x64xf32> to vector<16x64xbf16>
    %c0_25 = arith.constant 0 : index
    %c0_26 = arith.constant 0 : index
    %50 = vector.load %arg19[%c0_25, %c0_26] : memref<32x64xbf16, #tpu.memory_space<vmem>>, vector<32x64xbf16>
    %cst_27 = arith.constant dense<0.000000e+00> : vector<16x32xf32>
    %51 = tpu.matmul %49, %50, %cst_27 {dimension_numbers = #tpu.dot_dimension_numbers<[1], [1], [0], [0], [0, 0, 1, 0], [], []>} : vector<16x64xbf16>, vector<32x64xbf16>, vector<16x32xf32> -> vector<16x32xf32>
    %52 = arith.extf %15 : vector<16x64xbf16> to vector<16x64xf32>
    %53 = vector.broadcast %45 : f32 to vector<16x64xf32>
    %54 = arith.mulf %52, %53 : vector<16x64xf32>
    %55 = arith.truncf %54 : vector<16x64xf32> to vector<16x64xbf16>
    %c0_28 = arith.constant 0 : index
    %c0_29 = arith.constant 0 : index
    %56 = vector.load %arg18[%c0_28, %c0_29] : memref<32x64xbf16, #tpu.memory_space<vmem>>, vector<32x64xbf16>
    %cst_30 = arith.constant dense<0.000000e+00> : vector<16x32xf32>
    %57 = tpu.matmul %55, %56, %cst_30 {dimension_numbers = #tpu.dot_dimension_numbers<[1], [1], [0], [0], [0, 0, 1, 0], [], []>} : vector<16x64xbf16>, vector<32x64xbf16>, vector<16x32xf32> -> vector<16x32xf32>
    %cst_31 = arith.constant 1.000000e+00 : f32
    %58 = arith.divf %cst_31, %1 : f32
    %59 = vector.broadcast %1 : f32 to vector<16x32xf32>
    %60 = arith.mulf %30, %59 : vector<16x32xf32>
    %61 = vector.broadcast %1 : f32 to vector<16x32xf32>
    %62 = arith.mulf %32, %61 : vector<16x32xf32>
    %63 = vector.broadcast %58 : f32 to vector<16x32xf32>
    %64 = arith.mulf %30, %63 : vector<16x32xf32>
    %65 = vector.broadcast %58 : f32 to vector<16x32xf32>
    %66 = arith.mulf %32, %65 : vector<16x32xf32>
    %cst_32 = arith.constant dense<0xFF800000> : vector<16xf32>
    %67 = vector.multi_reduction <maximumf>, %26, %cst_32 [1] : vector<16x32xf32> to vector<16xf32>
    %68 = vector.shape_cast %67 : vector<16xf32> to vector<16x1xf32>
    %69 = vector.broadcast %68 : vector<16x1xf32> to vector<16x32xf32>
    %70 = arith.subf %26, %69 : vector<16x32xf32>
    %71 = math.exp %70 : vector<16x32xf32>
    %cst_33 = arith.constant dense<0.000000e+00> : vector<16xf32>
    %72 = vector.multi_reduction <add>, %71, %cst_33 [1] : vector<16x32xf32> to vector<16xf32>
    %73 = vector.shape_cast %72 : vector<16xf32> to vector<16x1xf32>
    %74 = math.log %73 : vector<16x1xf32>
    %75 = arith.addf %68, %74 : vector<16x1xf32>
    %cst_34 = arith.constant dense<0xFF800000> : vector<16xf32>
    %76 = vector.multi_reduction <maximumf>, %28, %cst_34 [1] : vector<16x32xf32> to vector<16xf32>
    %77 = vector.shape_cast %76 : vector<16xf32> to vector<16x1xf32>
    %78 = vector.broadcast %77 : vector<16x1xf32> to vector<16x32xf32>
    %79 = arith.subf %28, %78 : vector<16x32xf32>
    %80 = math.exp %79 : vector<16x32xf32>
    %cst_35 = arith.constant dense<0.000000e+00> : vector<16xf32>
    %81 = vector.multi_reduction <add>, %80, %cst_35 [1] : vector<16x32xf32> to vector<16xf32>
    %82 = vector.shape_cast %81 : vector<16xf32> to vector<16x1xf32>
    %83 = math.log %82 : vector<16x1xf32>
    %84 = arith.addf %77, %83 : vector<16x1xf32>
    %cst_36 = arith.constant dense<0xFF800000> : vector<16xf32>
    %85 = vector.multi_reduction <maximumf>, %38, %cst_36 [1] : vector<16x32xf32> to vector<16xf32>
    %86 = vector.shape_cast %85 : vector<16xf32> to vector<16x1xf32>
    %87 = vector.broadcast %86 : vector<16x1xf32> to vector<16x32xf32>
    %88 = arith.subf %38, %87 : vector<16x32xf32>
    %89 = math.exp %88 : vector<16x32xf32>
    %cst_37 = arith.constant dense<0.000000e+00> : vector<16xf32>
    %90 = vector.multi_reduction <add>, %89, %cst_37 [1] : vector<16x32xf32> to vector<16xf32>
    %91 = vector.shape_cast %90 : vector<16xf32> to vector<16x1xf32>
    %92 = math.log %91 : vector<16x1xf32>
    %93 = arith.addf %86, %92 : vector<16x1xf32>
    %cst_38 = arith.constant dense<0xFF800000> : vector<16xf32>
    %94 = vector.multi_reduction <maximumf>, %44, %cst_38 [1] : vector<16x32xf32> to vector<16xf32>
    %95 = vector.shape_cast %94 : vector<16xf32> to vector<16x1xf32>
    %96 = vector.broadcast %95 : vector<16x1xf32> to vector<16x32xf32>
    %97 = arith.subf %44, %96 : vector<16x32xf32>
    %98 = math.exp %97 : vector<16x32xf32>
    %cst_39 = arith.constant dense<0.000000e+00> : vector<16xf32>
    %99 = vector.multi_reduction <add>, %98, %cst_39 [1] : vector<16x32xf32> to vector<16xf32>
    %100 = vector.shape_cast %99 : vector<16xf32> to vector<16x1xf32>
    %101 = math.log %100 : vector<16x1xf32>
    %102 = arith.addf %95, %101 : vector<16x1xf32>
    %c0_40 = arith.constant 0 : index
    %c0_41 = arith.constant 0 : index
    %103 = vector.load %arg10[%c0_40, %c0_41] : memref<1x1xf32, #tpu.memory_space<vmem>>, vector<1x1xf32>
    %cst_42 = arith.constant 0.000000e+00 : f32
    %104 = vector.broadcast %cst_42 : f32 to vector<16x32xf32>
    %105 = arith.select %24, %26, %104 : vector<16x32xi1>, vector<16x32xf32>
    %cst_43 = arith.constant dense<0.000000e+00> : vector<16xf32>
    %106 = vector.multi_reduction <add>, %105, %cst_43 [1] : vector<16x32xf32> to vector<16xf32>
    %107 = vector.shape_cast %106 : vector<16xf32> to vector<16x1xf32>
    %108 = arith.subf %75, %107 : vector<16x1xf32>
    %cst_44 = arith.constant dense<0.000000e+00> : vector<1xf32>
    %109 = vector.multi_reduction <add>, %108, %cst_44 [0] : vector<16x1xf32> to vector<1xf32>
    %110 = vector.shape_cast %109 : vector<1xf32> to vector<1x1xf32>
    %cst_45 = arith.constant 0.000000e+00 : f32
    %111 = vector.broadcast %cst_45 : f32 to vector<16x32xf32>
    %112 = arith.select %24, %28, %111 : vector<16x32xi1>, vector<16x32xf32>
    %cst_46 = arith.constant dense<0.000000e+00> : vector<16xf32>
    %113 = vector.multi_reduction <add>, %112, %cst_46 [1] : vector<16x32xf32> to vector<16xf32>
    %114 = vector.shape_cast %113 : vector<16xf32> to vector<16x1xf32>
    %115 = arith.subf %84, %114 : vector<16x1xf32>
    %cst_47 = arith.constant dense<0.000000e+00> : vector<1xf32>
    %116 = vector.multi_reduction <add>, %115, %cst_47 [0] : vector<16x1xf32> to vector<1xf32>
    %117 = vector.shape_cast %116 : vector<1xf32> to vector<1x1xf32>
    %118 = arith.addf %110, %117 : vector<1x1xf32>
    %cst_48 = arith.constant 1.562500e-02 : f32
    %119 = vector.broadcast %cst_48 : f32 to vector<1x1xf32>
    %120 = arith.mulf %118, %119 : vector<1x1xf32>
    %121 = arith.addf %103, %120 : vector<1x1xf32>
    %c0_49 = arith.constant 0 : index
    %c0_50 = arith.constant 0 : index
    %122 = vector.load %arg10[%c0_49, %c0_50] : memref<1x1xf32, #tpu.memory_space<vmem>>, vector<1x1xf32>
    tpu.vector_store %arg10[%c0_49, %c0_50], %121 {strides = array<i32>} : memref<1x1xf32, #tpu.memory_space<vmem>>, vector<1x1xf32>,
    %c0_51 = arith.constant 0 : index
    %c0_52 = arith.constant 0 : index
    %123 = vector.load %arg11[%c0_51, %c0_52] : memref<1x1xf32, #tpu.memory_space<vmem>>, vector<1x1xf32>
    %cst_53 = arith.constant 0.000000e+00 : f32
    %124 = vector.broadcast %cst_53 : f32 to vector<16x32xf32>
    %125 = arith.select %24, %38, %124 : vector<16x32xi1>, vector<16x32xf32>
    %cst_54 = arith.constant dense<0.000000e+00> : vector<16xf32>
    %126 = vector.multi_reduction <add>, %125, %cst_54 [1] : vector<16x32xf32> to vector<16xf32>
    %127 = vector.shape_cast %126 : vector<16xf32> to vector<16x1xf32>
    %128 = arith.subf %93, %127 : vector<16x1xf32>
    %cst_55 = arith.constant dense<0.000000e+00> : vector<1xf32>
    %129 = vector.multi_reduction <add>, %128, %cst_55 [0] : vector<16x1xf32> to vector<1xf32>
    %130 = vector.shape_cast %129 : vector<1xf32> to vector<1x1xf32>
    %cst_56 = arith.constant 0.000000e+00 : f32
    %131 = vector.broadcast %cst_56 : f32 to vector<16x32xf32>
    %132 = arith.select %24, %44, %131 : vector<16x32xi1>, vector<16x32xf32>
    %cst_57 = arith.constant dense<0.000000e+00> : vector<16xf32>
    %133 = vector.multi_reduction <add>, %132, %cst_57 [1] : vector<16x32xf32> to vector<16xf32>
    %134 = vector.shape_cast %133 : vector<16xf32> to vector<16x1xf32>
    %135 = arith.subf %102, %134 : vector<16x1xf32>
    %cst_58 = arith.constant dense<0.000000e+00> : vector<1xf32>
    %136 = vector.multi_reduction <add>, %135, %cst_58 [0] : vector<16x1xf32> to vector<1xf32>
    %137 = vector.shape_cast %136 : vector<1xf32> to vector<1x1xf32>
    %138 = arith.addf %130, %137 : vector<1x1xf32>
    %cst_59 = arith.constant 1.562500e-02 : f32
    %139 = vector.broadcast %cst_59 : f32 to vector<1x1xf32>
    %140 = arith.mulf %138, %139 : vector<1x1xf32>
    %141 = arith.addf %123, %140 : vector<1x1xf32>
    %c0_60 = arith.constant 0 : index
    %c0_61 = arith.constant 0 : index
    %142 = vector.load %arg11[%c0_60, %c0_61] : memref<1x1xf32, #tpu.memory_space<vmem>>, vector<1x1xf32>
    tpu.vector_store %arg11[%c0_60, %c0_61], %141 {strides = array<i32>} : memref<1x1xf32, #tpu.memory_space<vmem>>, vector<1x1xf32>,
    %cst_62 = arith.constant dense<0xFF800000> : vector<16xf32>
    %143 = vector.multi_reduction <maximumf>, %60, %cst_62 [1] : vector<16x32xf32> to vector<16xf32>
    %144 = vector.shape_cast %143 : vector<16xf32> to vector<16x1xf32>
    %145 = vector.broadcast %144 : vector<16x1xf32> to vector<16x32xf32>
    %146 = arith.subf %60, %145 : vector<16x32xf32>
    %147 = math.exp %146 : vector<16x32xf32>
    %cst_63 = arith.constant dense<0.000000e+00> : vector<16xf32>
    %148 = vector.multi_reduction <add>, %147, %cst_63 [1] : vector<16x32xf32> to vector<16xf32>
    %149 = vector.shape_cast %148 : vector<16xf32> to vector<16x1xf32>
    %150 = math.log %149 : vector<16x1xf32>
    %151 = arith.addf %144, %150 : vector<16x1xf32>
    %cst_64 = arith.constant dense<0xFF800000> : vector<16xf32>
    %152 = vector.multi_reduction <maximumf>, %62, %cst_64 [1] : vector<16x32xf32> to vector<16xf32>
    %153 = vector.shape_cast %152 : vector<16xf32> to vector<16x1xf32>
    %154 = vector.broadcast %153 : vector<16x1xf32> to vector<16x32xf32>
    %155 = arith.subf %62, %154 : vector<16x32xf32>
    %156 = math.exp %155 : vector<16x32xf32>
    %cst_65 = arith.constant dense<0.000000e+00> : vector<16xf32>
    %157 = vector.multi_reduction <add>, %156, %cst_65 [1] : vector<16x32xf32> to vector<16xf32>
    %158 = vector.shape_cast %157 : vector<16xf32> to vector<16x1xf32>
    %159 = math.log %158 : vector<16x1xf32>
    %160 = arith.addf %153, %159 : vector<16x1xf32>
    %cst_66 = arith.constant 1.000000e+00 : f32
    %161 = vector.broadcast %cst_66 : f32 to vector<16x1xf32>
    %162 = arith.divf %161, %149 : vector<16x1xf32>
    %163 = vector.broadcast %162 : vector<16x1xf32> to vector<16x32xf32>
    %164 = arith.mulf %147, %163 : vector<16x32xf32>
    %cst_67 = arith.constant 1.000000e+00 : f32
    %165 = vector.broadcast %cst_67 : f32 to vector<16x1xf32>
    %166 = arith.divf %165, %158 : vector<16x1xf32>
    %167 = vector.broadcast %166 : vector<16x1xf32> to vector<16x32xf32>
    %168 = arith.mulf %156, %167 : vector<16x32xf32>
    %c0_68 = arith.constant 0 : index
    %c0_69 = arith.constant 0 : index
    %169 = vector.load %arg12[%c0_68, %c0_69] : memref<1x1xf32, #tpu.memory_space<vmem>>, vector<1x1xf32>
    %170 = arith.subf %60, %26 : vector<16x32xf32>
    %171 = arith.mulf %164, %170 : vector<16x32xf32>
    %cst_70 = arith.constant dense<0.000000e+00> : vector<16xf32>
    %172 = vector.multi_reduction <add>, %171, %cst_70 [1] : vector<16x32xf32> to vector<16xf32>
    %173 = vector.shape_cast %172 : vector<16xf32> to vector<16x1xf32>
    %174 = arith.subf %173, %151 : vector<16x1xf32>
    %175 = arith.addf %174, %75 : vector<16x1xf32>
    %cst_71 = arith.constant dense<0.000000e+00> : vector<1xf32>
    %176 = vector.multi_reduction <add>, %175, %cst_71 [0] : vector<16x1xf32> to vector<1xf32>
    %177 = vector.shape_cast %176 : vector<1xf32> to vector<1x1xf32>
    %178 = arith.subf %62, %28 : vector<16x32xf32>
    %179 = arith.mulf %168, %178 : vector<16x32xf32>
    %cst_72 = arith.constant dense<0.000000e+00> : vector<16xf32>
    %180 = vector.multi_reduction <add>, %179, %cst_72 [1] : vector<16x32xf32> to vector<16xf32>
    %181 = vector.shape_cast %180 : vector<16xf32> to vector<16x1xf32>
    %182 = arith.subf %181, %160 : vector<16x1xf32>
    %183 = arith.addf %182, %84 : vector<16x1xf32>
    %cst_73 = arith.constant dense<0.000000e+00> : vector<1xf32>
    %184 = vector.multi_reduction <add>, %183, %cst_73 [0] : vector<16x1xf32> to vector<1xf32>
    %185 = vector.shape_cast %184 : vector<1xf32> to vector<1x1xf32>
    %186 = arith.addf %177, %185 : vector<1x1xf32>
    %cst_74 = arith.constant 1.562500e-02 : f32
    %187 = vector.broadcast %cst_74 : f32 to vector<1x1xf32>
    %188 = arith.mulf %186, %187 : vector<1x1xf32>
    %189 = arith.addf %169, %188 : vector<1x1xf32>
    %c0_75 = arith.constant 0 : index
    %c0_76 = arith.constant 0 : index
    %190 = vector.load %arg12[%c0_75, %c0_76] : memref<1x1xf32, #tpu.memory_space<vmem>>, vector<1x1xf32>
    tpu.vector_store %arg12[%c0_75, %c0_76], %189 {strides = array<i32>} : memref<1x1xf32, #tpu.memory_space<vmem>>, vector<1x1xf32>,
    %c0_77 = arith.constant 0 : index
    %c0_78 = arith.constant 0 : index
    %191 = vector.load %arg13[%c0_77, %c0_78] : memref<1x1xf32, #tpu.memory_space<vmem>>, vector<1x1xf32>
    %192 = arith.subf %60, %38 : vector<16x32xf32>
    %193 = arith.mulf %164, %192 : vector<16x32xf32>
    %cst_79 = arith.constant dense<0.000000e+00> : vector<16xf32>
    %194 = vector.multi_reduction <add>, %193, %cst_79 [1] : vector<16x32xf32> to vector<16xf32>
    %195 = vector.shape_cast %194 : vector<16xf32> to vector<16x1xf32>
    %196 = arith.subf %195, %151 : vector<16x1xf32>
    %197 = arith.addf %196, %93 : vector<16x1xf32>
    %cst_80 = arith.constant dense<0.000000e+00> : vector<1xf32>
    %198 = vector.multi_reduction <add>, %197, %cst_80 [0] : vector<16x1xf32> to vector<1xf32>
    %199 = vector.shape_cast %198 : vector<1xf32> to vector<1x1xf32>
    %200 = arith.subf %62, %44 : vector<16x32xf32>
    %201 = arith.mulf %168, %200 : vector<16x32xf32>
    %cst_81 = arith.constant dense<0.000000e+00> : vector<16xf32>
    %202 = vector.multi_reduction <add>, %201, %cst_81 [1] : vector<16x32xf32> to vector<16xf32>
    %203 = vector.shape_cast %202 : vector<16xf32> to vector<16x1xf32>
    %204 = arith.subf %203, %160 : vector<16x1xf32>
    %205 = arith.addf %204, %102 : vector<16x1xf32>
    %cst_82 = arith.constant dense<0.000000e+00> : vector<1xf32>
    %206 = vector.multi_reduction <add>, %205, %cst_82 [0] : vector<16x1xf32> to vector<1xf32>
    %207 = vector.shape_cast %206 : vector<1xf32> to vector<1x1xf32>
    %208 = arith.addf %199, %207 : vector<1x1xf32>
    %cst_83 = arith.constant 1.562500e-02 : f32
    %209 = vector.broadcast %cst_83 : f32 to vector<1x1xf32>
    %210 = arith.mulf %208, %209 : vector<1x1xf32>
    %211 = arith.addf %191, %210 : vector<1x1xf32>
    %c0_84 = arith.constant 0 : index
    %c0_85 = arith.constant 0 : index
    %212 = vector.load %arg13[%c0_84, %c0_85] : memref<1x1xf32, #tpu.memory_space<vmem>>, vector<1x1xf32>
    tpu.vector_store %arg13[%c0_84, %c0_85], %211 {strides = array<i32>} : memref<1x1xf32, #tpu.memory_space<vmem>>, vector<1x1xf32>,
    %cst_86 = arith.constant 3.200000e+01 : f32
    %213 = arith.mulf %0, %cst_86 : f32
    %cst_87 = arith.constant 1.000000e+00 : f32
    %214 = arith.divf %cst_87, %213 : f32
    %cst_88 = arith.constant 3.200000e+01 : f32
    %215 = arith.mulf %1, %cst_88 : f32
    %cst_89 = arith.constant 1.000000e+00 : f32
    %216 = arith.divf %cst_89, %215 : f32
    %cst_90 = arith.constant dense<0xFF800000> : vector<16xf32>
    %217 = vector.multi_reduction <maximumf>, %51, %cst_90 [1] : vector<16x32xf32> to vector<16xf32>
    %218 = vector.shape_cast %217 : vector<16xf32> to vector<16x1xf32>
    %219 = vector.broadcast %218 : vector<16x1xf32> to vector<16x32xf32>
    %220 = arith.subf %51, %219 : vector<16x32xf32>
    %221 = math.exp %220 : vector<16x32xf32>
    %cst_91 = arith.constant dense<0.000000e+00> : vector<16xf32>
    %222 = vector.multi_reduction <add>, %221, %cst_91 [1] : vector<16x32xf32> to vector<16xf32>
    %223 = vector.shape_cast %222 : vector<16xf32> to vector<16x1xf32>
    %224 = tpu.reciprocal %223 {approx = true} : vector<16x1xf32> -> vector<16x1xf32>
    %225 = vector.broadcast %214 : f32 to vector<16x1xf32>
    %226 = arith.mulf %224, %225 : vector<16x1xf32>
    %227 = vector.broadcast %226 : vector<16x1xf32> to vector<16x32xf32>
    %228 = arith.mulf %221, %227 : vector<16x32xf32>
    %229 = vector.broadcast %214 : f32 to vector<16x32xf32>
    %230 = arith.subf %228, %229 : vector<16x32xf32>
    %231 = arith.select %24, %230, %228 : vector<16x32xi1>, vector<16x32xf32>
    %232 = arith.truncf %231 : vector<16x32xf32> to vector<16x32xbf16>
    %cst_92 = arith.constant dense<0xFF800000> : vector<16xf32>
    %233 = vector.multi_reduction <maximumf>, %57, %cst_92 [1] : vector<16x32xf32> to vector<16xf32>
    %234 = vector.shape_cast %233 : vector<16xf32> to vector<16x1xf32>
    %235 = vector.broadcast %234 : vector<16x1xf32> to vector<16x32xf32>
    %236 = arith.subf %57, %235 : vector<16x32xf32>
    %237 = math.exp %236 : vector<16x32xf32>
    %cst_93 = arith.constant dense<0.000000e+00> : vector<16xf32>
    %238 = vector.multi_reduction <add>, %237, %cst_93 [1] : vector<16x32xf32> to vector<16xf32>
    %239 = vector.shape_cast %238 : vector<16xf32> to vector<16x1xf32>
    %240 = tpu.reciprocal %239 {approx = true} : vector<16x1xf32> -> vector<16x1xf32>
    %241 = vector.broadcast %214 : f32 to vector<16x1xf32>
    %242 = arith.mulf %240, %241 : vector<16x1xf32>
    %243 = vector.broadcast %242 : vector<16x1xf32> to vector<16x32xf32>
    %244 = arith.mulf %237, %243 : vector<16x32xf32>
    %245 = vector.broadcast %214 : f32 to vector<16x32xf32>
    %246 = arith.subf %244, %245 : vector<16x32xf32>
    %247 = arith.select %24, %246, %244 : vector<16x32xi1>, vector<16x32xf32>
    %248 = arith.truncf %247 : vector<16x32xf32> to vector<16x32xbf16>
    %cst_94 = arith.constant dense<0xFF800000> : vector<16xf32>
    %249 = vector.multi_reduction <maximumf>, %64, %cst_94 [1] : vector<16x32xf32> to vector<16xf32>
    %250 = vector.shape_cast %249 : vector<16xf32> to vector<16x1xf32>
    %251 = vector.broadcast %250 : vector<16x1xf32> to vector<16x32xf32>
    %252 = arith.subf %64, %251 : vector<16x32xf32>
    %253 = math.exp %252 : vector<16x32xf32>
    %cst_95 = arith.constant dense<0.000000e+00> : vector<16xf32>
    %254 = vector.multi_reduction <add>, %253, %cst_95 [1] : vector<16x32xf32> to vector<16xf32>
    %255 = vector.shape_cast %254 : vector<16xf32> to vector<16x1xf32>
    %256 = tpu.reciprocal %255 {approx = true} : vector<16x1xf32> -> vector<16x1xf32>
    %257 = vector.broadcast %216 : f32 to vector<16x1xf32>
    %258 = arith.mulf %256, %257 : vector<16x1xf32>
    %259 = vector.broadcast %258 : vector<16x1xf32> to vector<16x32xf32>
    %260 = arith.mulf %253, %259 : vector<16x32xf32>
    %261 = vector.broadcast %216 : f32 to vector<16x32xf32>
    %262 = arith.subf %260, %261 : vector<16x32xf32>
    %263 = arith.select %24, %262, %260 : vector<16x32xi1>, vector<16x32xf32>
    %264 = arith.truncf %263 : vector<16x32xf32> to vector<16x32xbf16>
    %cst_96 = arith.constant dense<0xFF800000> : vector<16xf32>
    %265 = vector.multi_reduction <maximumf>, %66, %cst_96 [1] : vector<16x32xf32> to vector<16xf32>
    %266 = vector.shape_cast %265 : vector<16xf32> to vector<16x1xf32>
    %267 = vector.broadcast %266 : vector<16x1xf32> to vector<16x32xf32>
    %268 = arith.subf %66, %267 : vector<16x32xf32>
    %269 = math.exp %268 : vector<16x32xf32>
    %cst_97 = arith.constant dense<0.000000e+00> : vector<16xf32>
    %270 = vector.multi_reduction <add>, %269, %cst_97 [1] : vector<16x32xf32> to vector<16xf32>
    %271 = vector.shape_cast %270 : vector<16xf32> to vector<16x1xf32>
    %272 = tpu.reciprocal %271 {approx = true} : vector<16x1xf32> -> vector<16x1xf32>
    %273 = vector.broadcast %216 : f32 to vector<16x1xf32>
    %274 = arith.mulf %272, %273 : vector<16x1xf32>
    %275 = vector.broadcast %274 : vector<16x1xf32> to vector<16x32xf32>
    %276 = arith.mulf %269, %275 : vector<16x32xf32>
    %277 = vector.broadcast %216 : f32 to vector<16x32xf32>
    %278 = arith.subf %276, %277 : vector<16x32xf32>
    %279 = arith.select %24, %278, %276 : vector<16x32xi1>, vector<16x32xf32>
    %280 = arith.truncf %279 : vector<16x32xf32> to vector<16x32xbf16>
    %c0_98 = arith.constant 0 : index
    %c0_99 = arith.constant 0 : index
    %281 = vector.load %arg19[%c0_98, %c0_99] : memref<32x64xbf16, #tpu.memory_space<vmem>>, vector<32x64xbf16>
    %cst_100 = arith.constant dense<0.000000e+00> : vector<16x64xf32>
    %282 = tpu.matmul %232, %281, %cst_100 {dimension_numbers = #tpu.dot_dimension_numbers<[1], [0], [0], [1], [0, 0, 1, 1], [], []>} : vector<16x32xbf16>, vector<32x64xbf16>, vector<16x64xf32> -> vector<16x64xf32>
    %c0_101 = arith.constant 0 : index
    %c0_102 = arith.constant 0 : index
    %283 = vector.load %arg21[%c0_101, %c0_102] : memref<32x64xbf16, #tpu.memory_space<vmem>>, vector<32x64xbf16>
    %cst_103 = arith.constant dense<0.000000e+00> : vector<16x64xf32>
    %284 = tpu.matmul %264, %283, %cst_103 {dimension_numbers = #tpu.dot_dimension_numbers<[1], [0], [0], [1], [0, 0, 1, 1], [], []>} : vector<16x32xbf16>, vector<32x64xbf16>, vector<16x64xf32> -> vector<16x64xf32>
    %285 = arith.subf %282, %284 : vector<16x64xf32>
    %c0_104 = arith.constant 0 : index
    %c0_105 = arith.constant 0 : index
    %286 = vector.load %arg18[%c0_104, %c0_105] : memref<32x64xbf16, #tpu.memory_space<vmem>>, vector<32x64xbf16>
    %cst_106 = arith.constant dense<0.000000e+00> : vector<16x64xf32>
    %287 = tpu.matmul %248, %286, %cst_106 {dimension_numbers = #tpu.dot_dimension_numbers<[1], [0], [0], [1], [0, 0, 1, 1], [], []>} : vector<16x32xbf16>, vector<32x64xbf16>, vector<16x64xf32> -> vector<16x64xf32>
    %c0_107 = arith.constant 0 : index
    %c0_108 = arith.constant 0 : index
    %288 = vector.load %arg20[%c0_107, %c0_108] : memref<32x64xbf16, #tpu.memory_space<vmem>>, vector<32x64xbf16>
    %cst_109 = arith.constant dense<0.000000e+00> : vector<16x64xf32>
    %289 = tpu.matmul %280, %288, %cst_109 {dimension_numbers = #tpu.dot_dimension_numbers<[1], [0], [0], [1], [0, 0, 1, 1], [], []>} : vector<16x32xbf16>, vector<32x64xbf16>, vector<16x64xf32> -> vector<16x64xf32>
    %290 = arith.subf %287, %289 : vector<16x64xf32>
    %c0_110 = arith.constant 0 : index
    %c0_111 = arith.constant 0 : index
    %291 = vector.load %arg15[%c0_110, %c0_111] : memref<1x1xf32, #tpu.memory_space<vmem>>, vector<1x1xf32>
    %292 = arith.mulf %285, %285 : vector<16x64xf32>
    %cst_112 = arith.constant dense<0.000000e+00> : vector<16xf32>
    %293 = vector.multi_reduction <add>, %292, %cst_112 [1] : vector<16x64xf32> to vector<16xf32>
    %294 = vector.shape_cast %293 : vector<16xf32> to vector<16x1xf32>
    %cst_113 = arith.constant dense<0.000000e+00> : vector<1xf32>
    %295 = vector.multi_reduction <add>, %294, %cst_113 [0] : vector<16x1xf32> to vector<1xf32>
    %296 = vector.shape_cast %295 : vector<1xf32> to vector<1x1xf32>
    %297 = arith.mulf %290, %290 : vector<16x64xf32>
    %cst_114 = arith.constant dense<0.000000e+00> : vector<16xf32>
    %298 = vector.multi_reduction <add>, %297, %cst_114 [1] : vector<16x64xf32> to vector<16xf32>
    %299 = vector.shape_cast %298 : vector<16xf32> to vector<16x1xf32>
    %cst_115 = arith.constant dense<0.000000e+00> : vector<1xf32>
    %300 = vector.multi_reduction <add>, %299, %cst_115 [0] : vector<16x1xf32> to vector<1xf32>
    %301 = vector.shape_cast %300 : vector<1xf32> to vector<1x1xf32>
    %302 = arith.addf %296, %301 : vector<1x1xf32>
    %cst_116 = arith.constant 4.8828125E-4 : f32
    %303 = vector.broadcast %cst_116 : f32 to vector<1x1xf32>
    %304 = arith.mulf %302, %303 : vector<1x1xf32>
    %305 = arith.addf %291, %304 : vector<1x1xf32>
    %c0_117 = arith.constant 0 : index
    %c0_118 = arith.constant 0 : index
    %306 = vector.load %arg15[%c0_117, %c0_118] : memref<1x1xf32, #tpu.memory_space<vmem>>, vector<1x1xf32>
    tpu.vector_store %arg15[%c0_117, %c0_118], %305 {strides = array<i32>} : memref<1x1xf32, #tpu.memory_space<vmem>>, vector<1x1xf32>,
    %c0_119 = arith.constant 0 : index
    %c0_120 = arith.constant 0 : index
    %307 = vector.load %arg22[%c0_119, %c0_120] : memref<32x64xf32, #tpu.memory_space<vmem>>, vector<32x64xf32>
    %cst_121 = arith.constant dense<0.000000e+00> : vector<32x64xf32>
    %308 = tpu.matmul %232, %13, %cst_121 {dimension_numbers = #tpu.dot_dimension_numbers<[0], [0], [1], [1], [0, 1, 1, 1], [], []>} : vector<16x32xbf16>, vector<16x64xbf16>, vector<32x64xf32> -> vector<32x64xf32>
    %cst_122 = arith.constant dense<0.000000e+00> : vector<32x64xf32>
    %309 = tpu.matmul %264, %17, %cst_122 {dimension_numbers = #tpu.dot_dimension_numbers<[0], [0], [1], [1], [0, 1, 1, 1], [], []>} : vector<16x32xbf16>, vector<16x64xbf16>, vector<32x64xf32> -> vector<32x64xf32>
    %310 = arith.subf %308, %309 : vector<32x64xf32>
    %311 = arith.addf %307, %310 : vector<32x64xf32>
    %c0_123 = arith.constant 0 : index
    %c0_124 = arith.constant 0 : index
    %312 = vector.load %arg22[%c0_123, %c0_124] : memref<32x64xf32, #tpu.memory_space<vmem>>, vector<32x64xf32>
    tpu.vector_store %arg22[%c0_123, %c0_124], %311 {strides = array<i32>} : memref<32x64xf32, #tpu.memory_space<vmem>>, vector<32x64xf32>,
    %c0_125 = arith.constant 0 : index
    %c0_126 = arith.constant 0 : index
    %313 = vector.load %arg23[%c0_125, %c0_126] : memref<32x64xf32, #tpu.memory_space<vmem>>, vector<32x64xf32>
    %cst_127 = arith.constant dense<0.000000e+00> : vector<32x64xf32>
    %314 = tpu.matmul %248, %15, %cst_127 {dimension_numbers = #tpu.dot_dimension_numbers<[0], [0], [1], [1], [0, 1, 1, 1], [], []>} : vector<16x32xbf16>, vector<16x64xbf16>, vector<32x64xf32> -> vector<32x64xf32>
    %cst_128 = arith.constant dense<0.000000e+00> : vector<32x64xf32>
    %315 = tpu.matmul %280, %19, %cst_128 {dimension_numbers = #tpu.dot_dimension_numbers<[0], [0], [1], [1], [0, 1, 1, 1], [], []>} : vector<16x32xbf16>, vector<16x64xbf16>, vector<32x64xf32> -> vector<32x64xf32>
    %316 = arith.subf %314, %315 : vector<32x64xf32>
    %317 = arith.addf %313, %316 : vector<32x64xf32>
    %c0_129 = arith.constant 0 : index
    %c0_130 = arith.constant 0 : index
    %318 = vector.load %arg23[%c0_129, %c0_130] : memref<32x64xf32, #tpu.memory_space<vmem>>, vector<32x64xf32>
    tpu.vector_store %arg23[%c0_129, %c0_130], %317 {strides = array<i32>} : memref<32x64xf32, #tpu.memory_space<vmem>>, vector<32x64xf32>,
    %c1_i32 = arith.constant 1 : i32
    %319 = arith.cmpi eq, %arg0, %c1_i32 : i32
    %320 = arith.extui %319 : i1 to i32
    %c0_i32_131 = arith.constant 0 : i32
    %321 = arith.cmpi ne, %320, %c0_i32_131 : i32
    scf.if %321 {
      %c0_132 = arith.constant 0 : index
      %c0_133 = arith.constant 0 : index
      %322 = vector.load %arg15[%c0_132, %c0_133] : memref<1x1xf32, #tpu.memory_space<vmem>>, vector<1x1xf32>
      %c0_134 = arith.constant 0 : index
      %c0_135 = arith.constant 0 : index
      %323 = vector.load %arg22[%c0_134, %c0_135] : memref<32x64xf32, #tpu.memory_space<vmem>>, vector<32x64xf32>
      %324 = arith.mulf %323, %323 : vector<32x64xf32>
      %cst_136 = arith.constant dense<0.000000e+00> : vector<32xf32>
      %325 = vector.multi_reduction <add>, %324, %cst_136 [1] : vector<32x64xf32> to vector<32xf32>
      %326 = vector.shape_cast %325 : vector<32xf32> to vector<32x1xf32>
      %cst_137 = arith.constant dense<0.000000e+00> : vector<1xf32>
      %327 = vector.multi_reduction <add>, %326, %cst_137 [0] : vector<32x1xf32> to vector<1xf32>
      %328 = vector.shape_cast %327 : vector<1xf32> to vector<1x1xf32>
      %c0_138 = arith.constant 0 : index
      %c0_139 = arith.constant 0 : index
      %329 = vector.load %arg23[%c0_138, %c0_139] : memref<32x64xf32, #tpu.memory_space<vmem>>, vector<32x64xf32>
      %330 = arith.mulf %329, %329 : vector<32x64xf32>
      %cst_140 = arith.constant dense<0.000000e+00> : vector<32xf32>
      %331 = vector.multi_reduction <add>, %330, %cst_140 [1] : vector<32x64xf32> to vector<32xf32>
      %332 = vector.shape_cast %331 : vector<32xf32> to vector<32x1xf32>
      %cst_141 = arith.constant dense<0.000000e+00> : vector<1xf32>
      %333 = vector.multi_reduction <add>, %332, %cst_141 [0] : vector<32x1xf32> to vector<1xf32>
      %334 = vector.shape_cast %333 : vector<1xf32> to vector<1x1xf32>
      %335 = arith.addf %328, %334 : vector<1x1xf32>
      %cst_142 = arith.constant 4.8828125E-4 : f32
      %336 = vector.broadcast %cst_142 : f32 to vector<1x1xf32>
      %337 = arith.mulf %335, %336 : vector<1x1xf32>
      %338 = arith.addf %322, %337 : vector<1x1xf32>
      %c0_143 = arith.constant 0 : index
      %c0_144 = arith.constant 0 : index
      %339 = vector.load %arg15[%c0_143, %c0_144] : memref<1x1xf32, #tpu.memory_space<vmem>>, vector<1x1xf32>
      tpu.vector_store %arg15[%c0_143, %c0_144], %338 {strides = array<i32>} : memref<1x1xf32, #tpu.memory_space<vmem>>, vector<1x1xf32>,
    } else {
    }
    return
  }
  func.func @transform_0(%arg0: i32) -> i32 {
    %c0_i32 = arith.constant 0 : i32
    %c0_i32_0 = arith.constant 0 : i32
    return %c0_i32 : i32
  }
  func.func @transform_1(%arg0: i32) -> (i32, i32) {
    %c0_i32 = arith.constant 0 : i32
    %c0_i32_0 = arith.constant 0 : i32
    %c0_i32_1 = arith.constant 0 : i32
    return %c0_i32, %c0_i32_0 : i32, i32
  }
  func.func @transform_2(%arg0: i32) -> (i32, i32) {
    %c0_i32 = arith.constant 0 : i32
    %c0_i32_0 = arith.constant 0 : i32
    %c0_i32_1 = arith.constant 0 : i32
    return %c0_i32, %c0_i32_0 : i32, i32
  }
  func.func @transform_3(%arg0: i32) -> (i32, i32) {
    %c0_i32 = arith.constant 0 : i32
    %c0_i32_0 = arith.constant 0 : i32
    %c0_i32_1 = arith.constant 0 : i32
    return %c0_i32, %c0_i32_0 : i32, i32
  }
  func.func @transform_4(%arg0: i32) -> (i32, i32) {
    %c0_i32 = arith.constant 0 : i32
    %c0_i32_0 = arith.constant 0 : i32
    %c0_i32_1 = arith.constant 0 : i32
    return %c0_i32, %c0_i32_0 : i32, i32
  }
  func.func @transform_5(%arg0: i32) -> (i32, i32) {
    %c0_i32 = arith.constant 0 : i32
    %c0_i32_0 = arith.constant 0 : i32
    %c0_i32_1 = arith.constant 0 : i32
    return %c0_i32, %c0_i32_0 : i32, i32
  }
  func.func @transform_6(%arg0: i32) -> (i32, i32) {
    %c0_i32 = arith.constant 0 : i32
    %c0_i32_0 = arith.constant 0 : i32
    %c0_i32_1 = arith.constant 0 : i32
    return %c0_i32, %c0_i32_0 : i32, i32
  }
  func.func @transform_7(%arg0: i32) -> (i32, i32) {
    %c0_i32 = arith.constant 0 : i32
    %c0_i32_0 = arith.constant 0 : i32
    %c0_i32_1 = arith.constant 0 : i32
    return %c0_i32, %c0_i32_0 : i32, i32
  }
  func.func @transform_8(%arg0: i32) -> (i32, i32) {
    %c0_i32 = arith.constant 0 : i32
    %c0_i32_0 = arith.constant 0 : i32
    %c0_i32_1 = arith.constant 0 : i32
    return %c0_i32, %c0_i32_0 : i32, i32
  }
  func.func @transform_9(%arg0: i32) -> (i32, i32) {
    %c0_i32 = arith.constant 0 : i32
    %c0_i32_0 = arith.constant 0 : i32
    %c0_i32_1 = arith.constant 0 : i32
    return %c0_i32, %c0_i32_0 : i32, i32
  }
  func.func @transform_10(%arg0: i32) -> (i32, i32) {
    %c0_i32 = arith.constant 0 : i32
    %c0_i32_0 = arith.constant 0 : i32
    %c0_i32_1 = arith.constant 0 : i32
    return %c0_i32, %c0_i32_0 : i32, i32
  }
  func.func @transform_11(%arg0: i32) -> (i32, i32) {
    %c0_i32 = arith.constant 0 : i32
    %c0_i32_0 = arith.constant 0 : i32
    %c0_i32_1 = arith.constant 0 : i32
    return %c0_i32, %c0_i32_0 : i32, i32
  }
  func.func @transform_12(%arg0: i32) -> (i32, i32) {
    %c0_i32 = arith.constant 0 : i32
    %c0_i32_0 = arith.constant 0 : i32
    %c0_i32_1 = arith.constant 0 : i32
    return %c0_i32, %c0_i32_0 : i32, i32
  }
  func.func @transform_13(%arg0: i32) -> (i32, i32) {
    %c0_i32 = arith.constant 0 : i32
    %c0_i32_0 = arith.constant 0 : i32
    %c0_i32_1 = arith.constant 0 : i32
    return %c0_i32, %c0_i32_0 : i32, i32
  }
  func.func @transform_14(%arg0: i32) -> (i32, i32) {
    %c0_i32 = arith.constant 0 : i32
    %c0_i32_0 = arith.constant 0 : i32
    %c0_i32_1 = arith.constant 0 : i32
    return %c0_i32, %c0_i32_0 : i32, i32
  }
}

</mosaic_0001>

<bundles_post_ra>
// kernel: tpu_custom_call.1
= control target key start
LH: loop header
LB: loop body
LE: loop exit
PB: predicated region body
PF: predicated region fallthrough
CT: control target
= control target key end

     0   :  { %s4678_s0 = inlined_call_operand.hbm [shape: f32[3], index: 0, kind: input, shape index: {}]   ;;  %s4679_s1 = inlined_call_operand.hbm [shape: f32[32,32], index: 1, kind: input, shape index: {}]   ;;  %s4680_s2 = inlined_call_operand.hbm [shape: f32[32,32], index: 2, kind: input, shape index: {}]   ;;  %s4681_s3 = inlined_call_operand.hbm [shape: f32[32,64], index: 3, kind: input, shape index: {}]   ;;  %s4682_s4 = inlined_call_operand.hbm [shape: f32[32,64], index: 4, kind: input, shape index: {}]   ;;  %s4683_s5 = inlined_call_operand.hbm [shape: f32[32,64], index: 5, kind: input, shape index: {}]   ;;  %s4684_s6 = inlined_call_operand.vmem [shape: f32[1,64], index: 6, kind: input, shape index: {}]   ;;  %s4685_s7 = inlined_call_operand.hbm [shape: f32[32,64], index: 7, kind: input, shape index: {}]   ;;  %s4686_s8 = inlined_call_operand.vmem [shape: f32[1,64], index: 8, kind: input, shape index: {}]   ;;  %s4687_s9 = inlined_call_operand.hbm [shape: f32[1,1], index: 9, kind: output, shape index: {0}]   ;;  %s4688_s10 = inlined_call_operand.hbm [shape: f32[1,1], index: 10, kind: output, shape index: {1}]   ;;  %s4689_s11 = inlined_call_operand.hbm [shape: f32[1,1], index: 11, kind: output, shape index: {2}]   ;;  %s4690_s12 = inlined_call_operand.hbm [shape: f32[1,1], index: 12, kind: output, shape index: {3}]   ;;  %s4691_s13 = inlined_call_operand.hbm [shape: f32[1,1], index: 13, kind: output, shape index: {4}]   ;;  %s4692_s14 = inlined_call_operand.hbm [shape: f32[1,1], index: 14, kind: output, shape index: {5}]  }
   0x1   :  { %4698 = sst [smem:[#allocation42_spill]] %s4678_s0 }
   0x2   :  { %4699 = sst [smem:[#allocation43_spill]] %s4691_s13 }
   0x3   :  { %4700 = sst [smem:[#allocation44_spill]] %s4692_s14 }
   0x4   :  { %20 = vsyncpa [#allocation13], 0 }
   0x5   :  { %21 = vsyncpa [#allocation11], 0 }
   0x6   :  { %22 = vsyncpa [#allocation16], 0 }
   0x7   :  { %23 = vsyncpa [#allocation19], 0 }
   0x8   :  { %24 = vsyncpa [#allocation22], 0 }
   0x9   :  { %25 = vsyncpa [#allocation12], 0 }
   0xa   :  { %26 = vsyncpa [#allocation25], 0 }
   0xb   :  { %27 = vsyncpa [#allocation28], 0 }
   0xc   :  { %28 = vsyncpa [#allocation31], 0  ;;  %s3657_s29 = smov 0  }
   0xd LB: > { %4701 = sst [smem:[#allocation41_spill]] %s3562_s29  ;;  %s3663_s30 = sadd.s32 4294967295, %s3562_s29   ;;  %s3562_s29 = sphi %s3657_s29, %s34_s29  }
   0xe   : > { %p2661_p0 = scmp.ge.s32.totalorder %s3562_s29, 1  ;;  %p354_p1 = scmp.lt.s32.totalorder %s3562_s29, 3 }
   0xf   : > { %p4696_p3 = scmp.eq.s32.totalorder %s3663_s30, 0  ;;  %s3564_s16 = smov [#allocation15]  }
  0x10   : > { %p3669_p4 = pnand %p2661_p0, %p354_p1  ;;  %s388_s17 = sshll.u32 %s3564_s16, 4  ;;  %s3673_s17 = int_to_ptr.vmem [resolvable:$true] %s388_s17 }
  0x11   : > { %s3565_s18 = smov [#allocation18]   ;;  %s3566_s21 = smov [#allocation14]  }
  0x12   : > { %s4702_s15 = scalar_select %p3669_p4, 1, 0 }
  0x13   : > { %p2980_p5 = pneg %p3669_p4  ;;  %s414_s19 = sshll.u32 %s3565_s18, 4  ;;  %s3677_s19 = int_to_ptr.vmem [resolvable:$true] %s414_s19 }
  0x14   : > { %s375_s22 = sshll.u32 %s3566_s21, 4  ;;  %s3183_s25 = scalar_lea.hbm %s4680_s2, 512  ;;  %s3685_s22 = int_to_ptr.vmem [resolvable:$true] %s375_s22 }
  0x15   : > { %p3681_p6 = pnand %p4696_p3, %p2980_p5  ;;  %p3184_p7 = scmp.ne.s32.totalorder %s4680_s2, %s3183_s25 }
  0x16   : > { %p3190_p11 = scmp.lt.u32.totalorder %s3183_s25, %s4680_s2 }
  0x17   : > { %p3695_p8 = pneg %p3681_p6 }
  0x19   : > { %p3186_p9 = pnand %p3695_p8, %p3184_p7 }
  0x1b   : > { %p3187_p10 = pneg %p3186_p9 }
  0x1d   : > { %p3192_p12 = pnand %p3190_p11, %p3187_p10 }
  0x1f   : > { %3195 = shalt.err (!%p3192_p12)
}
  0x20   : > { %s3196_s21 = scalar_lea.vmem %s3673_s17, 512  ;;  %p3204_p5 = scmp.lt.s32.totalorder %s3673_s17, %s3673_s17 }
  0x21   : > { %p3197_p13 = scmp.ne.s32.totalorder %s3673_s17, %s3196_s21  ;;  %p3205_p2 = scmp.lt.s32.totalorder %s3196_s21, %s3196_s21 }
  0x23   : > { %p3199_p0 = pnand %p3197_p13, %p3695_p8  ;;  %p3206_p7 = por %p3205_p2, %p3204_p5 }
  0x25   : > { %p3200_p1 = pneg %p3199_p0 }
  0x27   : > { %p3207_p9 = pnand %p3206_p7, %p3200_p1 }
  0x29   : > { %3210 = shalt.err (!%p3207_p9)
}
  0x2a   : > { %s3567_s23 = smov 128   ;;  %s3568_s24 = smov 8  }
  0x2b   : > { %2989 = dma.hbm_to_vmem [thread:$0]  (!%p3681_p6), %s4680_s2, 512, %s3673_s17, [#allocation16], %s3567_s23, %s3567_s23, %s3568_s24  }
  0x2c   : > { %s3211_s18 = scalar_lea.hbm %s4682_s4, 512 }
  0x2d   : > { %p3212_p2 = scmp.ne.s32.totalorder %s4682_s4, %s3211_s18  ;;  %p3218_p12 = scmp.lt.u32.totalorder %s3211_s18, %s4682_s4 }
  0x2f   : > { %p3214_p10 = pnand %p3212_p2, %p3695_p8 }
  0x31   : > { %p3215_p11 = pneg %p3214_p10 }
  0x33   : > { %p3220_p13 = pnand %p3218_p12, %p3215_p11 }
  0x35   : > { %3223 = shalt.err (!%p3220_p13)
}
  0x36   : > { %s3224_s17 = scalar_lea.vmem %s3677_s19, 512  ;;  %p3232_p7 = scmp.lt.s32.totalorder %s3677_s19, %s3677_s19 }
  0x37   : > { %p3225_p0 = scmp.ne.s32.totalorder %s3677_s19, %s3224_s17  ;;  %p3233_p9 = scmp.lt.s32.totalorder %s3224_s17, %s3224_s17 }
  0x39   : > { %p3227_p1 = pnand %p3225_p0, %p3695_p8  ;;  %p3234_p2 = por %p3233_p9, %p3232_p7 }
  0x3b   : > { %p3228_p5 = pneg %p3227_p1 }
  0x3d   : > { %p3235_p10 = pnand %p3234_p2, %p3228_p5 }
  0x3f   : > { %3238 = shalt.err (!%p3235_p10)
}
  0x40   : > { %2995 = dma.hbm_to_vmem [thread:$0]  (!%p3681_p6), %s4682_s4, 512, %s3677_s19, [#allocation19], %s3567_s23, %s3567_s23, %s3568_s24  }
  0x41   : > { %s4705_s0 = sld [smem:[#allocation42_spill]] }
  0x47   : > { %s3239_s26 = scalar_lea.hbm %s4705_s0, 16 }
  0x48   : > { %p3240_p11 = scmp.ne.s32.totalorder %s4705_s0, %s3239_s26  ;;  %p3246_p0 = scmp.lt.u32.totalorder %s3239_s26, %s4705_s0 }
  0x4a   : > { %p3242_p12 = pnand %p3240_p11, %p3695_p8 }
  0x4c   : > { %p3243_p13 = pneg %p3242_p12 }
  0x4e   : > { %p3248_p1 = pnand %p3246_p0, %p3243_p13 }
  0x50   : > { %3251 = shalt.err (!%p3248_p1)
}
  0x51   : > { %s3569_s17 = smov [#allocation10]   ;;  %s3252_s25 = scalar_lea.hbm %s4679_s1, 512 }
  0x52   : > { %2983 = dma.hbm_to_smem (!%p3681_p6), %s4705_s0, 16, %s3569_s17, [#allocation13]  }
  0x53   : > { %p3253_p5 = scmp.ne.s32.totalorder %s4679_s1, %s3252_s25  ;;  %p3259_p2 = scmp.lt.u32.totalorder %s3252_s25, %s4679_s1 }
  0x55   : > { %p3255_p7 = pnand %p3253_p5, %p3695_p8 }
  0x57   : > { %p3256_p9 = pneg %p3255_p7 }
  0x59   : > { %p3261_p10 = pnand %p3259_p2, %p3256_p9 }
  0x5b   : > { %3264 = shalt.err (!%p3261_p10)
}
  0x5c   : > { %s3265_s21 = scalar_lea.vmem %s3685_s22, 512  ;;  %p3273_p0 = scmp.lt.s32.totalorder %s3685_s22, %s3685_s22 }
  0x5d   : > { %p3266_p11 = scmp.ne.s32.totalorder %s3685_s22, %s3265_s21  ;;  %p3274_p1 = scmp.lt.s32.totalorder %s3265_s21, %s3265_s21 }
  0x5f   : > { %p3268_p12 = pnand %p3266_p11, %p3695_p8  ;;  %p3275_p5 = por %p3274_p1, %p3273_p0 }
  0x61   : > { %p3269_p13 = pneg %p3268_p12 }
  0x63   : > { %p3276_p7 = pnand %p3275_p5, %p3269_p13 }
  0x65   : > { %3279 = shalt.err (!%p3276_p7)
}
  0x66   : > { %2986 = dma.hbm_to_vmem [thread:$0]  (!%p3681_p6), %s4679_s1, 512, %s3685_s22, [#allocation11], %s3567_s23, %s3567_s23, %s3568_s24  }
  0x67   : > { %s3570_s13 = smov [#allocation17]   ;;  %s3571_s29 = smov [#allocation20]  }
  0x68   : > { %s401_s14 = sshll.u32 %s3570_s13, 4  ;;  %s427_s25 = sshll.u32 %s3571_s29, 4  ;;  %s402_s14 = int_to_ptr.vmem [resolvable:$true] %s401_s14  ;;  %s428_s25 = int_to_ptr.vmem [resolvable:$true] %s427_s25 }
  0x69   : > { %s3280_s26 = scalar_lea.hbm %s4681_s3, 512 }
  0x6a   : > { %p3281_p9 = scmp.ne.s32.totalorder %s4681_s3, %s3280_s26  ;;  %p3287_p11 = scmp.lt.u32.totalorder %s3280_s26, %s4681_s3 }
  0x6c   : > { %p3283_p2 = pnand %p3281_p9, %p3695_p8 }
  0x6e   : > { %p3284_p10 = pneg %p3283_p2 }
  0x70   : > { %p3289_p12 = pnand %p3287_p11, %p3284_p10 }
  0x72   : > { %3292 = shalt.err (!%p3289_p12)
}
  0x73   : > { %s3293_s22 = scalar_lea.vmem %s402_s14, 512  ;;  %p3301_p5 = scmp.lt.s32.totalorder %s402_s14, %s402_s14 }
  0x74   : > { %p3294_p13 = scmp.ne.s32.totalorder %s402_s14, %s3293_s22  ;;  %p3302_p7 = scmp.lt.s32.totalorder %s3293_s22, %s3293_s22 }
  0x76   : > { %p3296_p0 = pnand %p3294_p13, %p3695_p8  ;;  %p3303_p3 = por %p3302_p7, %p3301_p5 }
  0x78   : > { %p3297_p1 = pneg %p3296_p0 }
  0x7a   : > { %p3304_p4 = pnand %p3303_p3, %p3297_p1 }
  0x7c   : > { %3307 = shalt.err (!%p3304_p4)
}
  0x7d   : > { %2992 = dma.hbm_to_vmem [thread:$0]  (!%p3681_p6), %s4681_s3, 512, %s402_s14, [#allocation16], %s3567_s23, %s3567_s23, %s3568_s24  }
  0x7e   : > { %s3308_s27 = scalar_lea.hbm %s4683_s5, 512 }
  0x7f   : > { %p3309_p3 = scmp.ne.s32.totalorder %s4683_s5, %s3308_s27  ;;  %p3315_p2 = scmp.lt.u32.totalorder %s3308_s27, %s4683_s5 }
  0x81   : > { %p3311_p4 = pnand %p3309_p3, %p3695_p8 }
  0x83   : > { %p3312_p9 = pneg %p3311_p4 }
  0x85   : > { %p3317_p10 = pnand %p3315_p2, %p3312_p9 }
  0x87   : > { %3320 = shalt.err (!%p3317_p10)
}
  0x88   : > { %s3321_s17 = scalar_lea.vmem %s428_s25, 512  ;;  %p3329_p0 = scmp.lt.s32.totalorder %s428_s25, %s428_s25 }
  0x89   : > { %p3322_p11 = scmp.ne.s32.totalorder %s428_s25, %s3321_s17  ;;  %p3330_p1 = scmp.lt.s32.totalorder %s3321_s17, %s3321_s17 }
  0x8b   : > { %p3324_p12 = pnand %p3322_p11, %p3695_p8  ;;  %p3331_p5 = por %p3330_p1, %p3329_p0 }
  0x8d   : > { %p3325_p13 = pneg %p3324_p12 }
  0x8f   : > { %p3332_p7 = pnand %p3331_p5, %p3325_p13 }
  0x91   : > { %3335 = shalt.err (!%p3332_p7)
}
  0x92   : > { %2998 = dma.hbm_to_vmem [thread:$0]  (!%p3681_p6), %s4683_s5, 512, %s428_s25, [#allocation19], %s3567_s23, %s3567_s23, %s3568_s24  }
  0x93   : > { %s3572_s0 = smov [#allocation21]   ;;  %s3336_s27 = scalar_lea.hbm %s4685_s7, 512 }
  0x94   : > { %s443_s19 = sshll.u32 %s3572_s0, 4  ;;  %p3337_p3 = scmp.ne.s32.totalorder %s4685_s7, %s3336_s27  ;;  %s444_s19 = int_to_ptr.vmem [resolvable:$true] %s443_s19 }
  0x95   : > { %p3343_p2 = scmp.lt.u32.totalorder %s3336_s27, %s4685_s7 }
  0x96   : > { %p3339_p4 = pnand %p3337_p3, %p3695_p8 }
  0x98   : > { %p3340_p9 = pneg %p3339_p4 }
  0x9a   : > { %p3345_p10 = pnand %p3343_p2, %p3340_p9 }
  0x9c   : > { %3348 = shalt.err (!%p3345_p10)
}
  0x9d   : > { %s3349_s25 = scalar_lea.vmem %s444_s19, 512  ;;  %p3357_p0 = scmp.lt.s32.totalorder %s444_s19, %s444_s19 }
  0x9e   : > { %p3350_p11 = scmp.ne.s32.totalorder %s444_s19, %s3349_s25  ;;  %p3358_p1 = scmp.lt.s32.totalorder %s3349_s25, %s3349_s25 }
  0xa0   : > { %p3352_p12 = pnand %p3350_p11, %p3695_p8  ;;  %p3359_p5 = por %p3358_p1, %p3357_p0 }
  0xa2   : > { %p3353_p13 = pneg %p3352_p12 }
  0xa4   : > { %p3360_p7 = pnand %p3359_p5, %p3353_p13 }
  0xa6   : > { %3363 = shalt.err (!%p3360_p7)
}
  0xa7   : > { %3001 = dma.hbm_to_vmem [thread:$0]  (!%p3681_p6), %s4685_s7, 512, %s444_s19, [#allocation22], %s3567_s23, %s3567_s23, %s3568_s24  }
  0xa8   : > { %p4706_p3 = scmp.ne.s32.totalorder %s4702_s15, 0 }
  0xa9   : > { %p4707_p8 = scmp.eq.s32.totalorder (!%p4706_p3), %s3663_s30, 0 }
  0xaa   : > { %462 = sbr.rel (%p4706_p3) target bundleno = 2082 (0x822), region = 56 }
  0xb1   : > { %3525 = dma.done.wait (%p4707_p8), [#allocation13], 16   ;;  %p4708_p4 = pmov %p4707_p8 }
  0xb3   : > { %3527 = vsyncadd (%p4708_p4), [#allocation13], 4294967280  ;;  %p4709_p9 = pmov %p4708_p4 }
  0xb4   : > { %p4710_p2 = pmov %p4708_p4 }
  0xb5   : > { %3529 = dma.done.wait (%p4709_p9), [#allocation11], 512  }
  0xb6   : > { %3531 = vsyncadd (%p4710_p2), [#allocation11], 4294966784  ;;  %p4711_p10 = pmov %p4710_p2 }
  0xb7   : > { %p4712_p6 = pmov %p4710_p2 }
  0xb8   : > { %3533 = dma.done.wait (%p4711_p10), [#allocation16], 1024  }
  0xb9   : > { %3535 = vsyncadd (%p4712_p6), [#allocation16], 4294966272  ;;  %p4713_p11 = pmov %p4710_p2 }
  0xba   : > { %p4714_p12 = pmov %p4710_p2 }
  0xbb   : > { %3537 = dma.done.wait (%p4713_p11), [#allocation19], 1024  }
  0xbc   : > { %3539 = vsyncadd (%p4714_p12), [#allocation19], 4294966272  ;;  %p4715_p13 = pmov %p4710_p2 }
  0xbd   : > { %p4716_p0 = pmov %p4710_p2 }
  0xbe   : > { %3541 = dma.done.wait (%p4715_p13), [#allocation22], 512  }
  0xbf   : > { %3543 = vsyncadd (%p4716_p0), [#allocation22], 4294966784 }
  0xc0   : > { %492 = sfence }
  0xc1   : > { %s3872_s15 = sld [smem:[#allocation10]]  ;;  %s3874_s20 = sld [smem:[#allocation10 + $0x1]] }
  0xc2   : > { %s3876_s28 = sld [smem:[#allocation10 + $0x2]]  ;;  %p4717_p1 = scmp.ne.s32.totalorder %s3663_s30, 0 }
  0xc3   : > { %v619_v0 = vld [vmem:[#allocation20] sm:$0xff] (!%p4717_p1)  ;;  %v620_v1 = vld [vmem:[#allocation20 + $0x8] sm:$0xff] (!%p4717_p1)  ;;  %v621_v5 = vld [vmem:[#allocation20 + $0x10] sm:$0xff] (!%p4717_p1)  ;;  %vm551_vm0 = vcmask (!%p4717_p1), 261120   ;;  %vm761_vm1 = vcmask (!%p4717_p1), 523264   ;;  %vm890_vm2 = vcmask (!%p4717_p1), 0  }
  0xc4   : > { %530 = sbr.rel (%p4717_p1) target bundleno = 774 (0x306), region = 88  ;;  %v689_v2 = vld [vmem:[#allocation21] sm:$0xff] (!%p4717_p1)  ;;  %v623_v3 = vpack.c.bf16 (!%p4717_p1), %v620_v1, %v619_v0  ;;  %v690_v4 = vld [vmem:[#allocation21 + $0x8] sm:$0xff] (!%p4717_p1)  ;;  %v622_v6 = vld [vmem:[#allocation20 + $0x18] sm:$0xff] (!%p4717_p1) }
  0xc5   : > { %v693_v7 = vpack.c.bf16 (!%p4717_p1), %v690_v4, %v689_v2  ;;  %v624_v8 = vpack.c.bf16 (!%p4717_p1), %v622_v6, %v621_v5  ;;  %v691_v9 = vld [vmem:[#allocation21 + $0x10] sm:$0xff] (!%p4717_p1)  ;;  %v692_v10 = vld [vmem:[#allocation21 + $0x18] sm:$0xff] (!%p4717_p1)  ;;  %v3880_v11 = vld [vmem:[#allocation14] sm:$0xff] (!%p4717_p1) }
  0xc6   : > { %2784 = vmatprep.subr.bf16.mxu0 (!%p4717_p1), %v623_v3  ;;  %v694_v12 = vpack.c.bf16 (!%p4717_p1), %v692_v10, %v691_v9  ;;  %v3882_v13 = vld [vmem:[#allocation14 + $0x8] sm:$0xff] (!%p4717_p1)  ;;  %v3884_v14 = vld [vmem:[#allocation15] sm:$0xff] (!%p4717_p1)  ;;  %v3892_v18 = vld [vmem:[#allocation14 + $0x10] sm:$0xff] (!%p4717_p1)  ;;  %v547_v58 = vmul.f32 (!%p4717_p1), %v3880_v11, %v3880_v11 }
  0xc7   : > { %v3886_v15 = vld [vmem:[#allocation15 + $0x8] sm:$0xff] (!%p4717_p1)  ;;  %2792 = vmatprep.subr.bf16.mxu1 (!%p4717_p1), %v693_v7  ;;  %2785 = vmatpush3.bf16.msra.mxu0 (!%p4717_p1), %v623_v3  ;;  %v617_v16 = vpack.c.bf16 (!%p4717_p1), %v3882_v13, %v3880_v11  ;;  %v3894_v19 = vld [vmem:[#allocation14 + $0x18] sm:$0xff] (!%p4717_p1)  ;;  %v3896_v20 = vld [vmem:[#allocation15 + $0x10] sm:$0xff] (!%p4717_p1)  ;;  %v548_v60 = vmul.f32 (!%p4717_p1), %v3882_v13, %v3882_v13  ;;  %v549_v61 = vmul.f32 (!%p4717_p1), %v3892_v18, %v3892_v18 }
  0xc8   : > { %v687_v17 = vpack.c.bf16 (!%p4717_p1), %v3886_v15, %v3884_v14  ;;  %2793 = vmatpush3.bf16.msra.mxu1 (!%p4717_p1), %v693_v7  ;;  %2786 = vmatprep.subr.bf16.mxu0 (!%p4717_p1), %v624_v8  ;;  %v3898_v21 = vld [vmem:[#allocation15 + $0x18] sm:$0xff] (!%p4717_p1)  ;;  %v618_v22 = vpack.c.bf16 (!%p4717_p1), %v3894_v19, %v3892_v18  ;;  %v2680_v24 = vld [vmem:[%s4684_s6] ss:$0 sm:$0xff] (!%p4717_p1)  ;;  %v552_v59 = vsel (!%p4717_p1), %vm551_vm0, %v547_v58, 0.0  ;;  %v550_v0 = vmul.f32 (!%p4717_p1), %v3894_v19, %v3894_v19  ;;  %v545_v4 = vld [vmem:[#allocation18 + $0x10] sm:$0xff] (!%p4717_p1) }
  0xc9   : > { %2794 = vmatprep.subr.bf16.mxu1 (!%p4717_p1), %v694_v12  ;;  %2788 = vmatprep.mubr.msk.bf16.mxu0 (!%p4717_p1), %vm551_vm0, %v617_v16  ;;  %v688_v23 = vpack.c.bf16 (!%p4717_p1), %v3898_v21, %v3896_v20  ;;  %v2683_v25 = vld [vmem:[%s4686_s8] ss:$0 sm:$0xff] (!%p4717_p1)  ;;  %v555_v62 = vsel (!%p4717_p1), %vm551_vm0, %v548_v60, 0.0  ;;  %v558_v63 = vsel (!%p4717_p1), %vm551_vm0, %v549_v61, 0.0  ;;  %v585_v1 = vmul.f32 (!%p4717_p1), %v3884_v14, %v3884_v14  ;;  %v3969_v5 = vld [vmem:[#allocation18 + $0x18] sm:$0xff] (!%p4717_p1)  ;;  %v541_v7 = vld [vmem:[#allocation17 + $0x10] sm:$0xff] (!%p4717_p1) }
  0xca   : > { %2796 = vmatprep.mubr.msk.bf16.mxu1 (!%p4717_p1), %vm551_vm0, %v687_v17  ;;  %v561_v2 = vsel (!%p4717_p1), %vm551_vm0, %v550_v0, 0.0  ;;  %v827_v6 = vpack.c.bf16 (!%p4717_p1), %v3969_v5, %v545_v4  ;;  %v3973_v9 = vld [vmem:[#allocation17 + $0x18] sm:$0xff] (!%p4717_p1)  ;;  %v3975_v10 = vld [vmem:[#allocation17 + $0x8] sm:$0xff] (!%p4717_p1)  ;;  %v543_v17 = vld [vmem:[#allocation18] sm:$0xff] (!%p4717_p1) }
  0xcb   : > { %2787 = vmatpush3.bf16.msra.mxu0 %v624_v8  ;;  %v589_v3 = vsel %vm551_vm0, %v585_v1, 0.0  ;;  %v539_v8 = vld [vmem:[#allocation17] sm:$0xff] }
  0xcc   : > { %2795 = vmatpush3.bf16.msra.mxu1 %v694_v12  ;;  %829 = vst.msk [vmem:[#allocation7 + $0x8] sm:$0xff] %vm761_vm1, %v827_v6  ;;  %v823_v12 = vpack.c.bf16 %v3973_v9, %v541_v7  ;;  %v822_v16 = vpack.c.bf16 %v3975_v10, %v539_v8 }
  0xce   : > { %2789 = vmatmul.mubr.msk.bf16.vlgmr.msra.gmra.mrb[0].mxu0 %vm551_vm0, %v618_v22  ;;  %825 = vst.msk [vmem:[#allocation6 + $0x8] sm:$0xff] %vm761_vm1, %v823_v12  ;;  %824 = vst.msk [vmem:[#allocation6] sm:$0xff] %vm761_vm1, %v822_v16  ;;  %v3981_v22 = vld [vmem:[#allocation18 + $0x8] sm:$0xff] }
  0xcf   : > { %2797 = vmatmul.mubr.msk.bf16.vlgmr.msra.gmra.mrb[0].mxu1 %vm551_vm0, %v688_v23  ;;  %v826_v23 = vpack.c.bf16 %v3981_v22, %v543_v17 }
  0xd1   : > { %828 = vst.msk [vmem:[#allocation7] sm:$0xff] %vm761_vm1, %v826_v23 }
 0x1a1   : > { %v2790_v26 = vpop.f32.mrb[0].mxu0 }
 0x1a2   : > { %v3914_v27 = vadd.f32 %v2790_v26, %v2680_v24  ;;  %v2798_v28 = vpop.f32.mrb[0].mxu1  ;;  %v672_v29 = vpop.f32.mrb[1].mxu0 }
 0x1a3   : > { %v3916_v30 = vadd.f32 %v2798_v28, %v2683_v25  ;;  %v742_v31 = vpop.f32.mrb[1].mxu1  ;;  %v3918_v32 = vadd.f32 %v2680_v24, %v672_v29  ;;  %v2791_v33 = vpop.f32.mrb[2].mxu0 }
 0x1a4   : > { %v3920_v34 = vadd.f32 %v2683_v25, %v742_v31  ;;  %v2799_v35 = vpop.f32.mrb[2].mxu1  ;;  %v759_v36 = vmul.f32 %v3914_v27, %v3914_v27  ;;  %v675_v37 = vpop.f32.mrb[3].mxu0  ;;  %v3939_v48 = vadd.f32 %v2791_v33, %v2680_v24 }
 0x1a5   : > { %v745_v38 = vpop.f32.mrb[3].mxu1  ;;  %v788_v39 = vmul.f32 %v3916_v30, %v3916_v30  ;;  %v3926_v40 = vadd.f32 %v2680_v24, %v675_v37  ;;  %v757_v41 = vmul.f32 %v3918_v32, %v3918_v32  ;;  %v3941_v49 = vadd.f32 %v2799_v35, %v2683_v25 }
 0x1a6   : > { %v768_v42 = vsel %vm761_vm1, %v759_v36, 0.0  ;;  %v3931_v43 = vadd.f32 %v2683_v25, %v745_v38  ;;  %v786_v45 = vmul.f32 %v3920_v34, %v3920_v34  ;;  %v760_v53 = vmul.f32 %v3939_v48, %v3939_v48 }
 0x1a7   : > { %v796_v44 = vsel %vm761_vm1, %v788_v39, 0.0  ;;  %769 = vadd.xlane.f32.xlu0 %v768_v42  ;;  %v762_v46 = vsel %vm761_vm1, %v757_v41, 0.0  ;;  %v758_v47 = vmul.f32 %v3926_v40, %v3926_v40  ;;  %v789_v55 = vmul.f32 %v3941_v49, %v3941_v49 }
 0x1a8   : > { %797 = vadd.xlane.f32.xlu1 %v796_v44  ;;  %v790_v50 = vsel %vm761_vm1, %v786_v45, 0.0  ;;  %v787_v51 = vmul.f32 %v3931_v43, %v3931_v43  ;;  %v771_v56 = vsel %vm761_vm1, %v760_v53, 0.0 }
 0x1a9   : > { %v765_v52 = vsel %vm761_vm1, %v758_v47, 0.0  ;;  %v799_v57 = vsel %vm761_vm1, %v789_v55, 0.0 }
 0x1aa   : > { %v793_v54 = vsel %vm761_vm1, %v787_v51, 0.0 }
 0x1ab   : > { %763 = vadd.xlane.f32.xlu0 %v762_v46 }
 0x1ac   : > { %791 = vadd.xlane.f32.xlu1 %v790_v50 }
 0x1af   : > { %766 = vadd.xlane.f32.xlu0 %v765_v52 }
 0x1b0   : > { %794 = vadd.xlane.f32.xlu1 %v793_v54 }
 0x1b3   : > { %772 = vadd.xlane.f32.xlu0 %v771_v56 }
 0x1b4   : > { %800 = vadd.xlane.f32.xlu1 %v799_v57 }
 0x1b7   : > { %553 = vadd.xlane.f32.xlu0 %v552_v59 }
 0x1b8   : > { %556 = vadd.xlane.f32.xlu1 %v555_v62 }
 0x1bb   : > { %559 = vadd.xlane.f32.xlu0 %v558_v63 }
 0x1bc   : > { %562 = vadd.xlane.f32.xlu1 %v561_v2 }
 0x1bf   : > { %590 = vadd.xlane.f32.xlu0 %v589_v3 }
 0x234   : > { %v770_v24 = vpop.xlane.xlu0 %769 }
 0x235   : > { %v798_v25 = vpop.xlane.xlu1 %797  ;;  %v776_v26 = vmax.f32 %v770_v24, 1e-24 }
 0x236   : > { %v804_v28 = vmax.f32 %v798_v25, 1e-24 }
 0x237   : > { %3055 = vrsqrt.f32 %v776_v26 }
 0x238   : > { %3057 = vrsqrt.f32 %v804_v28  ;;  %v764_v29 = vpop.xlane.xlu0 %763 }
 0x239   : > { %v792_v31 = vpop.xlane.xlu1 %791  ;;  %v774_v33 = vmax.f32 %v764_v29, 1e-24 }
 0x23a   : > { %v802_v35 = vmax.f32 %v792_v31, 1e-24 }
 0x23b   : > { %3059 = vrsqrt.f32 %v774_v33  ;;  %v587_v33 = vmul.f32 %v3896_v20, %v3896_v20 }
 0x23c   : > { %3061 = vrsqrt.f32 %v802_v35  ;;  %v767_v36 = vpop.xlane.xlu0 %766 }
 0x23d   : > { %v795_v37 = vpop.xlane.xlu1 %794  ;;  %v775_v38 = vmax.f32 %v767_v36, 1e-24 }
 0x23e   : > { %v803_v39 = vmax.f32 %v795_v37, 1e-24 }
 0x23f   : > { %3063 = vrsqrt.f32 %v775_v38 }
 0x240   : > { %3065 = vrsqrt.f32 %v803_v39  ;;  %v773_v41 = vpop.xlane.xlu0 %772  ;;  %v595_v39 = vsel %vm551_vm0, %v587_v33, 0.0 }
 0x241   : > { %v3056_v42 = vpop.eup %3055  ;;  %v801_v44 = vpop.xlane.xlu1 %800  ;;  %v777_v45 = vmax.f32 %v773_v41, 1e-24 }
 0x242   : > { %v3058_v46 = vpop.eup %3057  ;;  %v805_v47 = vmax.f32 %v801_v44, 1e-24  ;;  %v784_v50 = vmul.f32 %v3056_v42, %v3914_v27 }
 0x243   : > { %3067 = vrsqrt.f32 %v777_v45  ;;  %v812_v51 = vmul.f32 %v3058_v46, %v3916_v30  ;;  %v576_v46 = vstv %s3872_s15 }
 0x244   : > { %3069 = vrsqrt.f32 %v805_v47  ;;  %v832_v52 = vsub.f32 %v784_v50, %v541_v7  ;;  %v554_v3 = vpop.xlane.xlu0 %553  ;;  %v586_v47 = vmul.f32 %v3886_v15, %v3886_v15 }
 0x245   : > { %v3060_v53 = vpop.eup %3059  ;;  %v861_v54 = vsub.f32 %v812_v51, %v545_v4  ;;  %v564_v6 = vmax.f32 %v554_v3, 1e-24 }
 0x246   : > { %v3062_v55 = vpop.eup %3061  ;;  %v836_v56 = vmul.f32 %v832_v52, %v832_v52  ;;  %v782_v57 = vmul.f32 %v3060_v53, %v3918_v32 }
 0x247   : > { %v865_v58 = vmul.f32 %v861_v54, %v861_v54  ;;  %v810_v59 = vmul.f32 %v3062_v55, %v3920_v34  ;;  %3071 = vrsqrt.f32 %v564_v6  ;;  %v592_v55 = vsel %vm551_vm0, %v586_v47, 0.0 }
 0x248   : > { %v844_v60 = vsel %vm761_vm1, %v836_v56, 0.0  ;;  %v830_v61 = vsub.f32 %v782_v57, %v539_v8  ;;  %v560_v26 = vpop.xlane.xlu0 %559 }
 0x249   : > { %v3064_v62 = vpop.eup %3063  ;;  %v873_v27 = vsel %vm761_vm1, %v865_v58, 0.0  ;;  %845 = vadd.xlane.f32.xlu0 %v844_v60  ;;  %v859_v63 = vsub.f32 %v810_v59, %v543_v17  ;;  %v566_v31 = vmax.f32 %v560_v26, 1e-24 }
 0x24a   : > { %v3066_v30 = vpop.eup %3065  ;;  %874 = vadd.xlane.f32.xlu1 %v873_v27  ;;  %v834_v0 = vmul.f32 %v830_v61, %v830_v61  ;;  %v783_v1 = vmul.f32 %v3064_v62, %v3926_v40  ;;  %v557_v40 = vpop.xlane.xlu1 %556 }
 0x24b   : > { %v811_v2 = vmul.f32 %v3066_v30, %v3931_v43  ;;  %v863_v4 = vmul.f32 %v859_v63, %v859_v63  ;;  %v565_v25 = vmax.f32 %v557_v40, 1e-24 }
 0x24c   : > { %v838_v32 = vsel %vm761_vm1, %v834_v0, 0.0  ;;  %v814_v34 = vpack.c.bf16 %v783_v1, %v782_v57 }
 0x24d   : > { %v3068_v7 = vpop.eup %3067  ;;  %839 = vadd.xlane.f32.xlu0 %v838_v32  ;;  %v818_v8 = vpack.c.bf16 %v811_v2, %v810_v59  ;;  %v867_v43 = vsel %vm761_vm1, %v863_v4, 0.0  ;;  %3073 = vrsqrt.f32 %v565_v25  ;;  %v860_v38 = vsub.f32 %v811_v2, %v3981_v22 }
 0x24e   : > { %v3070_v12 = vpop.eup %3069  ;;  %v785_v16 = vmul.f32 %v3068_v7, %v3939_v48  ;;  %816 = vst.msk [vmem:[#allocation4] sm:$0xff] %vm761_vm1, %v814_v34  ;;  %v831_v48 = vsub.f32 %v783_v1, %v3975_v10  ;;  %3075 = vrsqrt.f32 %v566_v31 }
 0x24f   : > { %v813_v17 = vmul.f32 %v3070_v12, %v3941_v49  ;;  %820 = vst.msk [vmem:[#allocation5] sm:$0xff] %vm761_vm1, %v818_v8  ;;  %v864_v44 = vmul.f32 %v860_v38, %v860_v38 }
 0x250   : > { %v815_v23 = vpack.c.bf16 %v785_v16, %v784_v50  ;;  %v833_v24 = vsub.f32 %v785_v16, %v3973_v9  ;;  %v563_v9 = vpop.xlane.xlu1 %562  ;;  %v835_v10 = vmul.f32 %v831_v48, %v831_v48 }
 0x251   : > { %868 = vadd.xlane.f32.xlu0 %v867_v43  ;;  %v819_v28 = vpack.c.bf16 %v813_v17, %v812_v51  ;;  %v862_v29 = vsub.f32 %v813_v17, %v3969_v5  ;;  %v567_v37 = vmax.f32 %v563_v9, 1e-24  ;;  %v3072_v41 = vpop.eup %3071  ;;  %v870_v22 = vsel %vm761_vm1, %v864_v44, 0.0 }
 0x252   : > { %817 = vst.msk [vmem:[#allocation4 + $0x8] sm:$0xff] %vm761_vm1, %v815_v23  ;;  %v837_v49 = vmul.f32 %v833_v24, %v833_v24  ;;  %v841_v42 = vsel %vm761_vm1, %v835_v10, 0.0  ;;  %v572_v45 = vmul.f32 %v3072_v41, %v3880_v11  ;;  %v588_v11 = vmul.f32 %v3898_v21, %v3898_v21 }
 0x253   : > { %821 = vst.msk [vmem:[#allocation5 + $0x8] sm:$0xff] %vm761_vm1, %v819_v28  ;;  %v866_v35 = vmul.f32 %v862_v29, %v862_v29  ;;  %3077 = vrsqrt.f32 %v567_v37 }
 0x254   : > { %v847_v36 = vsel %vm761_vm1, %v837_v49, 0.0  ;;  %v577_v52 = vmul.f32 %v576_v46, %v572_v45  ;;  %v598_v61 = vsel %vm551_vm0, %v588_v11, 0.0 }
 0x255   : > { %v876_v5 = vsel %vm761_vm1, %v866_v35, 0.0  ;;  %848 = vadd.xlane.f32.xlu0 %v847_v36 }
 0x256   : > { %877 = vadd.xlane.f32.xlu1 %v876_v5 }
 0x257   : > { %v3074_v50 = vpop.eup %3073 }
 0x258   : > { %v3076_v51 = vpop.eup %3075  ;;  %v573_v53 = vmul.f32 %v3074_v50, %v3882_v13 }
 0x259   : > { %596 = vadd.xlane.f32.xlu0 %v595_v39  ;;  %v574_v54 = vmul.f32 %v3076_v51, %v3892_v18  ;;  %v3573_v18 = vmov 0.0  }
 0x25a   : > { %842 = vadd.xlane.f32.xlu1 %v841_v42  ;;  %v578_v56 = vmul.f32 %v576_v46, %v573_v53  ;;  %892 = vst.msk [vmem:[#allocation8] sm:$0xff] %vm761_vm1, %v3573_v18  ;;  %893 = vst.msk [vmem:[#allocation8 + $0x8] sm:$0xff] %vm761_vm1, %v3573_v18 }
 0x25b   : > { %v579_v59 = vmul.f32 %v576_v46, %v574_v54  ;;  %894 = vst.msk [vmem:[#allocation8 + $0x10] sm:$0xff] %vm761_vm1, %v3573_v18  ;;  %895 = vst.msk [vmem:[#allocation8 + $0x18] sm:$0xff] %vm761_vm1, %v3573_v18 }
 0x25c   : > { %v581_v58 = vpack.c.bf16 %v578_v56, %v577_v52  ;;  %896 = vst.msk [vmem:[#allocation9] sm:$0xff] %vm761_vm1, %v3573_v18  ;;  %897 = vst.msk [vmem:[#allocation9 + $0x8] sm:$0xff] %vm761_vm1, %v3573_v18 }
 0x25d   : > { %v3078_v57 = vpop.eup %3077  ;;  %898 = vst.msk [vmem:[#allocation9 + $0x10] sm:$0xff] %vm761_vm1, %v3573_v18  ;;  %899 = vst.msk [vmem:[#allocation9 + $0x18] sm:$0xff] %vm761_vm1, %v3573_v18 }
 0x25e   : > { %871 = vadd.xlane.f32.xlu1 %v870_v22  ;;  %v575_v60 = vmul.f32 %v3078_v57, %v3894_v19  ;;  %583 = vst.msk [vmem:[#allocation2] sm:$0xff] %vm551_vm0, %v581_v58  ;;  %v591_v19 = vpop.xlane.xlu0 %590 }
 0x25f   : > { %900 = vst.msk [vmem:[#allocation23] sm:$0x1] %vm890_vm2, %v3573_v18  ;;  %901 = vst.msk [vmem:[#allocation24] sm:$0x1] %vm890_vm2, %v3573_v18  ;;  %v601_v7 = vmax.f32 %v591_v19, 1e-24 }
 0x260   : > { %v580_v13 = vmul.f32 %v576_v46, %v575_v60  ;;  %902 = vst.msk [vmem:[#allocation26] sm:$0x1] %vm890_vm2, %v3573_v18  ;;  %903 = vst.msk [vmem:[#allocation27] sm:$0x1] %vm890_vm2, %v3573_v18 }
 0x261   : > { %904 = vst.msk [vmem:[#allocation30] sm:$0x1] %vm890_vm2, %v3573_v18  ;;  %3079 = vrsqrt.f32 %v601_v7 }
 0x262   : > { %593 = vadd.xlane.f32.xlu1 %v592_v55  ;;  %v582_v62 = vpack.c.bf16 %v580_v13, %v579_v59 }
 0x264   : > { %584 = vst.msk [vmem:[#allocation2 + $0x8] sm:$0xff] %vm551_vm0, %v582_v62 }
 0x266   : > { %599 = vadd.xlane.f32.xlu1 %v598_v61 }
 0x26b   : > { %v3080_v36 = vpop.eup %3079 }
 0x26c   : > { %v609_v41 = vmul.f32 %v3080_v36, %v3884_v14 }
 0x2d6   : > { %v846_v27 = vpop.xlane.xlu0 %845 }
 0x2d7   : > { %v875_v30 = vpop.xlane.xlu1 %874 }
 0x2da   : > { %v840_v63 = vpop.xlane.xlu0 %839 }
 0x2de   : > { %v869_v0 = vpop.xlane.xlu0 %868 }
 0x2e2   : > { %v849_v2 = vpop.xlane.xlu0 %848 }
 0x2e3   : > { %v878_v1 = vpop.xlane.xlu1 %877 }
 0x2e6   : > { %v597_v34 = vpop.xlane.xlu0 %596 }
 0x2e7   : > { %v843_v3 = vpop.xlane.xlu1 %842  ;;  %v603_v16 = vmax.f32 %v597_v34, 1e-24 }
 0x2e8   : > { %v850_v32 = vadd.f32 %v843_v3, %v840_v63 }
 0x2e9   : > { %3081 = vrsqrt.f32 %v603_v16 }
 0x2ea   : > { %v851_v4 = vadd.f32 %v850_v32, %v846_v27 }
 0x2eb   : > { %v872_v6 = vpop.xlane.xlu1 %871 }
 0x2ec   : > { %v852_v8 = vadd.f32 %v851_v4, %v849_v2  ;;  %v879_v12 = vadd.f32 %v872_v6, %v869_v0 }
 0x2ee   : > { %v853_v17 = vrot.slane %v852_v8, 4  ;;  %v880_v40 = vadd.f32 %v879_v12, %v875_v30 }
 0x2ef   : > { %v594_v43 = vpop.xlane.xlu1 %593 }
 0x2f0   : > { %v854_v23 = vadd.f32 %v853_v17, %v852_v8  ;;  %v881_v24 = vadd.f32 %v880_v40, %v878_v1  ;;  %v602_v25 = vmax.f32 %v594_v43, 1e-24 }
 0x2f2   : > { %v855_v26 = vrot.slane %v854_v23, 2  ;;  %v882_v28 = vrot.slane %v881_v24, 4  ;;  %3083 = vrsqrt.f32 %v602_v25 }
 0x2f3   : > { %v600_v29 = vpop.xlane.xlu1 %599  ;;  %v3082_v5 = vpop.eup %3081 }
 0x2f4   : > { %v856_v48 = vadd.f32 %v855_v26, %v854_v23  ;;  %v883_v31 = vadd.f32 %v882_v28, %v881_v24  ;;  %v604_v49 = vmax.f32 %v600_v29, 1e-24  ;;  %v611_v46 = vmul.f32 %v3082_v5, %v3896_v20 }
 0x2f6   : > { %v884_v33 = vrot.slane %v883_v31, 2  ;;  %3085 = vrsqrt.f32 %v604_v49  ;;  %v857_v35 = vrot.slane %v856_v48, 1 }
 0x2f8   : > { %v885_v9 = vadd.f32 %v884_v33, %v883_v31  ;;  %v858_v38 = vadd.f32 %v857_v35, %v856_v48 }
 0x2fa   : > { %v886_v37 = vrot.slane %v885_v9, 1 }
 0x2fc   : > { %v3084_v10 = vpop.eup %3083  ;;  %v887_v39 = vadd.f32 %v886_v37, %v885_v9 }
 0x2fd   : > { %v610_v42 = vmul.f32 %v3084_v10, %v3886_v15 }
 0x2fe   : > { %v888_v44 = vadd.f32 %v887_v39, %v858_v38 }
 0x2ff   : > { %v613_v45 = vpack.c.bf16 %v610_v42, %v609_v41 }
 0x300   : > { %v3086_v47 = vpop.eup %3085  ;;  %v889_v50 = vmul.f32 0.00048828125, %v888_v44 }
 0x301   : > { %615 = vst.msk [vmem:[#allocation3] sm:$0xff] %vm551_vm0, %v613_v45  ;;  %v612_v51 = vmul.f32 %v3086_v47, %v3898_v21 }
 0x302   : > { %891 = vst.msk [vmem:[#allocation29] sm:$0x1] %vm890_vm2, %v889_v50 }
 0x303   : > { %v614_v22 = vpack.c.bf16 %v612_v51, %v611_v46 }
 0x305   : > { %616 = vst.msk [vmem:[#allocation3 + $0x8] sm:$0xff] %vm551_vm0, %v614_v22 }
 0x306 PF: > { %vm938_vm3 = vcmask 261120   ;;  %v989_v14 = vld [vmem:[#allocation2] sm:$0xff]  ;;  %v1245_v15 = vstv %s3872_s15  ;;  %v3574_v53 = vmov 0.0   ;;  %s2686_s19 = sshll.u32 %s3663_s30, 4  ;;  %v990_v55 = vld [vmem:[#allocation2 + $0x8] sm:$0xff]  ;;  %vm3575_vm4 = vmmov 0  }
 0x307   : > { %2800 = vmatprep.subr.bf16.mxu0 %v3574_v53  ;;  %2808 = vmatprep.subr.bf16.mxu1 %v3574_v53  ;;  %v995_v21 = vsel %vm938_vm3, %v989_v14, 0  ;;  %3087 = vrcp.f32 %v1245_v15  ;;  %s906_s13 = sshra.s32 %s2686_s19, 4  ;;  %v4060_v11 = vstv %s3874_s20  ;;  %v998_v57 = vsel %vm938_vm3, %v990_v55, 0  ;;  %v4069_v59 = vld [vmem:[#allocation7] sm:$0xff]  ;;  %v4071_v60 = vld [vmem:[#allocation6] sm:$0xff]  ;;  %v4083_v27 = vld [vmem:[#allocation7 + $0x8] sm:$0xff] }
 0x308   : > { %v936_v52 = vld [vmem:[#allocation3] sm:$0xff]  ;;  %2809 = vmatpush3.bf16.xpose.msra.mxu1 %v995_v21  ;;  %2804 = vmatprep.mubr.msk.bf16.mxu0 %vm3575_vm4, %v3574_v53  ;;  %3089 = vrcp.f32 %v4060_v11  ;;  %s4065_s29 = sshll.u32 %s906_s13, 3  ;;  %vm1043_vm5 = vcmask 523264   ;;  %v4085_v63 = vld [vmem:[#allocation6 + $0x8] sm:$0xff]  ;;  %v1148_v8 = vstv %s3876_s28  ;;  %v4126_v23 = vld [vmem:[#allocation4] sm:$0xff]  ;;  %s1701_s28 = smul.f32 32.0, %s3872_s15 }
 0x309   : > { %v943_v20 = vsel %vm938_vm3, %v936_v52, 0  ;;  %2810 = vmatprep.subr.bf16.mxu1 %v3574_v53  ;;  %2812 = vmatprep.mubr.msk.bf16.mxu1 %vm3575_vm4, %v3574_v53  ;;  %s909_s27 = scalar_lea.vmem [#allocation2], %s4065_s29  ;;  %s912_s16 = scalar_lea.vmem [#allocation3], %s4065_s29  ;;  %v1048_v62 = vsel %vm1043_vm5, %v4069_v59, 0  ;;  %v1100_v18 = vsel %vm1043_vm5, %v4071_v60, 0  ;;  %v1051_v30 = vsel %vm1043_vm5, %v4083_v27, 0 }
 0x30a   : > { %2801 = vmatpush3.bf16.xpose.msra.mxu0 %v943_v20  ;;  %v910_v61 = vld [vmem:[%s909_s27] sm:$0xff]  ;;  %v1103_v0 = vsel %vm1043_vm5, %v4085_v63, 0  ;;  %s921_s26 = scalar_lea.vmem [#allocation6], %s4065_s29  ;;  %s924_s18 = scalar_lea.vmem [#allocation7], %s4065_s29  ;;  %v1252_v43 = vld [vmem:[#allocation5] sm:$0xff]  ;;  %v1313_v28 = vsel %vm1043_vm5, %v4126_v23, 0 }
 0x30b   : > { %2802 = vmatprep.subr.bf16.mxu0 %v3574_v53  ;;  %v4098_v1 = vld [vmem:[%s921_s26] sm:$0xff]  ;;  %s915_s21 = scalar_lea.vmem [#allocation4], %s4065_s29  ;;  %s918_s25 = scalar_lea.vmem [#allocation5], %s4065_s29  ;;  %v1258_v26 = vsel %vm1043_vm5, %v1252_v43, 0  ;;  %v1253_v29 = vld [vmem:[#allocation5 + $0x8] sm:$0xff]  ;;  %v4135_v48 = vld [vmem:[#allocation4 + $0x8] sm:$0xff] }
 0x30c   : > { %v937_v54 = vld [vmem:[#allocation3 + $0x8] sm:$0xff]  ;;  %v913_v13 = vld [vmem:[%s912_s16] sm:$0xff]  ;;  %v1261_v31 = vsel %vm1043_vm5, %v1253_v29, 0  ;;  %v1316_v49 = vsel %vm1043_vm5, %v4135_v48, 0  ;;  %s1705_s23 = smul.f32 32.0, %s3874_s20  ;;  %vm2070_vm8 = vcmask 130048  }
 0x30d   : > { %v946_v56 = vsel %vm938_vm3, %v937_v54, 0  ;;  %v4101_v2 = vld [vmem:[%s924_s18] sm:$0xff]  ;;  %vm1506_vm9 = vcmask 0   ;;  %p2713_p5 = scmp.ne.s32.totalorder %s3663_s30, 1 }
 0x30e   : > { %v4108_v3 = vld [vmem:[%s915_s21] sm:$0xff] }
 0x30f   : > { %v4111_v32 = vld [vmem:[%s918_s25] sm:$0xff]  ;;  %v1146_v4 = vunpack.c.l.bf16 %v4108_v3  ;;  %v1147_v34 = vunpack.c.h.bf16 %v4108_v3 }
 0x310   : > { %2811 = vmatpush3.bf16.xpose.msra.mxu1 %v998_v57  ;;  %v1196_v6 = vunpack.c.l.bf16 %v4111_v32  ;;  %v1197_v7 = vunpack.c.h.bf16 %v4111_v32 }
 0x311   : > { %v3088_v58 = vpop.eup %3087  ;;  %2824 = vmatprep.subr.bf16.mxu1 %v3574_v53  ;;  %v1149_v12 = vmul.f32 %v1148_v8, %v1146_v4  ;;  %v1150_v16 = vmul.f32 %v1148_v8, %v1147_v34 }
 0x312   : > { %2803 = vmatpush3.bf16.xpose.msra.mxu0 %v946_v56  ;;  %2920 = vpush %v3088_v58  ;;  %v3090_v19 = vpop.eup %3089  ;;  %v1198_v17 = vmul.f32 %v1196_v6, %v1148_v8  ;;  %v1199_v40 = vmul.f32 %v1197_v7, %v1148_v8 }
 0x313   : > { %2816 = vmatprep.subr.bf16.mxu0 %v3574_v53  ;;  %2922 = vpush %v3090_v19  ;;  %v1151_v24 = vpack.c.bf16 %v1150_v16, %v1149_v12 }
 0x314   : > { %v1200_v25 = vpack.c.bf16 %v1199_v40, %v1198_v17 }
 0x317   : > { %2813 = vmatmul.mubr.msk.bf16.vlgmr.msra.gmra.mrb[0].mxu1 %vm938_vm3, %v913_v13 }
 0x318   : > { %2825 = vmatpush3.bf16.xpose.msra.mxu1 %v1100_v18  ;;  %2828 = vmatprep.mubr.msk.bf16.mxu1 %vm3575_vm4, %v3574_v53 }
 0x319   : > { %2805 = vmatmul.mubr.msk.bf16.vlgmr.msra.gmra.mrb[0].mxu0 %vm938_vm3, %v910_v61  ;;  %2826 = vmatprep.subr.bf16.mxu1 %v3574_v53 }
 0x31a   : > { %2817 = vmatpush3.bf16.xpose.msra.mxu0 %v1048_v62  ;;  %2820 = vmatprep.mubr.msk.bf16.mxu0 %vm3575_vm4, %v3574_v53 }
 0x31b   : > { %2818 = vmatprep.subr.bf16.mxu0 %v3574_v53 }
 0x320   : > { %2827 = vmatpush3.bf16.xpose.msra.mxu1 %v1103_v0 }
 0x321   : > { %2840 = vmatprep.subr.bf16.mxu1 %v3574_v53 }
 0x322   : > { %2819 = vmatpush3.bf16.xpose.msra.mxu0 %v1051_v30 }
 0x323   : > { %2832 = vmatprep.subr.bf16.mxu0 %v3574_v53 }
 0x327   : > { %2829 = vmatmul.mubr.msk.bf16.vlgmr.msra.gmra.mrb[4].mxu1 %vm1043_vm5, %v4101_v2 }
 0x328   : > { %2841 = vmatpush3.bf16.xpose.msra.mxu1 %v1100_v18  ;;  %2844 = vmatprep.mubr.msk.bf16.mxu1 %vm3575_vm4, %v3574_v53 }
 0x329   : > { %2821 = vmatmul.mubr.msk.bf16.vlgmr.msra.gmra.mrb[4].mxu0 %vm1043_vm5, %v4098_v1  ;;  %2842 = vmatprep.subr.bf16.mxu1 %v3574_v53 }
 0x32a   : > { %2833 = vmatpush3.bf16.xpose.msra.mxu0 %v1048_v62  ;;  %2836 = vmatprep.mubr.msk.bf16.mxu0 %vm3575_vm4, %v3574_v53 }
 0x32b   : > { %2834 = vmatprep.subr.bf16.mxu0 %v3574_v53 }
 0x330   : > { %2843 = vmatpush3.bf16.xpose.msra.mxu1 %v1103_v0 }
 0x331   : > { %2856 = vmatprep.subr.bf16.mxu1 %v3574_v53 }
 0x332   : > { %2835 = vmatpush3.bf16.xpose.msra.mxu0 %v1051_v30 }
 0x333   : > { %2848 = vmatprep.subr.bf16.mxu0 %v3574_v53 }
 0x337   : > { %2845 = vmatmul.mubr.msk.bf16.vlgmr.msra.gmra.mrb[8].mxu1 %vm1043_vm5, %v1200_v25 }
 0x338   : > { %2857 = vmatpush3.bf16.xpose.msra.mxu1 %v1313_v28  ;;  %2860 = vmatprep.mubr.msk.bf16.mxu1 %vm3575_vm4, %v3574_v53 }
 0x339   : > { %2837 = vmatmul.mubr.msk.bf16.vlgmr.msra.gmra.mrb[8].mxu0 %vm1043_vm5, %v1151_v24  ;;  %2858 = vmatprep.subr.bf16.mxu1 %v3574_v53 }
 0x33a   : > { %2849 = vmatpush3.bf16.xpose.msra.mxu0 %v1258_v26  ;;  %2852 = vmatprep.mubr.msk.bf16.mxu0 %vm3575_vm4, %v3574_v53 }
 0x33b   : > { %2850 = vmatprep.subr.bf16.mxu0 %v3574_v53 }
 0x340   : > { %2859 = vmatpush3.bf16.xpose.msra.mxu1 %v1316_v49  ;;  %v1706_v49 = vstv %s1705_s23 }
 0x341   : > { %2872 = vmatprep.subr.bf16.mxu1 %v3574_v53 }
 0x342   : > { %2851 = vmatpush3.bf16.xpose.msra.mxu0 %v1261_v31  ;;  %v1702_v31 = vstv %s1701_s28 }
 0x343   : > { %2864 = vmatprep.subr.bf16.mxu0 %v3574_v53  ;;  %s2921_s17 = spop %2920  ;;  %3091 = vrcp.f32 %v1702_v31 }
 0x344   : > { %v1248_v33 = vstv %s2921_s17  ;;  %s2923_s14 = spop %2922  ;;  %3093 = vrcp.f32 %v1706_v49 }
 0x345   : > { %v1249_v35 = vmul.f32 %v1248_v33, %v1146_v4  ;;  %v1250_v9 = vmul.f32 %v1248_v33, %v1147_v34  ;;  %v1304_v36 = vmul.f32 %v1248_v33, %v1196_v6  ;;  %v1305_v37 = vmul.f32 %v1248_v33, %v1197_v7 }
 0x346   : > { %v1367_v50 = vstv %s2923_s14 }
 0x347   : > { %v1251_v5 = vpack.c.bf16 %v1250_v9, %v1249_v35  ;;  %v1306_v10 = vpack.c.bf16 %v1305_v37, %v1304_v36 }
 0x349   : > { %2853 = vmatmul.mubr.msk.bf16.vlgmr.msra.gmra.mrb[12].mxu0 %vm1043_vm5, %v1251_v5  ;;  %2861 = vmatmul.mubr.msk.bf16.vlgmr.msra.gmra.mrb[12].mxu1 %vm1043_vm5, %v1306_v10 }
 0x34a   : > { %2873 = vmatpush3.bf16.msra.mxu1 %v4069_v59  ;;  %2876 = vmatprep.mubr.msk.bf16.mxu1 %vm3575_vm4, %v3574_v53 }
 0x34b   : > { %2874 = vmatprep.subr.bf16.mxu1 %v3574_v53  ;;  %2865 = vmatpush3.bf16.msra.mxu0 %v1252_v43 }
 0x34c   : > { %2866 = vmatprep.subr.bf16.mxu0 %v3574_v53  ;;  %2868 = vmatprep.mubr.msk.bf16.mxu0 %vm3575_vm4, %v3574_v53 }
 0x34d   : > { %v3092_v33 = vpop.eup %3091 }
 0x34e   : > { %2875 = vmatpush3.bf16.msra.mxu1 %v4083_v27  ;;  %v3094_v35 = vpop.eup %3093  ;;  %2924 = vpush %v3092_v33 }
 0x34f   : > { %2867 = vmatpush3.bf16.msra.mxu0 %v1253_v29  ;;  %2888 = vmatprep.subr.bf16.mxu1 %v3574_v53  ;;  %2926 = vpush %v3094_v35 }
 0x350   : > { %2880 = vmatprep.subr.bf16.mxu0 %v3574_v53 }
 0x37f   : > { %s4252_s15 = spop %2924 }
 0x380   : > { %s2927_s20 = spop %2926 }
 0x3ea   : > { %v4160_v39 = vpop.f32.mrb[0].mxu1 }
 0x3eb   : > { %v2814_v42 = vpop.f32.mrb[1].mxu1 }
 0x3ec   : > { %v4158_v38 = vpop.f32.mrb[0].mxu0  ;;  %v4164_v45 = vpop.f32.mrb[2].mxu1 }
 0x3ed   : > { %v2806_v41 = vpop.f32.mrb[1].mxu0  ;;  %v2815_v47 = vpop.f32.mrb[3].mxu1 }
 0x3ee   : > { %v4162_v44 = vpop.f32.mrb[2].mxu0 }
 0x3ef   : > { %v2807_v46 = vpop.f32.mrb[3].mxu0 }
 0x3fa   : > { %v4168_v22 = vpop.f32.mrb[4].mxu1 }
 0x3fb   : > { %v2830_v14 = vpop.f32.mrb[5].mxu1  ;;  %v1370_v26 = vmul.f32 %v1367_v50, %v4168_v22 }
 0x3fc   : > { %v4166_v51 = vpop.f32.mrb[4].mxu0  ;;  %v4173_v21 = vpop.f32.mrb[6].mxu1 }
 0x3fd   : > { %v2822_v52 = vpop.f32.mrb[5].mxu0  ;;  %v1368_v15 = vmul.f32 %v1367_v50, %v4166_v51  ;;  %v2831_v56 = vpop.f32.mrb[7].mxu1  ;;  %v1371_v16 = vmul.f32 %v1367_v50, %v4173_v21  ;;  %v1798_v29 = vsel %vm938_vm3, %v1370_v26, -inf  ;;  %v4234_v35 = vmul.f32 %v4060_v11, %v4166_v51 }
 0x3fe   : > { %v4171_v20 = vpop.f32.mrb[6].mxu0 }
 0x3ff   : > { %v1369_v54 = vmul.f32 %v1367_v50, %v4171_v20  ;;  %v2823_v55 = vpop.f32.mrb[7].mxu0  ;;  %v1768_v57 = vsel %vm938_vm3, %v1368_v15, -inf  ;;  %v1801_v25 = vsel %vm938_vm3, %v1371_v16, -inf  ;;  %v4226_v31 = vmul.f32 %v4060_v11, %v4171_v20 }
 0x400   : > { %1769 = vmax.xlane.f32.xlu1 %v1768_v57  ;;  %v4242_v20 = vmul.f32 %v4060_v11, %v4168_v22  ;;  %v926_v22 = vlaneseq }
 0x401   : > { %v1771_v58 = vsel %vm938_vm3, %v1369_v54, -inf }
 0x404   : > { %1772 = vmax.xlane.f32.xlu1 %v1771_v58 }
 0x40a   : > { %v4180_v61 = vpop.f32.mrb[8].mxu1 }
 0x40b   : > { %v2846_v62 = vpop.f32.mrb[9].mxu1 }
 0x40c   : > { %v4178_v59 = vpop.f32.mrb[8].mxu0  ;;  %v4184_v19 = vpop.f32.mrb[10].mxu1 }
 0x40d   : > { %v2838_v13 = vpop.f32.mrb[9].mxu0  ;;  %v2847_v30 = vpop.f32.mrb[11].mxu1 }
 0x40e   : > { %v4182_v18 = vpop.f32.mrb[10].mxu0 }
 0x40f   : > { %v2839_v27 = vpop.f32.mrb[11].mxu0 }
 0x41c   : > { %v1297_v0 = vpop.f32.mrb[12].mxu0  ;;  %v1352_v4 = vpop.f32.mrb[12].mxu1 }
 0x41d   : > { %v2854_v34 = vpop.f32.mrb[13].mxu0  ;;  %v2862_v6 = vpop.f32.mrb[13].mxu1  ;;  %v1709_v7 = vsel %vm938_vm3, %v1297_v0, -inf  ;;  %v1739_v28 = vsel %vm938_vm3, %v1352_v4, -inf }
 0x41e   : > { %v1355_v8 = vpop.f32.mrb[14].mxu1  ;;  %1710 = vmax.xlane.f32.xlu0 %v1709_v7  ;;  %v1300_v12 = vpop.f32.mrb[14].mxu0 }
 0x41f   : > { %v2855_v17 = vpop.f32.mrb[15].mxu0  ;;  %v2863_v40 = vpop.f32.mrb[15].mxu1  ;;  %v1742_v43 = vsel %vm938_vm3, %v1355_v8, -inf  ;;  %v1712_v24 = vsel %vm938_vm3, %v1300_v12, -inf }
 0x420   : > { %1743 = vmax.xlane.f32.xlu1 %v1742_v43 }
 0x422   : > { %1713 = vmax.xlane.f32.xlu0 %v1712_v24 }
 0x424   : > { %1802 = vmax.xlane.f32.xlu1 %v1801_v25 }
 0x426   : > { %1740 = vmax.xlane.f32.xlu0 %v1739_v28 }
 0x42a   : > { %1799 = vmax.xlane.f32.xlu0 %v1798_v29 }
 0x48d   : > { %v1770_v9 = vpop.xlane.xlu1 %1769 }
 0x48e   : > { %v1774_v36 = vsub.f32 %v1368_v15, %v1770_v9  ;;  %v1550_v9 = vsel %vm938_vm3, %v4226_v31, -inf }
 0x490   : > { %v1776_v37 = vmul.f32 1.442695, %v1774_v36  ;;  %v1547_v36 = vsel %vm938_vm3, %v4234_v35, -inf }
 0x491   : > { %v1773_v5 = vpop.xlane.xlu1 %1772 }
 0x492   : > { %3095 = vpow2.f32 %v1776_v37  ;;  %v1775_v10 = vsub.f32 %v1369_v54, %v1773_v5  ;;  %v4246_v37 = vmul.f32 %v4060_v11, %v4173_v21  ;;  %v1571_v5 = vsel %vm938_vm3, %v4242_v20, -inf }
 0x493   : > { %v4254_v11 = vstv %s2927_s20 }
 0x494   : > { %v1778_v41 = vmul.f32 1.442695, %v1775_v10  ;;  %v1574_v51 = vsel %vm938_vm3, %v4246_v37, -inf }
 0x496   : > { %3097 = vpow2.f32 %v1778_v41 }
 0x49c   : > { %v4196_v42 = vpop.eup %3095 }
 0x49d   : > { %v1780_v46 = vsel %vm938_vm3, %v4196_v42, 0.0 }
 0x49e   : > { %1781 = vadd.xlane.f32.xlu0 %v1780_v46  ;;  %v927_v46 = vshrl.u32 %v926_v22, 7 }
 0x4a0   : > { %v4200_v47 = vpop.eup %3097 }
 0x4a1   : > { %v1783_v50 = vsel %vm938_vm3, %v4200_v47, 0.0 }
 0x4a2   : > { %1784 = vadd.xlane.f32.xlu1 %v1783_v50 }
 0x4ab   : > { %v1711_v52 = vpop.xlane.xlu0 %1710 }
 0x4ac   : > { %v1715_v14 = vsub.f32 %v1297_v0, %v1711_v52  ;;  %v928_v52 = vadd.s32 8, %v927_v46 }
 0x4ad   : > { %v1744_v15 = vpop.xlane.xlu1 %1743 }
 0x4ae   : > { %v1717_v55 = vmul.f32 1.442695, %v1715_v14  ;;  %v1746_v56 = vsub.f32 %v1355_v8, %v1744_v15  ;;  %v929_v14 = vstv %s2686_s19 }
 0x4af   : > { %v1714_v54 = vpop.xlane.xlu0 %1713 }
 0x4b0   : > { %3099 = vpow2.f32 %v1717_v55  ;;  %v1716_v57 = vsub.f32 %v1300_v12, %v1714_v54  ;;  %v1749_v13 = vmul.f32 1.442695, %v1746_v56  ;;  %v930_v54 = vadd.s32 %v929_v14, %v927_v46 }
 0x4b1   : > { %v1803_v58 = vpop.xlane.xlu1 %1802 }
 0x4b2   : > { %v1719_v62 = vmul.f32 1.442695, %v1716_v57  ;;  %v1805_v27 = vsub.f32 %v1371_v16, %v1803_v58  ;;  %v931_v57 = vadd.s32 %v929_v14, %v928_v52  ;;  %v933_v58 = vand.u32 127, %v926_v22 }
 0x4b3   : > { %v1741_v30 = vpop.xlane.xlu0 %1740 }
 0x4b4   : > { %3101 = vpow2.f32 %v1719_v62  ;;  %v1745_v34 = vsub.f32 %v1352_v4, %v1741_v30  ;;  %v1808_v6 = vmul.f32 1.442695, %v1805_v27  ;;  %vm4264_vm6 = vcmp.eq.s32.totalorder %v930_v54, %v933_v58 }
 0x4b5   : > { %3103 = vpow2.f32 %v1749_v13  ;;  %vm4268_vm7 = vcmp.eq.s32.totalorder %v931_v57, %v933_v58 }
 0x4b6   : > { %v1747_v7 = vmul.f32 1.442695, %v1745_v34 }
 0x4b7   : > { %v1800_v17 = vpop.xlane.xlu0 %1799 }
 0x4b8   : > { %3105 = vpow2.f32 %v1747_v7  ;;  %v1804_v40 = vsub.f32 %v1370_v26, %v1800_v17 }
 0x4b9   : > { %3107 = vpow2.f32 %v1808_v6 }
 0x4ba   : > { %v4204_v0 = vpop.eup %3099  ;;  %v1806_v8 = vmul.f32 1.442695, %v1804_v40 }
 0x4bb   : > { %v1721_v12 = vsel %vm938_vm3, %v4204_v0, 0.0 }
 0x4bc   : > { %3109 = vpow2.f32 %v1806_v8  ;;  %1722 = vadd.xlane.f32.xlu0 %v1721_v12  ;;  %v1729_v12 = vstv %s4252_s15 }
 0x4be   : > { %v4208_v43 = vpop.eup %3101 }
 0x4bf   : > { %v1724_v4 = vsel %vm938_vm3, %v4208_v43, 0.0  ;;  %v4212_v16 = vpop.eup %3103 }
 0x4c0   : > { %1725 = vadd.xlane.f32.xlu1 %v1724_v4  ;;  %v1754_v25 = vsel %vm938_vm3, %v4212_v16, 0.0 }
 0x4c2   : > { %v4214_v24 = vpop.eup %3105 }
 0x4c3   : > { %v1751_v26 = vsel %vm938_vm3, %v4214_v24, 0.0  ;;  %v4220_v28 = vpop.eup %3107 }
 0x4c4   : > { %1755 = vadd.xlane.f32.xlu1 %v1754_v25  ;;  %1752 = vadd.xlane.f32.xlu0 %v1751_v26  ;;  %v1813_v49 = vsel %vm938_vm3, %v4220_v28, 0.0 }
 0x4c6   : > { %v4222_v29 = vpop.eup %3109 }
 0x4c7   : > { %v1810_v33 = vsel %vm938_vm3, %v4222_v29, 0.0 }
 0x4c8   : > { %1814 = vadd.xlane.f32.xlu1 %v1813_v49  ;;  %1811 = vadd.xlane.f32.xlu0 %v1810_v33 }
 0x4cc   : > { %1551 = vmax.xlane.f32.xlu1 %v1550_v9  ;;  %1548 = vmax.xlane.f32.xlu0 %v1547_v36 }
 0x4d0   : > { %1575 = vmax.xlane.f32.xlu1 %v1574_v51  ;;  %1572 = vmax.xlane.f32.xlu0 %v1571_v5 }
 0x52b   : > { %v1782_v10 = vpop.xlane.xlu0 %1781 }
 0x52c   : > { %3111 = vrcp.f32 %v1782_v10 }
 0x52f   : > { %v1785_v41 = vpop.xlane.xlu1 %1784 }
 0x530   : > { %3113 = vrcp.f32 %v1785_v41 }
 0x536   : > { %v3112_v21 = vpop.eup %3111 }
 0x537   : > { %v1789_v50 = vmul.f32 %v3112_v21, %v4254_v11 }
 0x539   : > { %v1791_v15 = vmul.f32 %v4196_v42, %v1789_v50 }
 0x53a   : > { %v3114_v55 = vpop.eup %3113 }
 0x53b   : > { %v1790_v56 = vmul.f32 %v3114_v55, %v4254_v11  ;;  %v1793_v62 = vsub.f32 %v1791_v15, %v4254_v11 }
 0x53d   : > { %v1792_v13 = vmul.f32 %v4200_v47, %v1790_v56  ;;  %v1795_v42 = vsel %vm4264_vm6, %v1793_v62, %v1791_v15 }
 0x53f   : > { %v1794_v27 = vsub.f32 %v1792_v13, %v4254_v11 }
 0x541   : > { %v1796_v6 = vsel %vm4268_vm7, %v1794_v27, %v1792_v13 }
 0x542   : > { %v1797_v47 = vpack.c.bf16 %v1796_v6, %v1795_v42 }
 0x544   : > { %2126 = vxpose.xlu1.c.b16.start.end [1/1] (short) (narrow) %v1797_v47, 32  ;;  %2877 = vmatmul.mubr.msk.bf16.vlgmr.msra.gmra.mrb[16].mxu1 %vm938_vm3, %v1797_v47 }
 0x545   : > { %2889 = vmatpush3.bf16.msra.mxu1 %v4071_v60  ;;  %2892 = vmatprep.mubr.msk.bf16.mxu1 %vm3575_vm4, %v3574_v53 }
 0x546   : > { %2890 = vmatprep.subr.bf16.mxu1 %v3574_v53 }
 0x549   : > { %2891 = vmatpush3.bf16.msra.mxu1 %v4085_v63  ;;  %v1723_v7 = vpop.xlane.xlu0 %1722 }
 0x54a   : > { %2902 = vmatprep.subr.bf16.mxu1 %v4098_v1  ;;  %3115 = vrcp.f32 %v1723_v7  ;;  %v1372_v7 = vsel %vm938_vm3, %v4158_v38, -inf }
 0x54d   : > { %v1726_v17 = vpop.xlane.xlu1 %1725 }
 0x54e   : > { %3117 = vrcp.f32 %v1726_v17 }
 0x551   : > { %v1756_v40 = vpop.xlane.xlu1 %1755  ;;  %v1753_v8 = vpop.xlane.xlu0 %1752 }
 0x552   : > { %3119 = vrcp.f32 %v1756_v40 }
 0x553   : > { %3121 = vrcp.f32 %v1753_v8 }
 0x554   : > { %v3116_v4 = vpop.eup %3115 }
 0x555   : > { %v1815_v60 = vpop.xlane.xlu1 %1814  ;;  %v1812_v25 = vpop.xlane.xlu0 %1811  ;;  %v1730_v26 = vmul.f32 %v3116_v4, %v1729_v12  ;;  %v1396_v4 = vsel %vm938_vm3, %v4160_v39, -inf }
 0x556   : > { %3123 = vrcp.f32 %v1815_v60 }
 0x557   : > { %3125 = vrcp.f32 %v1812_v25  ;;  %v1732_v49 = vmul.f32 %v4204_v0, %v1730_v26  ;;  %v1399_v25 = vsel %vm938_vm3, %v4164_v45, -inf  ;;  %v1420_v26 = vsel %vm938_vm3, %v4178_v59, -inf }
 0x558   : > { %v3118_v63 = vpop.eup %3117 }
 0x559   : > { %v1731_v33 = vmul.f32 %v3118_v63, %v1729_v12  ;;  %v1734_v36 = vsub.f32 %v1732_v49, %v1729_v12  ;;  %v1444_v63 = vsel %vm938_vm3, %v4180_v61, -inf }
 0x55b   : > { %v1733_v9 = vmul.f32 %v4208_v43, %v1731_v33  ;;  %v1736_v46 = vsel %vm4264_vm6, %v1734_v36, %v1732_v49  ;;  %v1423_v49 = vsel %vm938_vm3, %v4182_v18, -inf  ;;  %v1447_v36 = vsel %vm938_vm3, %v4184_v19, -inf }
 0x55c   : > { %v3120_v51 = vpop.eup %3119 }
 0x55d   : > { %v3122_v5 = vpop.eup %3121  ;;  %v1735_v10 = vsub.f32 %v1733_v9, %v1729_v12  ;;  %v1760_v41 = vmul.f32 %v3120_v51, %v1729_v12 }
 0x55e   : > { %v1759_v22 = vmul.f32 %v3122_v5, %v1729_v12 }
 0x55f   : > { %v1737_v21 = vsel %vm4268_vm7, %v1735_v10, %v1733_v9  ;;  %v1762_v50 = vmul.f32 %v4212_v16, %v1760_v41 }
 0x560   : > { %v3124_v52 = vpop.eup %3123  ;;  %v1738_v0 = vpack.c.bf16 %v1737_v21, %v1736_v46  ;;  %v1761_v14 = vmul.f32 %v4214_v24, %v1759_v22 }
 0x561   : > { %v3126_v15 = vpop.eup %3125  ;;  %v1764_v43 = vsub.f32 %v1762_v50, %v1729_v12  ;;  %v1819_v55 = vmul.f32 %v3124_v52, %v4254_v11 }
 0x562   : > { %2054 = vxpose.xlu0.c.b16.start.end [1/1] (short) (narrow) %v1738_v0, 32  ;;  %2869 = vmatmul.mubr.msk.bf16.vlgmr.msra.gmra.mrb[16].mxu0 %vm938_vm3, %v1738_v0  ;;  %v1763_v56 = vsub.f32 %v1761_v14, %v1729_v12  ;;  %v1818_v54 = vmul.f32 %v3126_v15, %v4254_v11  ;;  %v1375_v12 = vsel %vm938_vm3, %v4162_v44, -inf }
 0x563   : > { %2881 = vmatpush3.bf16.msra.mxu0 %v4126_v23  ;;  %v1766_v57 = vsel %vm4268_vm7, %v1764_v43, %v1762_v50  ;;  %2884 = vmatprep.mubr.msk.bf16.mxu0 %vm3575_vm4, %v3574_v53  ;;  %v1821_v16 = vmul.f32 %v4220_v28, %v1819_v55 }
 0x564   : > { %2882 = vmatprep.subr.bf16.mxu0 %v3574_v53  ;;  %v1765_v24 = vsel %vm4264_vm6, %v1763_v56, %v1761_v14  ;;  %v1820_v58 = vmul.f32 %v4222_v29, %v1818_v54  ;;  %v4321_v29 = vpop.xlane.xlu1 %1551 }
 0x565   : > { %v1767_v13 = vpack.c.bf16 %v1766_v57, %v1765_v24  ;;  %v1823_v62 = vsub.f32 %v1821_v16, %v4254_v11  ;;  %v1554_v6 = vsub.f32 %v4226_v31, %v4321_v29 }
 0x566   : > { %v1822_v23 = vsub.f32 %v1820_v58, %v4254_v11 }
 0x567   : > { %2883 = vmatpush3.bf16.msra.mxu0 %v4135_v48  ;;  %2213 = vxpose.xlu0.c.b16.start.end [1/1] (short) (narrow) %v1767_v13, 32  ;;  %v1825_v27 = vsel %vm4268_vm7, %v1823_v62, %v1821_v16  ;;  %v4317_v48 = vpop.xlane.xlu0 %1548  ;;  %v1557_v17 = vmul.f32 1.442695, %v1554_v6 }
 0x568   : > { %v1824_v28 = vsel %vm4264_vm6, %v1822_v23, %v1820_v58  ;;  %2896 = vmatprep.subr.bf16.mxu0 %v4108_v3  ;;  %v1553_v11 = vsub.f32 %v4234_v35, %v4317_v48 }
 0x569   : > { %v1826_v53 = vpack.c.bf16 %v1825_v27, %v1824_v28 }
 0x56a   : > { %2885 = vmatmul.mubr.msk.bf16.vlgmr.msra.gmra.mrb[20].mxu0 %vm938_vm3, %v1767_v13  ;;  %v1555_v47 = vmul.f32 1.442695, %v1553_v11 }
 0x56b   : > { %2284 = vxpose.xlu1.c.b16.start.end [1/1] (short) (narrow) %v1826_v53, 32  ;;  %2893 = vmatmul.mubr.msk.bf16.vlgmr.msra.gmra.mrb[20].mxu1 %vm938_vm3, %v1826_v53  ;;  %v4325_v42 = vpop.xlane.xlu0 %1572 }
 0x56c   : > { %2897 = vmatpush3.bf16.msra.mxu0 %v4108_v3  ;;  %2903 = vmatpush3.bf16.msra.mxu1 %v4098_v1  ;;  %v1577_v1 = vsub.f32 %v4242_v20, %v4325_v42  ;;  %v4331_v3 = vpop.xlane.xlu1 %1575  ;;  %3127 = vpow2.f32 %v1555_v47 }
 0x56d   : > { %2908 = vmatprep.subr.bf16.mxu0 %v4111_v32  ;;  %2914 = vmatprep.subr.bf16.mxu1 %v4101_v2  ;;  %v1578_v40 = vsub.f32 %v4246_v37, %v4331_v3  ;;  %3129 = vpow2.f32 %v1557_v17 }
 0x56e   : > { %v1579_v8 = vmul.f32 1.442695, %v1577_v1 }
 0x56f   : > { %v1581_v60 = vmul.f32 1.442695, %v1578_v40 }
 0x570   : > { %3131 = vpow2.f32 %v1579_v8 }
 0x571   : > { %3133 = vpow2.f32 %v1581_v60 }
 0x576   : > { %v4349_v33 = vpop.eup %3127 }
 0x577   : > { %v4351_v9 = vpop.eup %3129  ;;  %v1559_v51 = vsel %vm938_vm3, %v4349_v33, 0.0 }
 0x578   : > { %1373 = vmax.xlane.f32.xlu0 %v1372_v7  ;;  %v1562_v10 = vsel %vm938_vm3, %v4351_v9, 0.0 }
 0x57a   : > { %v4357_v5 = vpop.eup %3131 }
 0x57b   : > { %v1583_v41 = vsel %vm938_vm3, %v4357_v5, 0.0  ;;  %v4363_v22 = vpop.eup %3133 }
 0x57c   : > { %1376 = vmax.xlane.f32.xlu1 %v1375_v12  ;;  %1397 = vmax.xlane.f32.xlu0 %v1396_v4  ;;  %v1586_v46 = vsel %vm938_vm3, %v4363_v22, 0.0 }
 0x580   : > { %1400 = vmax.xlane.f32.xlu1 %v1399_v25  ;;  %1421 = vmax.xlane.f32.xlu0 %v1420_v26 }
 0x584   : > { %1424 = vmax.xlane.f32.xlu1 %v1423_v49  ;;  %1445 = vmax.xlane.f32.xlu0 %v1444_v63 }
 0x588   : > { %1448 = vmax.xlane.f32.xlu1 %v1447_v36  ;;  %1560 = vadd.xlane.f32.xlu0 %v1559_v51 }
 0x58c   : > { %1563 = vadd.xlane.f32.xlu1 %v1562_v10  ;;  %1584 = vadd.xlane.f32.xlu0 %v1583_v41 }
 0x590   : > { %1587 = vadd.xlane.f32.xlu1 %v1586_v46 }
 0x5aa   : > { %v2134_v21 = vpop.trf.xlu1 }
 0x5ab   : > { %2904 = vmatprep.mubr.msk.bf16.mxu1 %vm2070_vm8, %v2134_v21 }
 0x5ae   : > { %v2135_v50 = vpop.trf.xlu1 }
 0x5af   : > { %2905 = vmatmul.mubr.msk.bf16.vlgmr.msra.gmra.mrb[24].mxu1 %vm2070_vm8, %v2135_v50 }
 0x5b0   : > { %2915 = vmatpush3.bf16.msra.mxu1 %v4101_v2 }
 0x5c8   : > { %v2062_v52 = vpop.trf.xlu0 }
 0x5c9   : > { %2898 = vmatprep.mubr.msk.bf16.mxu0 %vm2070_vm8, %v2062_v52 }
 0x5cc   : > { %v2063_v0 = vpop.trf.xlu0 }
 0x5cd   : > { %2899 = vmatmul.mubr.msk.bf16.vlgmr.msra.gmra.mrb[24].mxu0 %vm2070_vm8, %v2063_v0 }
 0x5ce   : > { %2909 = vmatpush3.bf16.msra.mxu0 %v4111_v32 }
 0x5d0   : > { %v2221_v14 = vpop.trf.xlu0 }
 0x5d1   : > { %v2292_v15 = vpop.trf.xlu1  ;;  %2910 = vmatprep.mubr.msk.bf16.mxu0 %vm2070_vm8, %v2221_v14 }
 0x5d2   : > { %2916 = vmatprep.mubr.msk.bf16.mxu1 %vm2070_vm8, %v2292_v15 }
 0x5d4   : > { %v2222_v43 = vpop.trf.xlu0 }
 0x5d5   : > { %v2293_v55 = vpop.trf.xlu1  ;;  %2911 = vmatmul.mubr.msk.bf16.vlgmr.msra.gmra.mrb[28].mxu0 %vm2070_vm8, %v2222_v43 }
 0x5d6   : > { %2917 = vmatmul.mubr.msk.bf16.vlgmr.msra.gmra.mrb[28].mxu1 %vm2070_vm8, %v2293_v55 }
 0x605   : > { %v4377_v2 = vpop.xlane.xlu0 %1373 }
 0x606   : > { %v1378_v56 = vsub.f32 %v4158_v38, %v4377_v2 }
 0x608   : > { %v1380_v54 = vmul.f32 1.442695, %v1378_v56 }
 0x609   : > { %v4381_v57 = vpop.xlane.xlu1 %1376  ;;  %v4383_v32 = vpop.xlane.xlu0 %1397 }
 0x60a   : > { %3135 = vpow2.f32 %v1380_v54  ;;  %v1379_v16 = vsub.f32 %v4162_v44, %v4381_v57  ;;  %v1402_v24 = vsub.f32 %v4160_v39, %v4383_v32 }
 0x60c   : > { %v1382_v58 = vmul.f32 1.442695, %v1379_v16  ;;  %v1404_v13 = vmul.f32 1.442695, %v1402_v24 }
 0x60d   : > { %v4389_v62 = vpop.xlane.xlu1 %1400  ;;  %v4391_v23 = vpop.xlane.xlu0 %1421 }
 0x60e   : > { %3137 = vpow2.f32 %v1382_v58  ;;  %v1403_v27 = vsub.f32 %v4164_v45, %v4389_v62  ;;  %v1426_v28 = vsub.f32 %v4178_v59, %v4391_v23 }
 0x60f   : > { %3139 = vpow2.f32 %v1404_v13 }
 0x610   : > { %v1406_v53 = vmul.f32 1.442695, %v1403_v27  ;;  %v1428_v11 = vmul.f32 1.442695, %v1426_v28  ;;  %v1608_v28 = vsub.f32 %v4234_v35, %v4158_v38 }
 0x611   : > { %v4397_v6 = vpop.xlane.xlu1 %1424  ;;  %v4399_v47 = vpop.xlane.xlu0 %1445 }
 0x612   : > { %3141 = vpow2.f32 %v1406_v53  ;;  %v1427_v1 = vsub.f32 %v4182_v18, %v4397_v6  ;;  %v1450_v7 = vsub.f32 %v4180_v61, %v4399_v47 }
 0x613   : > { %3143 = vpow2.f32 %v1428_v11 }
 0x614   : > { %v3136_v17 = vpop.eup %3135  ;;  %v1430_v40 = vmul.f32 1.442695, %v1427_v1  ;;  %v1452_v8 = vmul.f32 1.442695, %v1450_v7 }
 0x615   : > { %v4405_v12 = vpop.xlane.xlu1 %1448  ;;  %v4407_v4 = vpop.xlane.xlu0 %1560  ;;  %v1384_v60 = vsel %vm938_vm3, %v3136_v17, 0.0  ;;  %v1609_v17 = vsub.f32 %v4226_v31, %v4162_v44 }
 0x616   : > { %3145 = vpow2.f32 %v1430_v40  ;;  %v1451_v25 = vsub.f32 %v4184_v19, %v4405_v12  ;;  %1385 = vadd.xlane.f32.xlu0 %v1384_v60 }
 0x617   : > { %v4412_v26 = vpop.f32.mrb[16].mxu1  ;;  %3147 = vpow2.f32 %v1452_v8 }
 0x618   : > { %v2878_v49 = vpop.f32.mrb[17].mxu1  ;;  %v3138_v63 = vpop.eup %3137  ;;  %v1454_v36 = vmul.f32 1.442695, %v1451_v25  ;;  %3149 = vrcp.f32 %v4407_v4  ;;  %v1629_v25 = vsub.f32 %v4242_v20, %v4160_v39 }
 0x619   : > { %v4414_v51 = vpop.f32.mrb[18].mxu1  ;;  %v3140_v10 = vpop.eup %3139  ;;  %v1387_v21 = vsel %vm938_vm3, %v3138_v63, 0.0  ;;  %v1630_v63 = vsub.f32 %v4246_v37, %v4164_v45 }
 0x61a   : > { %v2879_v41 = vpop.f32.mrb[19].mxu1  ;;  %v4417_v46 = vpop.xlane.xlu1 %1563  ;;  %3151 = vpow2.f32 %v1454_v36  ;;  %1388 = vadd.xlane.f32.xlu1 %v1387_v21  ;;  %v1408_v50 = vsel %vm938_vm3, %v3140_v10, 0.0 }
 0x61b   : > { %v4421_v52 = vpop.xlane.xlu0 %1584  ;;  %1409 = vadd.xlane.f32.xlu0 %v1408_v50  ;;  %3153 = vrcp.f32 %v4417_v46  ;;  %v1655_v41 = vsub.f32 %v4234_v35, %v4178_v59  ;;  %v1677_v35 = vsub.f32 %v4246_v37, %v4184_v19 }
 0x61c   : > { %v3142_v0 = vpop.eup %3141  ;;  %3155 = vrcp.f32 %v4421_v52 }
 0x61d   : > { %v3144_v14 = vpop.eup %3143  ;;  %v1411_v43 = vsel %vm938_vm3, %v3142_v0, 0.0  ;;  %v1656_v0 = vsub.f32 %v4226_v31, %v4182_v18 }
 0x61e   : > { %v4424_v15 = vpop.xlane.xlu1 %1587  ;;  %1412 = vadd.xlane.f32.xlu1 %v1411_v43  ;;  %v1432_v55 = vsel %vm938_vm3, %v3144_v14, 0.0 }
 0x61f   : > { %1433 = vadd.xlane.f32.xlu0 %v1432_v55  ;;  %3157 = vrcp.f32 %v4424_v15  ;;  %v1676_v55 = vsub.f32 %v4242_v20, %v4180_v61  ;;  %v1469_v20 = vsel %vm4264_vm6, %v4158_v38, 0.0 }
 0x620   : > { %v3146_v56 = vpop.eup %3145  ;;  %3159 = vlog2.f32 %v4407_v4  ;;  %v2211_v4 = vld [vmem:[#allocation9 + $0x10] sm:$0xff] }
 0x621   : > { %v3148_v54 = vpop.eup %3147  ;;  %v1435_v16 = vsel %vm938_vm3, %v3146_v56, 0.0  ;;  %3161 = vlog2.f32 %v4417_v46  ;;  %v2209_v46 = vld [vmem:[#allocation9] sm:$0xff] }
 0x622   : > { %1436 = vadd.xlane.f32.xlu1 %v1435_v16  ;;  %v1456_v24 = vsel %vm938_vm3, %v3148_v54, 0.0  ;;  %v3150_v58 = vpop.eup %3149  ;;  %3163 = vlog2.f32 %v4421_v52 }
 0x623   : > { %1457 = vadd.xlane.f32.xlu0 %v1456_v24  ;;  %v1599_v27 = vmul.f32 %v3150_v58, %v4349_v33 }
 0x624   : > { %v3152_v13 = vpop.eup %3151 }
 0x625   : > { %v1459_v53 = vsel %vm938_vm3, %v3152_v13, 0.0  ;;  %v3154_v11 = vpop.eup %3153  ;;  %v1610_v1 = vmul.f32 %v1608_v28, %v1599_v27 }
 0x626   : > { %1460 = vadd.xlane.f32.xlu1 %v1459_v53  ;;  %v1600_v7 = vmul.f32 %v3154_v11, %v4351_v9  ;;  %v3156_v40 = vpop.eup %3155  ;;  %v1470_v11 = vsel %vm4268_vm7, %v4162_v44, 0.0  ;;  %v1509_v44 = vsel %vm4264_vm6, %v4178_v59, 0.0  ;;  %v1526_v59 = vsel %vm4264_vm6, %v4180_v61, 0.0 }
 0x627   : > { %v1612_v8 = vsel %vm938_vm3, %v1610_v1, 0.0  ;;  %v1605_v33 = vmul.f32 %v3156_v40, %v4357_v5  ;;  %v1657_v5 = vmul.f32 %v1655_v41, %v1599_v27  ;;  %v1471_v1 = vsel %vm938_vm3, %v1469_v20, 0.0 }
 0x628   : > { %1613 = vadd.xlane.f32.xlu0 %v1612_v8  ;;  %v1611_v60 = vmul.f32 %v1609_v17, %v1600_v7  ;;  %v1658_v43 = vmul.f32 %v1656_v0, %v1600_v7  ;;  %v1474_v38 = vsel %vm938_vm3, %v1470_v11, 0.0  ;;  %v1487_v7 = vsel %vm4268_vm7, %v4164_v45, 0.0 }
 0x629   : > { %v3158_v49 = vpop.eup %3157  ;;  %v1631_v9 = vmul.f32 %v1629_v25, %v1605_v33  ;;  %v1678_v56 = vmul.f32 %v1676_v55, %v1605_v33  ;;  %v1510_v45 = vsel %vm4268_vm7, %v4182_v18, 0.0 }
 0x62a   : > { %v1615_v36 = vsel %vm938_vm3, %v1611_v60, 0.0  ;;  %v1606_v10 = vmul.f32 %v3158_v49, %v4363_v22  ;;  %v1659_v22 = vsel %vm938_vm3, %v1657_v5, 0.0  ;;  %v1662_v54 = vsel %vm938_vm3, %v1658_v43, 0.0 }
 0x62b   : > { %1616 = vadd.xlane.f32.xlu1 %v1615_v36  ;;  %v1633_v21 = vsel %vm938_vm3, %v1631_v9, 0.0  ;;  %v1680_v31 = vsel %vm938_vm3, %v1678_v56, 0.0  ;;  %v1491_v60 = vsel %vm938_vm3, %v1487_v7, 0.0  ;;  %v1511_v36 = vsel %vm938_vm3, %v1509_v44, 0.0 }
 0x62c   : > { %v1632_v50 = vmul.f32 %v1630_v63, %v1606_v10  ;;  %1634 = vadd.xlane.f32.xlu0 %v1633_v21  ;;  %v1679_v16 = vmul.f32 %v1677_v35, %v1606_v10  ;;  %v1514_v41 = vsel %vm938_vm3, %v1510_v45, 0.0  ;;  %v1527_v21 = vsel %vm4268_vm7, %v4184_v19, 0.0  ;;  %v2212_v45 = vld [vmem:[#allocation9 + $0x18] sm:$0xff] }
 0x62d   : > { %v1528_v5 = vsel %vm938_vm3, %v1526_v59, 0.0  ;;  %v1531_v0 = vsel %vm938_vm3, %v1527_v21, 0.0  ;;  %v2210_v21 = vld [vmem:[#allocation9 + $0x8] sm:$0xff] }
 0x62e   : > { %v1636_v14 = vsel %vm938_vm3, %v1632_v50, 0.0  ;;  %v1683_v27 = vsel %vm938_vm3, %v1679_v16, 0.0  ;;  %v2052_v16 = vld [vmem:[#allocation8 + $0x10] sm:$0xff] }
 0x62f   : > { %1637 = vadd.xlane.f32.xlu1 %v1636_v14 }
 0x630   : > { %1660 = vadd.xlane.f32.xlu0 %v1659_v22 }
 0x633   : > { %1663 = vadd.xlane.f32.xlu1 %v1662_v54 }
 0x634   : > { %1681 = vadd.xlane.f32.xlu0 %v1680_v31 }
 0x635   : > { %v1866_v24 = vpop.f32.mrb[16].mxu0 }
 0x636   : > { %v1919_v58 = vsub.f32 %v1866_v24, %v4412_v26  ;;  %v2870_v13 = vpop.f32.mrb[17].mxu0  ;;  %v1486_v26 = vsel %vm4264_vm6, %v4160_v39, 0.0 }
 0x637   : > { %v1869_v28 = vpop.f32.mrb[18].mxu0  ;;  %1684 = vadd.xlane.f32.xlu1 %v1683_v27  ;;  %v2053_v13 = vld [vmem:[#allocation8 + $0x18] sm:$0xff] }
 0x638   : > { %v1920_v37 = vsub.f32 %v1869_v28, %v4414_v51  ;;  %v2871_v53 = vpop.f32.mrb[19].mxu0  ;;  %1472 = vadd.xlane.f32.xlu0 %v1471_v1  ;;  %v1488_v51 = vsel %vm938_vm3, %v1486_v26, 0.0  ;;  %v2016_v50 = vmul.f32 %v1919_v58, %v1919_v58  ;;  %v2050_v58 = vld [vmem:[#allocation8] sm:$0xff]  ;;  %v2051_v1 = vld [vmem:[#allocation8 + $0x8] sm:$0xff] }
 0x63a   : > { %v2017_v18 = vmul.f32 %v1920_v37, %v1920_v37  ;;  %v2018_v43 = vsel %vm1043_vm5, %v2016_v50, 0.0 }
 0x63b   : > { %1475 = vadd.xlane.f32.xlu1 %v1474_v38 }
 0x63c   : > { %1489 = vadd.xlane.f32.xlu0 %v1488_v51  ;;  %v2021_v30 = vsel %vm1043_vm5, %v2017_v18, 0.0 }
 0x63d   : > { %v1960_v17 = vpop.f32.mrb[20].mxu0 }
 0x63e   : > { %v2006_v40 = vpop.f32.mrb[20].mxu1  ;;  %v2886_v8 = vpop.f32.mrb[21].mxu0 }
 0x63f   : > { %v2013_v39 = vsub.f32 %v1960_v17, %v2006_v40  ;;  %v2894_v33 = vpop.f32.mrb[21].mxu1  ;;  %v1963_v25 = vpop.f32.mrb[22].mxu0  ;;  %1492 = vadd.xlane.f32.xlu1 %v1491_v60 }
 0x640   : > { %v2009_v49 = vpop.f32.mrb[22].mxu1  ;;  %v2887_v63 = vpop.f32.mrb[23].mxu0  ;;  %1512 = vadd.xlane.f32.xlu0 %v1511_v36 }
 0x641   : > { %v2014_v9 = vsub.f32 %v1963_v25, %v2009_v49  ;;  %v2895_v10 = vpop.f32.mrb[23].mxu1  ;;  %v2031_v14 = vmul.f32 %v2013_v39, %v2013_v39 }
 0x643   : > { %1515 = vadd.xlane.f32.xlu1 %v1514_v41  ;;  %v2032_v61 = vmul.f32 %v2014_v9, %v2014_v9  ;;  %v2033_v55 = vsel %vm1043_vm5, %v2031_v14, 0.0 }
 0x644   : > { %1529 = vadd.xlane.f32.xlu0 %v1528_v5 }
 0x645   : > { %v2036_v19 = vsel %vm1043_vm5, %v2032_v61, 0.0 }
 0x647   : > { %1532 = vadd.xlane.f32.xlu1 %v1531_v0  ;;  %v3160_v0 = vpop.eup %3159 }
 0x648   : > { %2019 = vadd.xlane.f32.xlu0 %v2018_v43 }
 0x64b   : > { %2022 = vadd.xlane.f32.xlu1 %v2021_v30 }
 0x64c   : > { %2034 = vadd.xlane.f32.xlu0 %v2033_v55 }
 0x64f   : > { %2037 = vadd.xlane.f32.xlu1 %v2036_v19  ;;  %v1566_v19 = vmul.f32 0.6931472, %v3160_v0 }
 0x682   : > { %v2906_v34 = vpop.f32.mrb[24].mxu1 }
 0x683   : > { %v2182_v22 = vpop.f32.mrb[25].mxu1 }
 0x684   : > { %v2907_v56 = vpop.f32.mrb[26].mxu1 }
 0x685   : > { %v2185_v35 = vpop.f32.mrb[27].mxu1 }
 0x6a0   : > { %v2900_v54 = vpop.f32.mrb[24].mxu0 }
 0x6a1   : > { %v2199_v31 = vsub.f32 %v2900_v54, %v2906_v34  ;;  %v2111_v24 = vpop.f32.mrb[25].mxu0 }
 0x6a2   : > { %v2197_v20 = vsub.f32 %v2111_v24, %v2182_v22  ;;  %v2901_v27 = vpop.f32.mrb[26].mxu0 }
 0x6a3   : > { %v1386_v28 = vpop.xlane.xlu0 %1385  ;;  %v2203_v37 = vadd.f32 %v2199_v31, %v2052_v16  ;;  %v2200_v53 = vsub.f32 %v2901_v27, %v2907_v56  ;;  %v2114_v11 = vpop.f32.mrb[27].mxu0 }
 0x6a4   : > { %v2201_v26 = vadd.f32 %v2197_v20, %v2050_v58  ;;  %v2198_v38 = vsub.f32 %v2114_v11, %v2185_v35  ;;  %3165 = vlog2.f32 %v1386_v28  ;;  %v1569_v58 = vadd.f32 %v1566_v19, %v4317_v48 }
 0x6a5   : > { %2207 = vst.msk [vmem:[#allocation8 + $0x10] sm:$0xff] %vm1043_vm5, %v2203_v37  ;;  %v2204_v7 = vadd.f32 %v2200_v53, %v2053_v13 }
 0x6a6   : > { %2205 = vst.msk [vmem:[#allocation8] sm:$0xff] %vm1043_vm5, %v2201_v26  ;;  %v2202_v51 = vadd.f32 %v2198_v38, %v2051_v1 }
 0x6a7   : > { %v1389_v17 = vpop.xlane.xlu1 %1388  ;;  %2208 = vst.msk [vmem:[#allocation8 + $0x18] sm:$0xff] %vm1043_vm5, %v2204_v7 }
 0x6a8   : > { %v1410_v40 = vpop.xlane.xlu0 %1409  ;;  %2206 = vst.msk [vmem:[#allocation8 + $0x8] sm:$0xff] %vm1043_vm5, %v2202_v51  ;;  %v2912_v44 = vpop.f32.mrb[28].mxu0  ;;  %3167 = vlog2.f32 %v1389_v17 }
 0x6a9   : > { %v2918_v8 = vpop.f32.mrb[28].mxu1  ;;  %v2269_v60 = vpop.f32.mrb[29].mxu0  ;;  %3169 = vlog2.f32 %v4424_v15 }
 0x6aa   : > { %v2357_v39 = vsub.f32 %v2912_v44, %v2918_v8  ;;  %v2340_v33 = vpop.f32.mrb[29].mxu1  ;;  %v2913_v25 = vpop.f32.mrb[30].mxu0  ;;  %3171 = vlog2.f32 %v1410_v40 }
 0x6ab   : > { %v1413_v49 = vpop.xlane.xlu1 %1412  ;;  %v2355_v52 = vsub.f32 %v2269_v60, %v2340_v33  ;;  %v2919_v63 = vpop.f32.mrb[30].mxu1 }
 0x6ac   : > { %v1434_v36 = vpop.xlane.xlu0 %1433  ;;  %v2361_v9 = vadd.f32 %v2357_v39, %v2211_v4  ;;  %v2358_v10 = vsub.f32 %v2913_v25, %v2919_v63  ;;  %v2272_v59 = vpop.f32.mrb[31].mxu0  ;;  %3173 = vlog2.f32 %v1413_v49 }
 0x6ad   : > { %v2359_v41 = vadd.f32 %v2355_v52, %v2209_v46  ;;  %v2343_v50 = vpop.f32.mrb[31].mxu1  ;;  %v3162_v15 = vpop.eup %3161  ;;  %3175 = vlog2.f32 %v1434_v36 }
 0x6ae   : > { %2365 = vst.msk [vmem:[#allocation9 + $0x10] sm:$0xff] %vm1043_vm5, %v2361_v9  ;;  %v2362_v5 = vadd.f32 %v2358_v10, %v2212_v45  ;;  %v2356_v18 = vsub.f32 %v2272_v59, %v2343_v50  ;;  %v3164_v30 = vpop.eup %3163  ;;  %v1568_v56 = vmul.f32 0.6931472, %v3162_v15 }
 0x6af   : > { %v1437_v14 = vpop.xlane.xlu1 %1436  ;;  %2363 = vst.msk [vmem:[#allocation9] sm:$0xff] %vm1043_vm5, %v2359_v41  ;;  %v3166_v55 = vpop.eup %3165  ;;  %v1590_v54 = vmul.f32 0.6931472, %v3164_v30 }
 0x6b0   : > { %v1458_v43 = vpop.xlane.xlu0 %1457  ;;  %2366 = vst.msk [vmem:[#allocation9 + $0x18] sm:$0xff] %vm1043_vm5, %v2362_v5  ;;  %v2360_v61 = vadd.f32 %v2356_v18, %v2210_v21  ;;  %3177 = vlog2.f32 %v1437_v14  ;;  %v1391_v31 = vmul.f32 0.6931472, %v3166_v55  ;;  %v1570_v28 = vadd.f32 %v1568_v56, %v4321_v29 }
 0x6b1   : > { %3179 = vlog2.f32 %v1458_v43  ;;  %v1593_v1 = vadd.f32 %v1590_v54, %v4325_v42 }
 0x6b2   : > { %2364 = vst.msk [vmem:[#allocation9 + $0x8] sm:$0xff] %vm1043_vm5, %v2360_v61  ;;  %v3168_v34 = vpop.eup %3167  ;;  %v1394_v7 = vadd.f32 %v1391_v31, %v4377_v2 }
 0x6b3   : > { %v1461_v22 = vpop.xlane.xlu1 %1460  ;;  %v3170_v35 = vpop.eup %3169  ;;  %v1393_v24 = vmul.f32 0.6931472, %v3168_v34 }
 0x6b4   : > { %v3172_v16 = vpop.eup %3171  ;;  %3181 = vlog2.f32 %v1461_v22  ;;  %v1592_v37 = vmul.f32 0.6931472, %v3170_v35 }
 0x6b5   : > { %v1614_v20 = vpop.xlane.xlu0 %1613  ;;  %v1415_v53 = vmul.f32 0.6931472, %v3172_v16  ;;  %v1395_v51 = vadd.f32 %v1393_v24, %v4381_v57 }
 0x6b6   : > { %v3174_v13 = vpop.eup %3173  ;;  %v1618_v27 = vsub.f32 %v1614_v20, %v1569_v58  ;;  %v1594_v60 = vadd.f32 %v1592_v37, %v4331_v3 }
 0x6b7   : > { %v3176_v26 = vpop.eup %3175  ;;  %v1417_v38 = vmul.f32 0.6931472, %v3174_v13  ;;  %v4518_v39 = vadd.f32 %v1415_v53, %v4383_v32 }
 0x6b8   : > { %v1617_v11 = vpop.xlane.xlu1 %1616  ;;  %v1620_v48 = vadd.f32 %v1618_v27, %v1394_v7  ;;  %v1439_v29 = vmul.f32 0.6931472, %v3176_v26 }
 0x6b9   : > { %v1619_v17 = vsub.f32 %v1617_v11, %v1570_v28  ;;  %v1635_v44 = vpop.xlane.xlu0 %1634  ;;  %v1419_v25 = vadd.f32 %v1417_v38, %v4389_v62 }
 0x6ba   : > { %v3178_v40 = vpop.eup %3177  ;;  %v1639_v8 = vsub.f32 %v1635_v44, %v1593_v1  ;;  %v4523_v3 = vadd.f32 %v1439_v29, %v4391_v23 }
 0x6bb   : > { %v1621_v4 = vadd.f32 %v1619_v17, %v1395_v51  ;;  %v1441_v42 = vmul.f32 0.6931472, %v3178_v40  ;;  %v3180_v49 = vpop.eup %3179 }
 0x6bc   : > { %v1638_v33 = vpop.xlane.xlu1 %1637  ;;  %v1641_v45 = vadd.f32 %v1639_v8, %v4518_v39  ;;  %v1463_v62 = vmul.f32 0.6931472, %v3180_v49 }
 0x6bd   : > { %v1622_v46 = vadd.f32 %v1621_v4, %v1620_v48  ;;  %v1640_v2 = vsub.f32 %v1638_v33, %v1594_v60  ;;  %v1661_v57 = vpop.xlane.xlu0 %1660  ;;  %v4526_v41 = vadd.f32 %v1441_v42, %v4397_v6 }
 0x6be   : > { %v3182_v52 = vpop.eup %3181  ;;  %v1665_v9 = vsub.f32 %v1661_v57, %v1569_v58  ;;  %v1466_v19 = vadd.f32 %v1463_v62, %v4399_v47 }
 0x6bf   : > { %v1623_v63 = vrot.slane %v1622_v46, 4  ;;  %v1642_v36 = vadd.f32 %v1640_v2, %v1419_v25  ;;  %v1465_v50 = vmul.f32 0.6931472, %v3182_v52 }
 0x6c0   : > { %v1664_v10 = vpop.xlane.xlu1 %1663  ;;  %v1667_v14 = vadd.f32 %v1665_v9, %v4523_v3 }
 0x6c1   : > { %v1624_v32 = vadd.f32 %v1623_v63, %v1622_v46  ;;  %v1643_v59 = vadd.f32 %v1642_v36, %v1641_v45  ;;  %v1666_v21 = vsub.f32 %v1664_v10, %v1570_v28  ;;  %v1682_v5 = vpop.xlane.xlu0 %1681  ;;  %v1467_v6 = vadd.f32 %v1465_v50, %v4405_v12 }
 0x6c2   : > { %v1686_v43 = vsub.f32 %v1682_v5, %v1593_v1 }
 0x6c3   : > { %v1625_v18 = vrot.slane %v1624_v32, 2  ;;  %v1644_v0 = vrot.slane %v1643_v59, 4  ;;  %v1668_v15 = vadd.f32 %v1666_v21, %v4526_v41 }
 0x6c4   : > { %v1685_v61 = vpop.xlane.xlu1 %1684  ;;  %v1688_v16 = vadd.f32 %v1686_v43, %v1466_v19 }
 0x6c5   : > { %v1626_v23 = vadd.f32 %v1625_v18, %v1624_v32  ;;  %v1645_v30 = vadd.f32 %v1644_v0, %v1643_v59  ;;  %v1669_v55 = vadd.f32 %v1668_v15, %v1667_v14  ;;  %v1687_v34 = vsub.f32 %v1685_v61, %v1594_v60  ;;  %v1473_v22 = vpop.xlane.xlu0 %1472 }
 0x6c6   : > { %v1477_v13 = vsub.f32 %v1394_v7, %v1473_v22 }
 0x6c7   : > { %v1646_v56 = vrot.slane %v1645_v30, 2  ;;  %v1670_v35 = vrot.slane %v1669_v55, 4  ;;  %v1627_v54 = vrot.slane %v1626_v23, 1  ;;  %v1689_v31 = vadd.f32 %v1687_v34, %v1467_v6 }
 0x6c8   : > { %v1476_v24 = vpop.xlane.xlu1 %1475 }
 0x6c9   : > { %v1647_v58 = vadd.f32 %v1646_v56, %v1645_v30  ;;  %v1671_v20 = vadd.f32 %v1670_v35, %v1669_v55  ;;  %v1478_v27 = vsub.f32 %v1395_v51, %v1476_v24  ;;  %v1690_v28 = vadd.f32 %v1689_v31, %v1688_v16  ;;  %v1490_v37 = vpop.xlane.xlu0 %1489  ;;  %v1607_v51 = vld [vmem:[#allocation26] sm:$0x1]  ;;  %v1654_v30 = vld [vmem:[#allocation27] sm:$0x1] }
 0x6ca   : > { %v1628_v47 = vadd.f32 %v1627_v54, %v1626_v23  ;;  %v1494_v40 = vsub.f32 %v4518_v39, %v1490_v37 }
 0x6cb   : > { %v1648_v53 = vrot.slane %v1647_v58, 1  ;;  %v1672_v11 = vrot.slane %v1671_v20, 2  ;;  %v1479_v1 = vadd.f32 %v1478_v27, %v1477_v13  ;;  %v1691_v26 = vrot.slane %v1690_v28, 4 }
 0x6cc   : > { %v1493_v12 = vpop.xlane.xlu1 %1492 }
 0x6cd   : > { %v1649_v38 = vadd.f32 %v1648_v53, %v1647_v58  ;;  %v1480_v17 = vrot.slane %v1479_v1, 4  ;;  %v1495_v44 = vsub.f32 %v1419_v25, %v1493_v12  ;;  %v1673_v48 = vadd.f32 %v1672_v11, %v1671_v20  ;;  %v1513_v8 = vpop.xlane.xlu0 %1512  ;;  %v1468_v53 = vld [vmem:[#allocation23] sm:$0x1] }
 0x6ce   : > { %v1692_v4 = vadd.f32 %v1691_v26, %v1690_v28  ;;  %v1517_v63 = vsub.f32 %v4523_v3, %v1513_v8 }
 0x6cf   : > { %v1650_v60 = vadd.f32 %v1649_v38, %v1628_v47  ;;  %v1481_v29 = vadd.f32 %v1480_v17, %v1479_v1  ;;  %v1496_v7 = vadd.f32 %v1495_v44, %v1494_v40  ;;  %v1674_v57 = vrot.slane %v1673_v48, 1 }
 0x6d0   : > { %v1693_v33 = vrot.slane %v1692_v4, 2  ;;  %v1516_v42 = vpop.xlane.xlu1 %1515 }
 0x6d1   : > { %v1651_v46 = vmul.f32 0.015625, %v1650_v60  ;;  %v1482_v2 = vrot.slane %v1481_v29, 2  ;;  %v1497_v49 = vrot.slane %v1496_v7, 4  ;;  %v1518_v39 = vsub.f32 %v4526_v41, %v1516_v42  ;;  %v1530_v25 = vpop.xlane.xlu0 %1529 }
 0x6d2   : > { %v1694_v52 = vadd.f32 %v1693_v33, %v1692_v4  ;;  %v1534_v62 = vsub.f32 %v1466_v19, %v1530_v25  ;;  %v1675_v5 = vadd.f32 %v1674_v57, %v1673_v48  ;;  %v2401_v25 = vld [vmem:[#allocation9] sm:$0xff] (!%p2713_p5) }
 0x6d3   : > { %v1652_v45 = vadd.f32 %v1651_v46, %v1607_v51  ;;  %v1483_v36 = vadd.f32 %v1482_v2, %v1481_v29  ;;  %v1498_v9 = vadd.f32 %v1497_v49, %v1496_v7  ;;  %v1519_v32 = vadd.f32 %v1518_v39, %v1517_v63  ;;  %v1508_v51 = vld [vmem:[#allocation24] sm:$0x1] }
 0x6d4   : > { %v1695_v10 = vrot.slane %v1694_v52, 1  ;;  %v1533_v59 = vpop.xlane.xlu1 %1532 }
 0x6d5   : > { %1653 = vst.msk [vmem:[#allocation26] sm:$0x1] %vm1506_vm9, %v1652_v45  ;;  %v1499_v21 = vrot.slane %v1498_v9, 2  ;;  %v1535_v50 = vsub.f32 %v1467_v6, %v1533_v59  ;;  %v1520_v0 = vrot.slane %v1519_v32, 4  ;;  %v2020_v14 = vpop.xlane.xlu0 %2019  ;;  %v1484_v15 = vrot.slane %v1483_v36, 1  ;;  %v2372_v45 = vld [vmem:[#allocation8] sm:$0xff] (!%p2713_p5) }
 0x6d6   : > { %v1696_v18 = vadd.f32 %v1695_v10, %v1694_v52  ;;  %v2015_v52 = vld [vmem:[#allocation30] sm:$0x1]  ;;  %v2376_v10 = vmul.f32 (!%p2713_p5), %v2372_v45, %v2372_v45 }
 0x6d7   : > { %v1500_v3 = vadd.f32 %v1499_v21, %v1498_v9  ;;  %v1536_v43 = vadd.f32 %v1535_v50, %v1534_v62  ;;  %v1521_v61 = vadd.f32 %v1520_v0, %v1519_v32  ;;  %v1485_v54 = vadd.f32 %v1484_v15, %v1483_v36  ;;  %v2402_v36 = vld [vmem:[#allocation9 + $0x8] sm:$0xff] (!%p2713_p5)  ;;  %v2403_v62 = vld [vmem:[#allocation9 + $0x10] sm:$0xff] (!%p2713_p5) }
 0x6d8   : > { %v1697_v41 = vadd.f32 %v1696_v18, %v1675_v5  ;;  %v2023_v23 = vpop.xlane.xlu1 %2022  ;;  %v2405_v9 = vmul.f32 (!%p2713_p5), %v2401_v25, %v2401_v25  ;;  %v2406_v32 = vmul.f32 (!%p2713_p5), %v2402_v36, %v2402_v36  ;;  %v2373_v59 = vld [vmem:[#allocation8 + $0x8] sm:$0xff] (!%p2713_p5)  ;;  %v2374_v50 = vld [vmem:[#allocation8 + $0x10] sm:$0xff] (!%p2713_p5)  ;;  %v2380_v18 = vsel (!%p2713_p5), %vm1043_vm5, %v2376_v10, 0.0 }
 0x6d9   : > { %v1501_v55 = vrot.slane %v1500_v3, 1  ;;  %v1537_v34 = vrot.slane %v1536_v43, 4  ;;  %v2024_v22 = vadd.f32 %v2023_v23, %v2020_v14  ;;  %v1522_v35 = vrot.slane %v1521_v61, 2  ;;  %v2035_v58 = vpop.xlane.xlu0 %2034  ;;  %2381 = vadd.xlane.f32.xlu0 (!%p2713_p5), %v2380_v18 }
 0x6da   : > { %v1698_v56 = vmul.f32 0.015625, %v1697_v41  ;;  %v2377_v21 = vmul.f32 (!%p2713_p5), %v2373_v59, %v2373_v59  ;;  %v2409_v5 = vsel (!%p2713_p5), %vm1043_vm5, %v2405_v9, 0.0  ;;  %v2412_v0 = vsel (!%p2713_p5), %vm1043_vm5, %v2406_v32, 0.0  ;;  %v2375_v41 = vld [vmem:[#allocation8 + $0x18] sm:$0xff] (!%p2713_p5) }
 0x6db   : > { %v1502_v16 = vadd.f32 %v1501_v55, %v1500_v3  ;;  %v1538_v19 = vadd.f32 %v1537_v34, %v1536_v43  ;;  %v2025_v6 = vrot.slane %v2024_v22, 4  ;;  %v1523_v24 = vadd.f32 %v1522_v35, %v1521_v61  ;;  %2410 = vadd.xlane.f32.xlu1 (!%p2713_p5), %v2409_v5  ;;  %v2404_v43 = vld [vmem:[#allocation9 + $0x18] sm:$0xff] (!%p2713_p5) }
 0x6dc   : > { %v1699_v31 = vadd.f32 %v1698_v56, %v1654_v30  ;;  %v2038_v20 = vpop.xlane.xlu1 %2037  ;;  %v2383_v14 = vsel (!%p2713_p5), %vm1043_vm5, %v2377_v21, 0.0  ;;  %v2407_v15 = vmul.f32 (!%p2713_p5), %v2403_v62, %v2403_v62  ;;  %v2378_v3 = vmul.f32 (!%p2713_p5), %v2374_v50, %v2374_v50 }
 0x6dd   : > { %v1503_v13 = vadd.f32 %v1502_v16, %v1485_v54  ;;  %v1539_v27 = vrot.slane %v1538_v19, 2  ;;  %v2026_v28 = vadd.f32 %v2025_v6, %v2024_v22  ;;  %v2039_v37 = vadd.f32 %v2038_v20, %v2035_v58  ;;  %2384 = vadd.xlane.f32.xlu0 (!%p2713_p5), %v2383_v14 }
 0x6de   : > { %1700 = vst.msk [vmem:[#allocation27] sm:$0x1] %vm1506_vm9, %v1699_v31  ;;  %v1524_v11 = vrot.slane %v1523_v24, 1  ;;  %v2415_v61 = vsel (!%p2713_p5), %vm1043_vm5, %v2407_v15, 0.0  ;;  %v2386_v23 = vsel (!%p2713_p5), %vm1043_vm5, %v2378_v3, 0.0  ;;  %v2408_v30 = vmul.f32 (!%p2713_p5), %v2404_v43, %v2404_v43 }
 0x6df   : > { %v1504_v1 = vmul.f32 0.015625, %v1503_v13  ;;  %v1540_v47 = vadd.f32 %v1539_v27, %v1538_v19  ;;  %v2027_v26 = vrot.slane %v2026_v28, 2  ;;  %v2040_v12 = vrot.slane %v2039_v37, 4  ;;  %2413 = vadd.xlane.f32.xlu1 (!%p2713_p5), %v2412_v0 }
 0x6e0   : > { %v1525_v48 = vadd.f32 %v1524_v11, %v1523_v24  ;;  %v2379_v55 = vmul.f32 (!%p2713_p5), %v2375_v41, %v2375_v41  ;;  %v2418_v34 = vsel (!%p2713_p5), %vm1043_vm5, %v2408_v30, 0.0 }
 0x6e1   : > { %v1505_v38 = vadd.f32 %v1504_v1, %v1468_v53  ;;  %v1541_v17 = vrot.slane %v1540_v47, 1  ;;  %v2028_v40 = vadd.f32 %v2027_v26, %v2026_v28  ;;  %v2041_v44 = vadd.f32 %v2040_v12, %v2039_v37  ;;  %2387 = vadd.xlane.f32.xlu0 (!%p2713_p5), %v2386_v23 }
 0x6e2   : > { %v2389_v22 = vsel (!%p2713_p5), %vm1043_vm5, %v2379_v55, 0.0 }
 0x6e3   : > { %1507 = vst.msk [vmem:[#allocation23] sm:$0x1] %vm1506_vm9, %v1505_v38  ;;  %v1542_v4 = vadd.f32 %v1541_v17, %v1540_v47  ;;  %v2042_v8 = vrot.slane %v2041_v44, 2  ;;  %v2029_v29 = vrot.slane %v2028_v40, 1  ;;  %2416 = vadd.xlane.f32.xlu1 (!%p2713_p5), %v2415_v61 }
 0x6e5   : > { %v1543_v60 = vadd.f32 %v1542_v4, %v1525_v48  ;;  %v2043_v7 = vadd.f32 %v2042_v8, %v2041_v44  ;;  %v2030_v2 = vadd.f32 %v2029_v29, %v2028_v40  ;;  %2390 = vadd.xlane.f32.xlu0 (!%p2713_p5), %v2389_v22 }
 0x6e7   : > { %v1544_v33 = vmul.f32 0.015625, %v1543_v60  ;;  %v2044_v42 = vrot.slane %v2043_v7, 1  ;;  %2419 = vadd.xlane.f32.xlu1 (!%p2713_p5), %v2418_v34 }
 0x6e9   : > { %v1545_v46 = vadd.f32 %v1544_v33, %v1508_v51  ;;  %v2045_v49 = vadd.f32 %v2044_v42, %v2043_v7 }
 0x6eb   : > { %1546 = vst.msk [vmem:[#allocation24] sm:$0x1] %vm1506_vm9, %v1545_v46  ;;  %v2046_v57 = vadd.f32 %v2045_v49, %v2030_v2  ;;  %2370 = sbr.rel (%p2713_p5) target bundleno = 1930 (0x78a), region = 92 }
 0x6ed   : > { %v2047_v63 = vmul.f32 0.00048828125, %v2046_v57 }
 0x6ef   : > { %v2048_v39 = vadd.f32 %v2047_v63, %v2015_v52 }
 0x6f1   : > { %2049 = vst.msk [vmem:[#allocation30] sm:$0x1] %vm1506_vm9, %v2048_v39 }
 0x6f8   : > { %v2371_v60 = vld [vmem:[#allocation30] sm:$0x1] }
 0x766   : > { %v2382_v35 = vpop.xlane.xlu0 %2381 }
 0x768   : > { %v2411_v56 = vpop.xlane.xlu1 %2410 }
 0x76a   : > { %v2385_v16 = vpop.xlane.xlu0 %2384 }
 0x76b   : > { %v2392_v24 = vadd.f32 %v2385_v16, %v2382_v35 }
 0x76c   : > { %v2414_v54 = vpop.xlane.xlu1 %2413 }
 0x76d   : > { %v2421_v31 = vadd.f32 %v2414_v54, %v2411_v56 }
 0x76e   : > { %v2388_v6 = vpop.xlane.xlu0 %2387 }
 0x76f   : > { %v2393_v20 = vadd.f32 %v2392_v24, %v2388_v6 }
 0x770   : > { %v2417_v19 = vpop.xlane.xlu1 %2416 }
 0x771   : > { %v2422_v58 = vadd.f32 %v2421_v31, %v2417_v19 }
 0x772   : > { %v2391_v27 = vpop.xlane.xlu0 %2390 }
 0x773   : > { %v2394_v37 = vadd.f32 %v2393_v20, %v2391_v27 }
 0x774   : > { %v2420_v13 = vpop.xlane.xlu1 %2419 }
 0x775   : > { %v2423_v28 = vadd.f32 %v2422_v58, %v2420_v13  ;;  %v2395_v11 = vrot.slane %v2394_v37, 4 }
 0x777   : > { %v2424_v53 = vrot.slane %v2423_v28, 4  ;;  %v2396_v47 = vadd.f32 %v2395_v11, %v2394_v37 }
 0x779   : > { %v2425_v1 = vadd.f32 %v2424_v53, %v2423_v28  ;;  %v2397_v12 = vrot.slane %v2396_v47, 2 }
 0x77b   : > { %v2426_v26 = vrot.slane %v2425_v1, 2  ;;  %v2398_v17 = vadd.f32 %v2397_v12, %v2396_v47 }
 0x77d   : > { %v2427_v38 = vadd.f32 %v2426_v26, %v2425_v1  ;;  %v2399_v44 = vrot.slane %v2398_v17, 1 }
 0x77f   : > { %v2428_v40 = vrot.slane %v2427_v38, 1  ;;  %v2400_v4 = vadd.f32 %v2399_v44, %v2398_v17 }
 0x781   : > { %v2429_v48 = vadd.f32 %v2428_v40, %v2427_v38 }
 0x783   : > { %v2430_v8 = vadd.f32 %v2429_v48, %v2400_v4 }
 0x785   : > { %v2431_v29 = vmul.f32 0.00048828125, %v2430_v8 }
 0x787   : > { %v2432_v7 = vadd.f32 %v2431_v29, %v2371_v60 }
 0x789   : > { %2433 = vst.msk [vmem:[#allocation30] sm:$0x1] %vm1506_vm9, %v2432_v7 }
 0x78a PF: > { %p3016_p7 = scmp.eq.s32.totalorder %s3663_s30, 1  ;;  %s3576_s24 = smov [#allocation24]  }
 0x78b   : > { %s2452_s22 = sshll.u32 %s3576_s24, 4  ;;  %s3577_s0 = smov [#allocation27]   ;;  %s2453_s22 = int_to_ptr.vmem [resolvable:$true] %s2452_s22 }
 0x78c   : > { %s2474_s19 = sshll.u32 %s3577_s0, 4  ;;  %s3364_s13 = scalar_lea.vmem %s2453_s22, 16  ;;  %s2475_s19 = int_to_ptr.vmem [resolvable:$true] %s2474_s19 }
 0x78d   : > { %p3365_p3 = scmp.ne.s32.totalorder %s2453_s22, %s3364_s13  ;;  %s3370_s29 = scalar_lea.vmem %s2453_s22, 32 }
 0x78e   : > { %p3371_p9 = scmp.lt.s32.totalorder %s2453_s22, %s2453_s22  ;;  %p3372_p2 = scmp.lt.s32.totalorder %s3370_s29, %s3364_s13 }
 0x78f   : > { %p3366_p8 = pnand %p3365_p3, %p3016_p7 }
 0x790   : > { %p3373_p10 = por %p3372_p2, %p3371_p9 }
 0x791   : > { %p3367_p4 = pneg %p3366_p8 }
 0x793   : > { %p3374_p6 = pnand %p3373_p10, %p3367_p4 }
 0x795   : > { %3377 = shalt.err (!%p3374_p6)
}
 0x796   : > { %s3378_s26 = scalar_lea.hbm %s4688_s10, 16 }
 0x797   : > { %p3379_p11 = scmp.ne.s32.totalorder %s4688_s10, %s3378_s26  ;;  %p3384_p0 = scmp.lt.u32.totalorder %s3378_s26, %s4688_s10 }
 0x799   : > { %p3380_p12 = pnand %p3379_p11, %p3016_p7 }
 0x79b   : > { %p3381_p13 = pneg %p3380_p12 }
 0x79d   : > { %p3386_p1 = pnand %p3384_p0, %p3381_p13 }
 0x79f   : > { %3389 = shalt.err (!%p3386_p1)
}
 0x7a0   : > { %2959 = dma.vmem_to_hbm [thread:$0]  (%p3016_p7), %s2453_s22, 16, %s4688_s10, [#allocation25]  }
 0x7a1   : > { %s3390_s23 = scalar_lea.vmem %s2475_s19, 16  ;;  %s3396_s15 = scalar_lea.vmem %s2475_s19, 32 }
 0x7a2   : > { %p3391_p5 = scmp.ne.s32.totalorder %s2475_s19, %s3390_s23  ;;  %p3397_p4 = scmp.lt.s32.totalorder %s2475_s19, %s2475_s19 }
 0x7a3   : > { %p3398_p9 = scmp.lt.s32.totalorder %s3396_s15, %s3390_s23 }
 0x7a4   : > { %p3392_p3 = pnand %p3391_p5, %p3016_p7 }
 0x7a5   : > { %p3399_p2 = por %p3398_p9, %p3397_p4 }
 0x7a6   : > { %p3393_p8 = pneg %p3392_p3 }
 0x7a8   : > { %p3400_p10 = pnand %p3399_p2, %p3393_p8 }
 0x7aa   : > { %3403 = shalt.err (!%p3400_p10)
}
 0x7ab   : > { %s3404_s0 = scalar_lea.hbm %s4690_s12, 16 }
 0x7ac   : > { %p3405_p6 = scmp.ne.s32.totalorder %s4690_s12, %s3404_s0  ;;  %p3410_p13 = scmp.lt.u32.totalorder %s3404_s0, %s4690_s12 }
 0x7ae   : > { %p3406_p11 = pnand %p3405_p6, %p3016_p7 }
 0x7b0   : > { %p3407_p12 = pneg %p3406_p11 }
 0x7b2   : > { %p3412_p0 = pnand %p3410_p13, %p3407_p12 }
 0x7b4   : > { %3415 = shalt.err (!%p3412_p0)
}
 0x7b5   : > { %2963 = dma.vmem_to_hbm [thread:$0]  (%p3016_p7), %s2475_s19, 16, %s4690_s12, [#allocation28]  }
 0x7b6   : > { %s3578_s18 = smov [#allocation23]   ;;  %s3579_s25 = smov [#allocation26]  }
 0x7b7   : > { %s2441_s21 = sshll.u32 %s3578_s18, 4  ;;  %s2463_s17 = sshll.u32 %s3579_s25, 4  ;;  %s2442_s21 = int_to_ptr.vmem [resolvable:$true] %s2441_s21  ;;  %s2464_s17 = int_to_ptr.vmem [resolvable:$true] %s2463_s17 }
 0x7b8   : > { %s3416_s14 = scalar_lea.vmem %s2442_s21, 16  ;;  %s3422_s28 = scalar_lea.vmem %s2442_s21, 32 }
 0x7b9   : > { %p3417_p1 = scmp.ne.s32.totalorder %s2442_s21, %s3416_s14  ;;  %p3423_p8 = scmp.lt.s32.totalorder %s2442_s21, %s2442_s21 }
 0x7ba   : > { %p3424_p4 = scmp.lt.s32.totalorder %s3422_s28, %s3416_s14 }
 0x7bb   : > { %p3418_p5 = pnand %p3417_p1, %p3016_p7 }
 0x7bc   : > { %p3425_p9 = por %p3424_p4, %p3423_p8 }
 0x7bd   : > { %p3419_p3 = pneg %p3418_p5 }
 0x7bf   : > { %p3426_p2 = pnand %p3425_p9, %p3419_p3 }
 0x7c1   : > { %3429 = shalt.err (!%p3426_p2)
}
 0x7c2   : > { %s3430_s19 = scalar_lea.hbm %s4687_s9, 16 }
 0x7c3   : > { %p3431_p10 = scmp.ne.s32.totalorder %s4687_s9, %s3430_s19  ;;  %p3436_p12 = scmp.lt.u32.totalorder %s3430_s19, %s4687_s9 }
 0x7c5   : > { %p3432_p6 = pnand %p3431_p10, %p3016_p7 }
 0x7c7   : > { %p3433_p11 = pneg %p3432_p6 }
 0x7c9   : > { %p3438_p13 = pnand %p3436_p12, %p3433_p11 }
 0x7cb   : > { %3441 = shalt.err (!%p3438_p13)
}
 0x7cc   : > { %2957 = dma.vmem_to_hbm [thread:$0]  (%p3016_p7), %s2442_s21, 16, %s4687_s9, [#allocation12]  }
 0x7cd   : > { %s3442_s27 = scalar_lea.vmem %s2464_s17, 16  ;;  %s3448_s16 = scalar_lea.vmem %s2464_s17, 32 }
 0x7ce   : > { %p3443_p0 = scmp.ne.s32.totalorder %s2464_s17, %s3442_s27  ;;  %p3449_p3 = scmp.lt.s32.totalorder %s2464_s17, %s2464_s17 }
 0x7cf   : > { %p3450_p8 = scmp.lt.s32.totalorder %s3448_s16, %s3442_s27 }
 0x7d0   : > { %p3444_p1 = pnand %p3443_p0, %p3016_p7 }
 0x7d1   : > { %p3451_p4 = por %p3450_p8, %p3449_p3 }
 0x7d2   : > { %p3445_p5 = pneg %p3444_p1 }
 0x7d4   : > { %p3452_p9 = pnand %p3451_p4, %p3445_p5 }
 0x7d6   : > { %3455 = shalt.err (!%p3452_p9)
}
 0x7d7   : > { %s3456_s25 = scalar_lea.hbm %s4689_s11, 16 }
 0x7d8   : > { %p3457_p2 = scmp.ne.s32.totalorder %s4689_s11, %s3456_s25  ;;  %p3462_p11 = scmp.lt.u32.totalorder %s3456_s25, %s4689_s11 }
 0x7da   : > { %p3458_p10 = pnand %p3457_p2, %p3016_p7 }
 0x7dc   : > { %p3459_p6 = pneg %p3458_p10 }
 0x7de   : > { %p3464_p12 = pnand %p3462_p11, %p3459_p6 }
 0x7e0   : > { %3467 = shalt.err (!%p3464_p12)
}
 0x7e1   : > { %2961 = dma.vmem_to_hbm [thread:$0]  (%p3016_p7), %s2464_s17, 16, %s4689_s11, [#allocation25]  }
 0x7e2   : > { %s3580_s20 = smov [#allocation29]   ;;  %s3581_s0 = smov [#allocation30]  }
 0x7e3   : > { %s2485_s24 = sshll.u32 %s3580_s20, 4  ;;  %s2496_s13 = sshll.u32 %s3581_s0, 4  ;;  %s2486_s24 = int_to_ptr.vmem [resolvable:$true] %s2485_s24  ;;  %s2497_s13 = int_to_ptr.vmem [resolvable:$true] %s2496_s13 }
 0x7e4   : > { %s3468_s29 = scalar_lea.vmem %s2486_s24, 16  ;;  %s3474_s22 = scalar_lea.vmem %s2486_s24, 32 }
 0x7e5   : > { %p3469_p13 = scmp.ne.s32.totalorder %s2486_s24, %s3468_s29  ;;  %p3475_p5 = scmp.lt.s32.totalorder %s2486_s24, %s2486_s24 }
 0x7e6   : > { %p3476_p3 = scmp.lt.s32.totalorder %s3474_s22, %s3468_s29 }
 0x7e7   : > { %p3470_p0 = pnand %p3469_p13, %p3016_p7 }
 0x7e8   : > { %p3477_p8 = por %p3476_p3, %p3475_p5 }
 0x7e9   : > { %p3471_p1 = pneg %p3470_p0 }
 0x7eb   : > { %p3478_p4 = pnand %p3477_p8, %p3471_p1 }
 0x7ed   : > { %3481 = shalt.err (!%p3478_p4)
}
 0x7ee   : > { %s4722_s26 = sld [smem:[#allocation43_spill]] }
 0x7f4   : > { %s3482_s17 = scalar_lea.hbm %s4722_s26, 16 }
 0x7f5   : > { %p3483_p9 = scmp.ne.s32.totalorder %s4722_s26, %s3482_s17  ;;  %p3488_p6 = scmp.lt.u32.totalorder %s3482_s17, %s4722_s26 }
 0x7f7   : > { %p3484_p2 = pnand %p3483_p9, %p3016_p7 }
 0x7f9   : > { %p3485_p10 = pneg %p3484_p2 }
 0x7fb   : > { %p3490_p11 = pnand %p3488_p6, %p3485_p10 }
 0x7fd   : > { %3493 = shalt.err (!%p3490_p11)
}
 0x7fe   : > { %2965 = dma.vmem_to_hbm [thread:$0]  (%p3016_p7), %s2486_s24, 16, %s4722_s26, [#allocation28]  }
 0x7ff   : > { %s3494_s15 = scalar_lea.vmem %s2497_s13, 16  ;;  %s3500_s19 = scalar_lea.vmem %s2497_s13, 32 }
 0x800   : > { %p3495_p12 = scmp.ne.s32.totalorder %s2497_s13, %s3494_s15  ;;  %p3501_p1 = scmp.lt.s32.totalorder %s2497_s13, %s2497_s13 }
 0x801   : > { %p3502_p5 = scmp.lt.s32.totalorder %s3500_s19, %s3494_s15 }
 0x802   : > { %p3496_p13 = pnand %p3495_p12, %p3016_p7 }
 0x803   : > { %p3503_p3 = por %p3502_p5, %p3501_p1 }
 0x804   : > { %p3497_p0 = pneg %p3496_p13 }
 0x806   : > { %p3504_p8 = pnand %p3503_p3, %p3497_p0 }
 0x808   : > { %3507 = shalt.err (!%p3504_p8)
}
 0x809   : > { %s4723_s29 = sld [smem:[#allocation44_spill]] }
 0x80f   : > { %s4724_s22 = smov %s4723_s29  ;;  %s3508_s27 = scalar_lea.hbm %s4723_s29, 16 }
 0x810   : > { %p3509_p4 = scmp.ne.s32.totalorder %s4724_s22, %s3508_s27  ;;  %p3514_p10 = scmp.lt.u32.totalorder %s3508_s27, %s4724_s22 }
 0x812   : > { %p3510_p9 = pnand %p3509_p4, %p3016_p7 }
 0x814   : > { %p3511_p2 = pneg %p3510_p9 }
 0x816   : > { %p3516_p6 = pnand %p3514_p10, %p3511_p2 }
 0x818   : > { %3519 = shalt.err (!%p3516_p6)
}
 0x819   : > { %2967 = dma.vmem_to_hbm [thread:$0]  (%p3016_p7), %s2497_s13, 16, %s4724_s22, [#allocation31]  }
 0x81a   : > { %3545 = dma.done.wait (%p3016_p7), [#allocation12], 16  }
 0x81b   : > { %3547 = vsyncadd (%p3016_p7), [#allocation12], 4294967280 }
 0x81c   : > { %3549 = dma.done.wait (%p3016_p7), [#allocation25], 32  }
 0x81d   : > { %3551 = vsyncadd (%p3016_p7), [#allocation25], 4294967264 }
 0x81e   : > { %3553 = dma.done.wait (%p3016_p7), [#allocation28], 32  }
 0x81f   : > { %3555 = vsyncadd (%p3016_p7), [#allocation28], 4294967264 }
 0x820   : > { %3557 = dma.done.wait (%p3016_p7), [#allocation31], 16  }
 0x821   : > { %3559 = vsyncadd (%p3016_p7), [#allocation31], 4294967280 }
 0x822 PF: > { %s4725_s13 = sld [smem:[#allocation41_spill]] }
 0x828   : > { %s34_s29 = sadd.s32 1, %s4725_s13  }
 0x829   : > { %p31_p11 = scmp.ge.s32.totalorder %s34_s29, 4  }
 0x82b   :  { %33 = sbr.rel (!%p31_p11) target bundleno = 13 (0xd), region = 164 }
 0x832   :  { %2529 = vsyncpa [#allocation11], 1 }
 0x833   :  { %2531 = vsyncpa [#allocation11 + $0x1], 1 }
 0x834   :  { %2532 = vsyncpa [#allocation16], 1 }
 0x835   :  { %2533 = vsyncpa [#allocation19], 1 }
 0x836   :  { %2534 = vsyncpa [#allocation22], 1 }
 0x837   :  { %2535 = vsyncpa [#allocation12], 1 }
 0x838   :  { %2537 = vsyncpa [#allocation12 + $0x1], 1 }
 0x839   :  { %2538 = vsyncpa [#allocation25], 1 }
 0x83a   :  { %2539 = vsyncpa [#allocation28], 1 }
 0x83b   :  { %2540 = vsyncpa [#allocation31], 1 }
 0x83c   :  { %2541 = vsyncpa [#allocation13], 1 }
 0x83d   :  { %2543 = vsyncpa [#allocation13 + $0x1], 1 }

</bundles_post_ra>
